<compile_context>
chip_gen: v7x
topology: tpu7x:2x2x1
jax: 0.10.0
libtpu: 0.0.40
codegen_flags: <defaults>
</compile_context>

<pallas_src>
import jax
import jax.numpy as jnp
from jax.experimental import pallas as pl
from jax.experimental.pallas import tpu as pltpu

LANE = 128


def _ceil_to(x, m):
    return (x + m - 1) // m * m


# --------------------------------------------------------------------------------------
# Pallas kernel factory
# --------------------------------------------------------------------------------------
def _make_kernel(stride, Ho, Wo, Cin_p, Cout_p, has_proj):
    s = stride
    P = Ho * Wo

    def compute(xin_ref, w1_ref, b1_ref, w2_ref, b2_ref, wsc_ref, bsc_ref, out_ref):
        # ---- conv1 taps: 9 unit-stride slices of the phase-decomposed padded input ----
        taps1 = []
        for dy in range(3):
            for dx in range(3):
                p = (dy % s) * s + (dx % s)             # stride-phase plane
                a, b = dy // s, dx // s                 # offset inside the plane
                sl = xin_ref[p, a:a + Ho, b:b + Wo, :]  # (Ho, Wo, Cin_p) bf16
                taps1.append(sl.reshape(P, Cin_p))

        # ---- conv1: ONE wide-K matmul (K = 9*Cin_p) + BN1 bias + ReLU ------------------
        t1 = jnp.concatenate(taps1, axis=-1)            # (P, 9*Cin_p)
        y1 = jnp.dot(t1, w1_ref[...], preferred_element_type=jnp.float32)
        y1 = jnp.maximum(y1 + b1_ref[...], 0.0)

        # ---- conv2 taps: value-level, lane-dense spatial zero-pad of y1 ----------------
        y1b = y1.astype(jnp.bfloat16).reshape(Ho, Wo, Cout_p)
        zr = jnp.zeros((1, Wo, Cout_p), jnp.bfloat16)
        zc = jnp.zeros((Ho + 2, 1, Cout_p), jnp.bfloat16)
        y1p = jnp.concatenate([zr, y1b, zr], axis=0)
        y1p = jnp.concatenate([zc, y1p, zc], axis=1)    # (Ho+2, Wo+2, Cout_p)
        taps2 = [y1p[dy:dy + Ho, dx:dx + Wo, :].reshape(P, Cout_p)
                 for dy in range(3) for dx in range(3)]

        # ---- conv2: ONE wide-K matmul (K = 9*Cout_p) + BN2 bias -------------------------
        t2 = jnp.concatenate(taps2, axis=-1)            # (P, 9*Cout_p)
        y2 = jnp.dot(t2, w2_ref[...], preferred_element_type=jnp.float32) + b2_ref[...]

        # ---- shortcut: the center conv1 tap IS the (strided) shortcut input ------------
        xc = taps1[4]                                   # (P, Cin_p) bf16
        if has_proj:
            sc = jnp.dot(xc, wsc_ref[...], preferred_element_type=jnp.float32)
            sc = sc + bsc_ref[...]
        else:
            sc = xc.astype(jnp.float32)

        # ---- residual add + ReLU ---------------------------------------------------------
        out_ref[0] = jnp.maximum(y2 + sc, 0.0).reshape(Ho, Wo, Cout_p)

    if has_proj:
        def kernel(xin_ref, w1_ref, b1_ref, w2_ref, b2_ref, wsc_ref, bsc_ref, out_ref):
            compute(xin_ref, w1_ref, b1_ref, w2_ref, b2_ref, wsc_ref, bsc_ref, out_ref)
    else:
        def kernel(xin_ref, w1_ref, b1_ref, w2_ref, b2_ref, out_ref):
            compute(xin_ref, w1_ref, b1_ref, w2_ref, b2_ref, None, None, out_ref)
    return kernel


# --------------------------------------------------------------------------------------
# Parameters (deterministic, synthetic) + BN folding
# --------------------------------------------------------------------------------------
def _bn_params(key, c):
    k = jax.random.split(key, 4)
    gamma = 1.0 + 0.1 * jax.random.normal(k[0], (c,), jnp.float32)
    beta = 0.1 * jax.random.normal(k[1], (c,), jnp.float32)
    mean = 0.1 * jax.random.normal(k[2], (c,), jnp.float32)
    var = 0.5 + jnp.abs(jax.random.normal(k[3], (c,), jnp.float32))
    return dict(gamma=gamma, beta=beta, mean=mean, var=var)


def _fold_bn(bn, eps=1e-5):
    scale = bn["gamma"] / jnp.sqrt(bn["var"] + eps)
    bias = bn["beta"] - bn["mean"] * scale
    return scale.reshape(1, -1), bias.reshape(1, -1)


def build_params(key, cin, cout, stride):
    ks = jax.random.split(key, 8)
    p = {
        "w1": 0.1 * jax.random.normal(ks[0], (3, 3, cin, cout), jnp.float32),   # HWIO
        "bn1": _bn_params(ks[1], cout),
        "w2": 0.1 * jax.random.normal(ks[2], (3, 3, cout, cout), jnp.float32),  # HWIO
        "bn2": _bn_params(ks[3], cout),
    }
    if stride != 1 or cin != cout:
        p["wsc"] = 0.1 * jax.random.normal(ks[4], (1, 1, cin, cout), jnp.float32)
        p["bnsc"] = _bn_params(ks[5], cout)
    return p


# --------------------------------------------------------------------------------------
# Wrapper: layout glue in JAX; all matmuls / BN-bias / ReLU / residual in Pallas.
# --------------------------------------------------------------------------------------
def residual_block_pallas(x_nchw, params, stride=1):
    s = int(stride)
    x = jnp.transpose(x_nchw, (0, 2, 3, 1)).astype(jnp.float32)      # NCHW -> NHWC
    N, H, W, Cin = x.shape
    Cout = params["w1"].shape[-1]
    Ho = (H + 2 - 3) // s + 1
    Wo = (W + 2 - 3) // s + 1
    has_proj = (s != 1) or (Cin != Cout)

    Cin_p = _ceil_to(Cin, LANE)
    Cout_p = _ceil_to(Cout, LANE)

    # conv padding (=1), round H/W up to a multiple of s, lane-pad the channel axis.
    Hp = _ceil_to(H + 2, s)
    Wp = _ceil_to(W + 2, s)
    xp = jnp.pad(x, ((0, 0), (1, Hp - H - 1), (1, Wp - W - 1), (0, Cin_p - Cin)))
    Hh, Wh = Hp // s, Wp // s

    # stride-phase decomposition: plane (py, px) holds xp[:, py::s, px::s, :].
    xin = (xp.reshape(N, Hh, s, Wh, s, Cin_p)
             .transpose(0, 2, 4, 1, 3, 5)
             .reshape(N * s * s, Hh, Wh, Cin_p)
             .astype(jnp.bfloat16))

    def fold_weight(w, cip, cop, scale):                 # fold BN scale into weights
        kh, kw, ci, co = w.shape
        wp = jnp.pad(w, ((0, 0), (0, 0), (0, cip - ci), (0, cop - co)))
        sp = jnp.pad(scale.reshape(-1), (0, cop - co))
        return (wp * sp).reshape(kh * kw * cip, cop).astype(jnp.bfloat16)

    def pad_bias(b, cop):
        return jnp.pad(b.reshape(-1), (0, cop - b.size)).reshape(1, cop).astype(jnp.float32)

    s1, b1 = _fold_bn(params["bn1"])
    s2, b2 = _fold_bn(params["bn2"])
    w1 = fold_weight(params["w1"], Cin_p, Cout_p, s1)     # (9*Cin_p, Cout_p)
    w2 = fold_weight(params["w2"], Cout_p, Cout_p, s2)    # (9*Cout_p, Cout_p)

    operands = [xin, w1, pad_bias(b1, Cout_p), w2, pad_bias(b2, Cout_p)]
    in_specs = [
        pl.BlockSpec((s * s, Hh, Wh, Cin_p), lambda n: (n, 0, 0, 0)),
        pl.BlockSpec((9 * Cin_p, Cout_p), lambda n: (0, 0)),
        pl.BlockSpec((1, Cout_p), lambda n: (0, 0)),
        pl.BlockSpec((9 * Cout_p, Cout_p), lambda n: (0, 0)),
        pl.BlockSpec((1, Cout_p), lambda n: (0, 0)),
    ]
    if has_proj:
        ssc, bsc = _fold_bn(params["bnsc"])
        wsc = fold_weight(params["wsc"], Cin_p, Cout_p, ssc)   # (Cin_p, Cout_p)
        operands += [wsc, pad_bias(bsc, Cout_p)]
        in_specs += [pl.BlockSpec((Cin_p, Cout_p), lambda n: (0, 0)),
                     pl.BlockSpec((1, Cout_p), lambda n: (0, 0))]

    kernel = _make_kernel(s, Ho, Wo, Cin_p, Cout_p, has_proj)

    out = pl.pallas_call(
        kernel,
        out_shape=jax.ShapeDtypeStruct((N, Ho, Wo, Cout_p), jnp.float32),
        grid=(N,),
        in_specs=in_specs,
        out_specs=pl.BlockSpec((1, Ho, Wo, Cout_p), lambda n: (n, 0, 0, 0)),
        compiler_params=pltpu.CompilerParams(
            dimension_semantics=("parallel",),
            vmem_limit_bytes=32 * 1024 * 1024),
    )(*operands)

    out = out[..., :Cout]                        # drop channel lane-padding
    return jnp.transpose(out, (0, 3, 1, 2))      # NHWC -> NCHW


# --------------------------------------------------------------------------------------
# Pure-JAX f32 reference (for correctness check)
# --------------------------------------------------------------------------------------
def residual_block_ref(x_nchw, params, stride=1):
    x = jnp.transpose(x_nchw, (0, 2, 3, 1)).astype(jnp.float32)
    Cin = x.shape[-1]
    Cout = params["w1"].shape[-1]
    has_proj = (stride != 1) or (Cin != Cout)
    dn = ("NHWC", "HWIO", "NHWC")

    def conv(v, w, s, pad):
        return jax.lax.conv_general_dilated(v, w, (s, s), pad, dimension_numbers=dn)

    s1, b1 = _fold_bn(params["bn1"])
    s2, b2 = _fold_bn(params["bn2"])
    y = conv(x, params["w1"], stride, [(1, 1), (1, 1)]) * s1 + b1
    y = jnp.maximum(y, 0.0)
    y = conv(y, params["w2"], 1, [(1, 1), (1, 1)]) * s2 + b2
    if has_proj:
        ssc, bsc = _fold_bn(params["bnsc"])
        sc = conv(x, params["wsc"], stride, [(0, 0), (0, 0)]) * ssc + bsc
    else:
        sc = x
    out = jnp.maximum(y + sc, 0.0)
    return jnp.transpose(out, (0, 3, 1, 2))


# --------------------------------------------------------------------------------------
if __name__ == "__main__":
    key = jax.random.PRNGKey(0)
    kx, kp1, kp2, kp3 = jax.random.split(key, 4)

    configs = [
        # (inchannel, outchannel, stride)
        (4, 8, 1),   # projection shortcut (channel change)
        (8, 8, 1),   # identity shortcut
        (4, 8, 2),   # projection shortcut with stride 2
    ]
    pkeys = [kp1, kp2, kp3]

    ok = True
    for (cin, cout, stride), pk in zip(configs, pkeys):
        x = jax.random.normal(kx, (2, cin, 16, 16), jnp.float32)   # NCHW, like PyTorch
        params = build_params(pk, cin, cout, stride)

        out = jax.block_until_ready(residual_block_pallas(x, params, stride=stride))
        ref = jax.block_until_ready(residual_block_ref(x, params, stride=stride))

        # bf16 activations/weights on the MXU -> compare to the f32 reference at
        # bf16-level tolerance.
        if out.shape != ref.shape or not jnp.allclose(out, ref, atol=3e-2, rtol=3e-2):
            ok = False
            print(f"MISMATCH cin={cin} cout={cout} stride={stride}: "
                  f"max abs err {float(jnp.max(jnp.abs(out - ref)))}")

    if ok:
        print("KERNEL_OK")
</pallas_src>

<mosaic_0001>
module attributes {stable_mosaic.version = 11 : i64} {
  func.func @kernel(%arg0: i32, %arg1: memref<1x18x18x128xbf16, #tpu.memory_space<vmem>>, %arg2: memref<1152x128xbf16, #tpu.memory_space<vmem>>, %arg3: memref<1x128xf32, #tpu.memory_space<vmem>>, %arg4: memref<1152x128xbf16, #tpu.memory_space<vmem>>, %arg5: memref<1x128xf32, #tpu.memory_space<vmem>>, %arg6: memref<128x128xbf16, #tpu.memory_space<vmem>>, %arg7: memref<1x128xf32, #tpu.memory_space<vmem>>, %arg8: memref<1x16x16x128xf32, #tpu.memory_space<vmem>>) attributes {dimension_semantics = [#tpu.dimension_semantics<parallel>], iteration_bounds = array<i64: 2>, scalar_prefetch = 0 : i64, scratch_operands = 0 : i64, tpu.core_type = #tpu.core_type<tc>, window_params = [{transform_indices = @transform_0, window_bounds = array<i64: 1, 18, 18, 128>}, {pipeline_mode = #tpu.pipeline_mode<synchronous>, transform_indices = @transform_1, window_bounds = array<i64: 1152, 128>}, {pipeline_mode = #tpu.pipeline_mode<synchronous>, transform_indices = @transform_2, window_bounds = array<i64: 1, 128>}, {pipeline_mode = #tpu.pipeline_mode<synchronous>, transform_indices = @transform_3, window_bounds = array<i64: 1152, 128>}, {pipeline_mode = #tpu.pipeline_mode<synchronous>, transform_indices = @transform_4, window_bounds = array<i64: 1, 128>}, {pipeline_mode = #tpu.pipeline_mode<synchronous>, transform_indices = @transform_5, window_bounds = array<i64: 128, 128>}, {pipeline_mode = #tpu.pipeline_mode<synchronous>, transform_indices = @transform_6, window_bounds = array<i64: 1, 128>}, {transform_indices = @transform_7, window_bounds = array<i64: 1, 16, 16, 128>}]} {
    %c0 = arith.constant 0 : index
    %c0_0 = arith.constant 0 : index
    %c0_1 = arith.constant 0 : index
    %c0_2 = arith.constant 0 : index
    %0 = vector.load %arg1[%c0, %c0_0, %c0_1, %c0_2] : memref<1x18x18x128xbf16, #tpu.memory_space<vmem>>, vector<1x16x16x128xbf16>
    %1 = vector.shape_cast %0 : vector<1x16x16x128xbf16> to vector<16x16x128xbf16>
    %2 = vector.shape_cast %1 : vector<16x16x128xbf16> to vector<256x128xbf16>
    %c0_3 = arith.constant 0 : index
    %c0_4 = arith.constant 0 : index
    %c1 = arith.constant 1 : index
    %c0_5 = arith.constant 0 : index
    %3 = vector.load %arg1[%c0_3, %c0_4, %c1, %c0_5] : memref<1x18x18x128xbf16, #tpu.memory_space<vmem>>, vector<1x16x16x128xbf16>
    %4 = vector.shape_cast %3 : vector<1x16x16x128xbf16> to vector<16x16x128xbf16>
    %5 = vector.shape_cast %4 : vector<16x16x128xbf16> to vector<256x128xbf16>
    %c0_6 = arith.constant 0 : index
    %c0_7 = arith.constant 0 : index
    %c2 = arith.constant 2 : index
    %c0_8 = arith.constant 0 : index
    %6 = vector.load %arg1[%c0_6, %c0_7, %c2, %c0_8] : memref<1x18x18x128xbf16, #tpu.memory_space<vmem>>, vector<1x16x16x128xbf16>
    %7 = vector.shape_cast %6 : vector<1x16x16x128xbf16> to vector<16x16x128xbf16>
    %8 = vector.shape_cast %7 : vector<16x16x128xbf16> to vector<256x128xbf16>
    %c0_9 = arith.constant 0 : index
    %c1_10 = arith.constant 1 : index
    %c0_11 = arith.constant 0 : index
    %c0_12 = arith.constant 0 : index
    %9 = vector.load %arg1[%c0_9, %c1_10, %c0_11, %c0_12] : memref<1x18x18x128xbf16, #tpu.memory_space<vmem>>, vector<1x16x16x128xbf16>
    %10 = vector.shape_cast %9 : vector<1x16x16x128xbf16> to vector<16x16x128xbf16>
    %11 = vector.shape_cast %10 : vector<16x16x128xbf16> to vector<256x128xbf16>
    %c0_13 = arith.constant 0 : index
    %c1_14 = arith.constant 1 : index
    %c1_15 = arith.constant 1 : index
    %c0_16 = arith.constant 0 : index
    %12 = vector.load %arg1[%c0_13, %c1_14, %c1_15, %c0_16] : memref<1x18x18x128xbf16, #tpu.memory_space<vmem>>, vector<1x16x16x128xbf16>
    %13 = vector.shape_cast %12 : vector<1x16x16x128xbf16> to vector<16x16x128xbf16>
    %14 = vector.shape_cast %13 : vector<16x16x128xbf16> to vector<256x128xbf16>
    %c0_17 = arith.constant 0 : index
    %c1_18 = arith.constant 1 : index
    %c2_19 = arith.constant 2 : index
    %c0_20 = arith.constant 0 : index
    %15 = vector.load %arg1[%c0_17, %c1_18, %c2_19, %c0_20] : memref<1x18x18x128xbf16, #tpu.memory_space<vmem>>, vector<1x16x16x128xbf16>
    %16 = vector.shape_cast %15 : vector<1x16x16x128xbf16> to vector<16x16x128xbf16>
    %17 = vector.shape_cast %16 : vector<16x16x128xbf16> to vector<256x128xbf16>
    %c0_21 = arith.constant 0 : index
    %c2_22 = arith.constant 2 : index
    %c0_23 = arith.constant 0 : index
    %c0_24 = arith.constant 0 : index
    %18 = vector.load %arg1[%c0_21, %c2_22, %c0_23, %c0_24] : memref<1x18x18x128xbf16, #tpu.memory_space<vmem>>, vector<1x16x16x128xbf16>
    %19 = vector.shape_cast %18 : vector<1x16x16x128xbf16> to vector<16x16x128xbf16>
    %20 = vector.shape_cast %19 : vector<16x16x128xbf16> to vector<256x128xbf16>
    %c0_25 = arith.constant 0 : index
    %c2_26 = arith.constant 2 : index
    %c1_27 = arith.constant 1 : index
    %c0_28 = arith.constant 0 : index
    %21 = vector.load %arg1[%c0_25, %c2_26, %c1_27, %c0_28] : memref<1x18x18x128xbf16, #tpu.memory_space<vmem>>, vector<1x16x16x128xbf16>
    %22 = vector.shape_cast %21 : vector<1x16x16x128xbf16> to vector<16x16x128xbf16>
    %23 = vector.shape_cast %22 : vector<16x16x128xbf16> to vector<256x128xbf16>
    %c0_29 = arith.constant 0 : index
    %c2_30 = arith.constant 2 : index
    %c2_31 = arith.constant 2 : index
    %c0_32 = arith.constant 0 : index
    %24 = vector.load %arg1[%c0_29, %c2_30, %c2_31, %c0_32] : memref<1x18x18x128xbf16, #tpu.memory_space<vmem>>, vector<1x16x16x128xbf16>
    %25 = vector.shape_cast %24 : vector<1x16x16x128xbf16> to vector<16x16x128xbf16>
    %26 = vector.shape_cast %25 : vector<16x16x128xbf16> to vector<256x128xbf16>
    %27 = tpu.concatenate %2, %5, %8, %11, %14, %17, %20, %23, %26 in 1 : vector<256x128xbf16>, vector<256x128xbf16>, vector<256x128xbf16>, vector<256x128xbf16>, vector<256x128xbf16>, vector<256x128xbf16>, vector<256x128xbf16>, vector<256x128xbf16>, vector<256x128xbf16> -> vector<256x1152xbf16>
    %c0_33 = arith.constant 0 : index
    %c0_34 = arith.constant 0 : index
    %28 = vector.load %arg2[%c0_33, %c0_34] : memref<1152x128xbf16, #tpu.memory_space<vmem>>, vector<1152x128xbf16>
    %cst = arith.constant dense<0.000000e+00> : vector<256x128xf32>
    %29 = tpu.matmul %27, %28, %cst {dimension_numbers = #tpu.dot_dimension_numbers<[1], [0], [0], [1], [0, 0, 1, 1], [], []>} : vector<256x1152xbf16>, vector<1152x128xbf16>, vector<256x128xf32> -> vector<256x128xf32>
    %c0_35 = arith.constant 0 : index
    %c0_36 = arith.constant 0 : index
    %30 = vector.load %arg3[%c0_35, %c0_36] : memref<1x128xf32, #tpu.memory_space<vmem>>, vector<1x128xf32>
    %31 = vector.broadcast %30 : vector<1x128xf32> to vector<256x128xf32>
    %32 = arith.addf %29, %31 : vector<256x128xf32>
    %cst_37 = arith.constant 0.000000e+00 : f32
    %33 = vector.broadcast %cst_37 : f32 to vector<256x128xf32>
    %34 = arith.maximumf %32, %33 : vector<256x128xf32>
    %35 = arith.truncf %34 : vector<256x128xf32> to vector<256x128xbf16>
    %36 = vector.shape_cast %35 : vector<256x128xbf16> to vector<16x16x128xbf16>
    %cst_38 = arith.constant 0.000000e+00 : bf16
    %37 = vector.broadcast %cst_38 : bf16 to vector<1x16x128xbf16>
    %cst_39 = arith.constant 0.000000e+00 : bf16
    %38 = vector.broadcast %cst_39 : bf16 to vector<18x1x128xbf16>
    %39 = tpu.concatenate %37, %36, %37 in 0 : vector<1x16x128xbf16>, vector<16x16x128xbf16>, vector<1x16x128xbf16> -> vector<18x16x128xbf16>
    %40 = tpu.concatenate %38, %39, %38 in 1 : vector<18x1x128xbf16>, vector<18x16x128xbf16>, vector<18x1x128xbf16> -> vector<18x18x128xbf16>
    %41 = vector.extract_strided_slice %40 {offsets = [0, 0, 0], sizes = [16, 16, 128], strides = [1, 1, 1]} : vector<18x18x128xbf16> to vector<16x16x128xbf16>
    %42 = vector.shape_cast %41 : vector<16x16x128xbf16> to vector<256x128xbf16>
    %43 = vector.extract_strided_slice %40 {offsets = [0, 1, 0], sizes = [16, 16, 128], strides = [1, 1, 1]} : vector<18x18x128xbf16> to vector<16x16x128xbf16>
    %44 = vector.shape_cast %43 : vector<16x16x128xbf16> to vector<256x128xbf16>
    %45 = vector.extract_strided_slice %40 {offsets = [0, 2, 0], sizes = [16, 16, 128], strides = [1, 1, 1]} : vector<18x18x128xbf16> to vector<16x16x128xbf16>
    %46 = vector.shape_cast %45 : vector<16x16x128xbf16> to vector<256x128xbf16>
    %47 = vector.extract_strided_slice %40 {offsets = [1, 0, 0], sizes = [16, 16, 128], strides = [1, 1, 1]} : vector<18x18x128xbf16> to vector<16x16x128xbf16>
    %48 = vector.shape_cast %47 : vector<16x16x128xbf16> to vector<256x128xbf16>
    %49 = vector.extract_strided_slice %40 {offsets = [1, 1, 0], sizes = [16, 16, 128], strides = [1, 1, 1]} : vector<18x18x128xbf16> to vector<16x16x128xbf16>
    %50 = vector.shape_cast %49 : vector<16x16x128xbf16> to vector<256x128xbf16>
    %51 = vector.extract_strided_slice %40 {offsets = [1, 2, 0], sizes = [16, 16, 128], strides = [1, 1, 1]} : vector<18x18x128xbf16> to vector<16x16x128xbf16>
    %52 = vector.shape_cast %51 : vector<16x16x128xbf16> to vector<256x128xbf16>
    %53 = vector.extract_strided_slice %40 {offsets = [2, 0, 0], sizes = [16, 16, 128], strides = [1, 1, 1]} : vector<18x18x128xbf16> to vector<16x16x128xbf16>
    %54 = vector.shape_cast %53 : vector<16x16x128xbf16> to vector<256x128xbf16>
    %55 = vector.extract_strided_slice %40 {offsets = [2, 1, 0], sizes = [16, 16, 128], strides = [1, 1, 1]} : vector<18x18x128xbf16> to vector<16x16x128xbf16>
    %56 = vector.shape_cast %55 : vector<16x16x128xbf16> to vector<256x128xbf16>
    %57 = vector.extract_strided_slice %40 {offsets = [2, 2, 0], sizes = [16, 16, 128], strides = [1, 1, 1]} : vector<18x18x128xbf16> to vector<16x16x128xbf16>
    %58 = vector.shape_cast %57 : vector<16x16x128xbf16> to vector<256x128xbf16>
    %59 = tpu.concatenate %42, %44, %46, %48, %50, %52, %54, %56, %58 in 1 : vector<256x128xbf16>, vector<256x128xbf16>, vector<256x128xbf16>, vector<256x128xbf16>, vector<256x128xbf16>, vector<256x128xbf16>, vector<256x128xbf16>, vector<256x128xbf16>, vector<256x128xbf16> -> vector<256x1152xbf16>
    %c0_40 = arith.constant 0 : index
    %c0_41 = arith.constant 0 : index
    %60 = vector.load %arg4[%c0_40, %c0_41] : memref<1152x128xbf16, #tpu.memory_space<vmem>>, vector<1152x128xbf16>
    %cst_42 = arith.constant dense<0.000000e+00> : vector<256x128xf32>
    %61 = tpu.matmul %59, %60, %cst_42 {dimension_numbers = #tpu.dot_dimension_numbers<[1], [0], [0], [1], [0, 0, 1, 1], [], []>} : vector<256x1152xbf16>, vector<1152x128xbf16>, vector<256x128xf32> -> vector<256x128xf32>
    %c0_43 = arith.constant 0 : index
    %c0_44 = arith.constant 0 : index
    %62 = vector.load %arg5[%c0_43, %c0_44] : memref<1x128xf32, #tpu.memory_space<vmem>>, vector<1x128xf32>
    %63 = vector.broadcast %62 : vector<1x128xf32> to vector<256x128xf32>
    %64 = arith.addf %61, %63 : vector<256x128xf32>
    %c0_45 = arith.constant 0 : index
    %c0_46 = arith.constant 0 : index
    %65 = vector.load %arg6[%c0_45, %c0_46] : memref<128x128xbf16, #tpu.memory_space<vmem>>, vector<128x128xbf16>
    %cst_47 = arith.constant dense<0.000000e+00> : vector<256x128xf32>
    %66 = tpu.matmul %14, %65, %cst_47 {dimension_numbers = #tpu.dot_dimension_numbers<[1], [0], [0], [1], [0, 0, 1, 1], [], []>} : vector<256x128xbf16>, vector<128x128xbf16>, vector<256x128xf32> -> vector<256x128xf32>
    %c0_48 = arith.constant 0 : index
    %c0_49 = arith.constant 0 : index
    %67 = vector.load %arg7[%c0_48, %c0_49] : memref<1x128xf32, #tpu.memory_space<vmem>>, vector<1x128xf32>
    %68 = vector.broadcast %67 : vector<1x128xf32> to vector<256x128xf32>
    %69 = arith.addf %66, %68 : vector<256x128xf32>
    %70 = arith.addf %64, %69 : vector<256x128xf32>
    %cst_50 = arith.constant 0.000000e+00 : f32
    %71 = vector.broadcast %cst_50 : f32 to vector<256x128xf32>
    %72 = arith.maximumf %70, %71 : vector<256x128xf32>
    %73 = vector.shape_cast %72 : vector<256x128xf32> to vector<16x16x128xf32>
    %c0_51 = arith.constant 0 : index
    %c0_52 = arith.constant 0 : index
    %c0_53 = arith.constant 0 : index
    %c0_54 = arith.constant 0 : index
    %74 = vector.load %arg8[%c0_51, %c0_52, %c0_53, %c0_54] : memref<1x16x16x128xf32, #tpu.memory_space<vmem>>, vector<1x16x16x128xf32>
    %75 = vector.shape_cast %74 : vector<1x16x16x128xf32> to vector<16x16x128xf32>
    %76 = vector.shape_cast %73 : vector<16x16x128xf32> to vector<1x16x16x128xf32>
    tpu.vector_store %arg8[%c0_51, %c0_52, %c0_53, %c0_54], %76 {strides = array<i32>} : memref<1x16x16x128xf32, #tpu.memory_space<vmem>>, vector<1x16x16x128xf32>,
    return
  }
  func.func @transform_0(%arg0: i32) -> (i32, i32, i32, i32) {
    %c0_i32 = arith.constant 0 : i32
    %c0_i32_0 = arith.constant 0 : i32
    %c0_i32_1 = arith.constant 0 : i32
    %c0_i32_2 = arith.constant 0 : i32
    return %arg0, %c0_i32, %c0_i32_0, %c0_i32_1 : i32, i32, i32, i32
  }
  func.func @transform_1(%arg0: i32) -> (i32, i32) {
    %c0_i32 = arith.constant 0 : i32
    %c0_i32_0 = arith.constant 0 : i32
    %c0_i32_1 = arith.constant 0 : i32
    return %c0_i32, %c0_i32_0 : i32, i32
  }
  func.func @transform_2(%arg0: i32) -> (i32, i32) {
    %c0_i32 = arith.constant 0 : i32
    %c0_i32_0 = arith.constant 0 : i32
    %c0_i32_1 = arith.constant 0 : i32
    return %c0_i32, %c0_i32_0 : i32, i32
  }
  func.func @transform_3(%arg0: i32) -> (i32, i32) {
    %c0_i32 = arith.constant 0 : i32
    %c0_i32_0 = arith.constant 0 : i32
    %c0_i32_1 = arith.constant 0 : i32
    return %c0_i32, %c0_i32_0 : i32, i32
  }
  func.func @transform_4(%arg0: i32) -> (i32, i32) {
    %c0_i32 = arith.constant 0 : i32
    %c0_i32_0 = arith.constant 0 : i32
    %c0_i32_1 = arith.constant 0 : i32
    return %c0_i32, %c0_i32_0 : i32, i32
  }
  func.func @transform_5(%arg0: i32) -> (i32, i32) {
    %c0_i32 = arith.constant 0 : i32
    %c0_i32_0 = arith.constant 0 : i32
    %c0_i32_1 = arith.constant 0 : i32
    return %c0_i32, %c0_i32_0 : i32, i32
  }
  func.func @transform_6(%arg0: i32) -> (i32, i32) {
    %c0_i32 = arith.constant 0 : i32
    %c0_i32_0 = arith.constant 0 : i32
    %c0_i32_1 = arith.constant 0 : i32
    return %c0_i32, %c0_i32_0 : i32, i32
  }
  func.func @transform_7(%arg0: i32) -> (i32, i32, i32, i32) {
    %c0_i32 = arith.constant 0 : i32
    %c0_i32_0 = arith.constant 0 : i32
    %c0_i32_1 = arith.constant 0 : i32
    %c0_i32_2 = arith.constant 0 : i32
    return %arg0, %c0_i32, %c0_i32_0, %c0_i32_1 : i32, i32, i32, i32
  }
}

</mosaic_0001>

<bundles_post_ra>
// kernel: tpu_custom_call.1
= control target key start
LH: loop header
LB: loop body
LE: loop exit
PB: predicated region body
PF: predicated region fallthrough
CT: control target
= control target key end

     0   :  { %12 = vsyncpa [#allocation3], 0  ;;  %s12165_s0 = inlined_call_operand.vmem [shape: bf16[2,18,18,128], index: 0, kind: input, shape index: {}]   ;;  %s12166_s1 = inlined_call_operand.vmem [shape: bf16[1152,128], index: 1, kind: input, shape index: {}]   ;;  %s12167_s2 = inlined_call_operand.vmem [shape: f32[1,128], index: 2, kind: input, shape index: {}]   ;;  %s12168_s3 = inlined_call_operand.hbm [shape: bf16[1152,128], index: 3, kind: input, shape index: {}]   ;;  %s12169_s4 = inlined_call_operand.vmem [shape: f32[1,128], index: 4, kind: input, shape index: {}]   ;;  %s12170_s5 = inlined_call_operand.vmem [shape: bf16[128,128], index: 5, kind: input, shape index: {}]   ;;  %s12171_s6 = inlined_call_operand.vmem [shape: f32[1,128], index: 6, kind: input, shape index: {}]   ;;  %s12172_s7 = inlined_call_operand.hbm [shape: f32[2,16,16,128], index: 7, kind: output, shape index: {}]  }
   0x1   :  { %13 = vsyncpa [#allocation4], 0 }
   0x2   :  { %15 = vsyncpa [#allocation4 + $0x1], 0  ;;  %s8657_s24 = smov 0   ;;  %s8659_s25 = smov 0  }
   0x3   :  { %s8661_s26 = smov 0   ;;  %s8663_s27 = smov 0  }
   0x4 LB: > { %s8678_s28 = sadd.s32 4294967295, %s8608_s27   ;;  %s6504_s29 = sadd.s32 4294967294, %s8608_s27   ;;  %s8608_s27 = sphi %s8663_s27, %s12360_s27   ;;  %s8604_s26 = sphi %s8661_s26, %s12359_s26   ;;  %s8600_s25 = sphi %s8659_s25, %s12358_s25   ;;  %s8596_s24 = sphi %s8657_s24, %s12357_s24  }
   0x5   : > { %s8682_s30 = sadd.s32 1, %s8608_s27   ;;  %s180_s8 = sadd.s32 1, %s8604_s26 }
   0x6   : > { %s177_s9 = ssub.s32 %s8608_s27, %s8682_s30  ;;  %p190_p0 = scmp.ne.s32.totalorder %s8604_s26, %s8600_s25 }
   0x7   : > { %p178_p1 = scmp.eq.s32.totalorder %s177_s9, 0  ;;  %p191_p2 = scmp.eq.s32.totalorder %s8678_s28, 1 }
   0x8   : > { %p196_p3 = scmp.ne.s32.totalorder %s8600_s25, %s8596_s24  ;;  %p197_p4 = scmp.eq.s32.totalorder %s6504_s29, 1 }
   0x9   : > { %s8693_s10 = scalar_select %p178_p1, %s8604_s26, %s180_s8  }
   0xa   : > { %p8695_p5 = por %p191_p2, %p190_p0  ;;  %p8699_p6 = por %p197_p4, %p196_p3 }
   0xb   : > { %p6505_p7 = scmp.ge.s32.totalorder %s8608_s27, 1  ;;  %p204_p8 = scmp.lt.s32.totalorder %s8608_s27, 3 }
   0xc   : > { %s12202_s11 = scalar_select %p8695_p5, 1, 0 }
   0xd   : > { %s12203_s12 = scalar_select %p8699_p6, 1, 0 }
   0xe   : > { %p12173_p9 = scmp.eq.s32.totalorder %s8678_s28, 0  ;;  %p8706_p10 = pnand %p6505_p7, %p204_p8 }
   0xf   : > { %s8610_s14 = smov [#allocation2]   ;;  %s8514_s19 = scalar_lea.hbm %s12168_s3, 9216 }
  0x10   : > { %s12204_s13 = scalar_select %p8706_p10, 1, 0 }
  0x11   : > { %s222_s15 = sshll.u32 %s8610_s14, 4  ;;  %p8224_p11 = pneg %p8706_p10  ;;  %s223_s15 = int_to_ptr.vmem [resolvable:$true] %s222_s15 }
  0x12   : > { %p8515_p13 = scmp.ne.s32.totalorder %s12168_s3, %s8514_s19  ;;  %p8521_p3 = scmp.lt.u32.totalorder %s8514_s19, %s12168_s3 }
  0x13   : > { %p8714_p12 = pnand %p12173_p9, %p8224_p11 }
  0x15   : > { %p8516_p0 = pneg %p8714_p12 }
  0x17   : > { %p8517_p1 = pnand %p8516_p0, %p8515_p13 }
  0x19   : > { %p8518_p2 = pneg %p8517_p1 }
  0x1b   : > { %p8523_p4 = pnand %p8521_p3, %p8518_p2 }
  0x1d   : > { %8526 = shalt.err (!%p8523_p4)
}
  0x1e   : > { %s8527_s29 = scalar_lea.vmem %s223_s15, 9216  ;;  %p8535_p9 = scmp.lt.s32.totalorder %s223_s15, %s223_s15 }
  0x1f   : > { %p8528_p7 = scmp.ne.s32.totalorder %s223_s15, %s8527_s29  ;;  %p8536_p6 = scmp.lt.s32.totalorder %s8527_s29, %s8527_s29 }
  0x21   : > { %p8530_p8 = pnand %p8528_p7, %p8516_p0  ;;  %p8537_p5 = por %p8536_p6, %p8535_p9 }
  0x23   : > { %p8531_p11 = pneg %p8530_p8 }
  0x25   : > { %p8538_p10 = pnand %p8537_p5, %p8531_p11 }
  0x27   : > { %8541 = shalt.err (!%p8538_p10)
}
  0x28   : > { %s8611_s8 = smov 64   ;;  %s8612_s9 = smov 4  }
  0x29   : > { %8227 = dma.hbm_to_vmem [thread:$0]  (!%p8714_p12), %s12168_s3, 9216, %s223_s15, [#allocation3], %s8611_s8, %s8611_s8, %s8612_s9  }
  0x2a   : > { %p12206_p13 = scmp.ne.s32.totalorder %s12204_s13, 0 }
  0x2c   : > { %255 = sbr.rel (%p12206_p13) target bundleno = 1213 (0x4bd), region = 48 }
  0x33   : > { %p12207_p1 = scmp.eq.s32.totalorder %s8678_s28, 0 }
  0x35   : > { %8587 = dma.done.wait (%p12207_p1), [#allocation3], 9216   ;;  %p12208_p0 = pmov %p12207_p1 }
  0x36   : > { %v8273_v0 = vld [vmem:[%s12166_s1 + $0x40] sm:$0xff]   ;;  %p287_p5 = scmp.lt.s32.totalorder %s8678_s28, 1  ;;  %v8275_v2 = vld [vmem:[%s12166_s1 + $0x48] sm:$0xff]   ;;  %v8277_v4 = vld [vmem:[%s12166_s1 + $0x50] sm:$0xff]   ;;  %vm341_vm0 = vsmask.f32 3328 }
  0x37   : > { %8589 = vsyncadd (%p12208_p0), [#allocation3], 4294958080  ;;  %v8274_v1 = vld [vmem:[%s12166_s1] sm:$0xff]   ;;  %6993 = vmatprep.subr.bf16.mxu0 %v8273_v0  ;;  %v8276_v3 = vld [vmem:[%s12166_s1 + $0x8] sm:$0xff]   ;;  %vm342_vm1 = vsmask.f32 7440 }
  0x38   : > { %6994 = vmatpush3.bf16.msra.mxu0 %v8274_v1  ;;  %s288_s8 = scalar_select %p287_p5, %s8678_s28, 1  ;;  %v8278_v5 = vld [vmem:[%s12166_s1 + $0x10] sm:$0xff]   ;;  %v8279_v6 = vld [vmem:[%s12166_s1 + $0x58] sm:$0xff]   ;;  %v8281_v8 = vld [vmem:[%s12166_s1 + $0x60] sm:$0xff]   ;;  %vm792_vm2 = vcmask 1042432   ;;  %vm793_vm3 = vcmask 1046532  }
  0x39   : > { %6995 = vmatprep.subr.bf16.mxu0 %v8275_v2  ;;  %v8280_v7 = vld [vmem:[%s12166_s1 + $0x18] sm:$0xff]   ;;  %v8282_v9 = vld [vmem:[%s12166_s1 + $0x20] sm:$0xff]   ;;  %v8283_v10 = vld [vmem:[%s12166_s1 + $0x68] sm:$0xff]   ;;  %vm4338_vm6 = vcmask 1040384   ;;  %vm4339_vm7 = vsmask.f32 256 }
  0x3a   : > { %s8217_s19 = smul.u32 216, %s288_s8  ;;  %v8284_v14 = vld [vmem:[%s12166_s1 + $0x28] sm:$0xff]   ;;  %v8285_v19 = vld [vmem:[%s12166_s1 + $0x70] sm:$0xff]   ;;  %v8801_v23 = vld [vmem:[%s12166_s1 + $0xc0] sm:$0xff]   ;;  %vm4375_vm9 = vsmask.f32 7424 }
  0x3b   : > { %vm8805_vm4 = vmor %vm792_vm2, %vm793_vm3  ;;  %v8814_v31 = vld [vmem:[%s12166_s1 + $0x80] sm:$0xff]   ;;  %8105 = vmatprep.subr.bf16.mxu1 %v8801_v23  ;;  %v8820_v32 = vld [vmem:[%s12166_s1 + $0xc8] sm:$0xff]   ;;  %vm4616_vm10 = vcmask 1046528   ;;  %s284_s8 = sand.u32 1, %s8600_s25   ;;  %p12355_p9 = scmp.ne.s32.totalorder %s12202_s11, 0 }
  0x3c   : > { %6996 = vmatpush3.bf16.msra.mxu0 %v8276_v3  ;;  %s8772_s23 = scalar_lea.vmem %s12165_s0, %s8217_s19  ;;  %v8286_v33 = vld [vmem:[%s12166_s1 + $0x30] sm:$0xff]   ;;  %v8287_v37 = vld [vmem:[%s12166_s1 + $0x78] sm:$0xff]   ;;  %vm8833_vm5 = vmor %vm341_vm0, %vm342_vm1  ;;  %8113 = vmatpush3.bf16.msra.mxu1 %v8814_v31  ;;  %s6510_s17 = sshll.u32 %s284_s8, 8 }
  0x3d   : > { %6997 = vmatprep.subr.bf16.mxu0 %v8277_v4  ;;  %v8781_v11 = vld [vmem:[%s8772_s23] sm:$0xf]  ;;  %v8784_v12 = vld [vmem:[%s8772_s23 + $0x4] sm:$0xf]  ;;  %v325_v13 = vld [vmem:[%s8772_s23 + $0x8] sm:$0x1]  ;;  %8106 = vmatprep.subr.bf16.mxu1 %v8820_v32 }
  0x3e   : > { %v345_v15 = vshrl.u32 %v8781_v11, 16  ;;  %v348_v16 = vshll.u32 %v8781_v11, 16  ;;  %v354_v17 = vshll.u32 %v8784_v12, 16  ;;  %v358_v18 = vshrl.u32 %v8784_v12, 16  ;;  %v8826_v36 = vld [vmem:[%s8772_s23 + $0xc] sm:$0xf]  ;;  %vm11155_vm8 = vmand %vm4338_vm6, %vm4339_vm7 }
  0x3f   : > { %v364_v20 = vshll.u32 %v325_v13, 16  ;;  %v12176_v21 = vrot.slane %v8784_v12, 5  ;;  %v800_v22 = vrot.slane %v325_v13, 5  ;;  %v8843_v40 = vld [vmem:[%s8772_s23 + $0x10] sm:$0xf]  ;;  %v369_v42 = vshrl.u32 %v8826_v36, 16 }
  0x40   : > { %6998 = vmatpush3.bf16.msra.mxu0 %v8278_v5  ;;  %v347_v24 = vrot.slane %v345_v15, 4  ;;  %v350_v25 = vrot.slane %v348_v16, 5  ;;  %v356_v26 = vrot.slane %v354_v17, 5  ;;  %v360_v27 = vrot.slane %v358_v18, 4  ;;  %v326_v41 = vld [vmem:[%s8772_s23 + $0x14] sm:$0x1] }
  0x41   : > { %6999 = vmatprep.subr.bf16.mxu0 %v8279_v6  ;;  %v366_v29 = vrot.slane %v364_v20, 5  ;;  %v799_v30 = vrot.slane %v12176_v21, 4  ;;  %v372_v43 = vshll.u32 %v8826_v36, 16  ;;  %v378_v46 = vshll.u32 %v8843_v40, 16  ;;  %v8854_v51 = vld [vmem:[%s12166_s1 + $0x88] sm:$0xff]   ;;  %v8288_v52 = vld [vmem:[%s12166_s1 + $0x38] sm:$0xff]  }
  0x42   : > { %v351_v34 = vor.u32 %v350_v25, %v347_v24  ;;  %v361_v35 = vor.u32 %v360_v27, %v356_v26  ;;  %v382_v47 = vshrl.u32 %v8843_v40, 16  ;;  %v371_v48 = vrot.slane %v369_v42, 4  ;;  %8114 = vmatpush3.bf16.msra.mxu1 %v8854_v51  ;;  %v8867_v59 = vld [vmem:[%s12166_s1 + $0xd0] sm:$0xff]   ;;  %v8877_v0 = vld [vmem:[%s12166_s1 + $0xd8] sm:$0xff]   ;;  %v327_v4 = vld [vmem:[%s8772_s23 + $0x20] sm:$0x1] }
  0x43   : > { %v8839_v39 = vsel %vm8805_vm4, %v799_v30, %v800_v22  ;;  %v374_v49 = vrot.slane %v372_v43, 5  ;;  %v388_v50 = vshll.u32 %v326_v41, 16  ;;  %v380_v55 = vrot.slane %v378_v46, 5  ;;  %v8872_v62 = vld [vmem:[%s12166_s1 + $0x90] sm:$0xff]   ;;  %v8880_v1 = vld [vmem:[%s8772_s23 + $0x18] sm:$0xf]  ;;  %8107 = vmatprep.subr.bf16.mxu1 %v8867_v59 }
  0x44   : > { %7000 = vmatpush3.bf16.msra.mxu0 %v8280_v7  ;;  %v352_v44 = vrot.slane %v351_v34, 4  ;;  %v362_v45 = vrot.slane %v361_v35, 4  ;;  %v384_v56 = vrot.slane %v382_v47, 4  ;;  %v8883_v2 = vld [vmem:[%s8772_s23 + $0x1c] sm:$0xf]  ;;  %v393_v5 = vshrl.u32 %v8880_v1, 16 }
  0x45   : > { %7001 = vmatprep.subr.bf16.mxu0 %v8281_v8  ;;  %v375_v58 = vor.u32 %v374_v49, %v371_v48  ;;  %v390_v61 = vrot.slane %v388_v50, 5  ;;  %v396_v6 = vshll.u32 %v8880_v1, 16  ;;  %v402_v7 = vshll.u32 %v8883_v2, 16  ;;  %v8908_v20 = vld [vmem:[%s12166_s1 + $0xe0] sm:$0xff]   ;;  %v8926_v30 = vld [vmem:[%s8772_s23 + $0x28] sm:$0xf] }
  0x46   : > { %v357_v53 = vsel %vm8833_vm5, %v352_v44, %v356_v26  ;;  %v367_v54 = vsel %vm8833_vm5, %v362_v45, %v366_v29  ;;  %v385_v60 = vor.u32 %v384_v56, %v380_v55  ;;  %v6688_v8 = vcombine.low %v8781_v11, %v8784_v12  ;;  %8115 = vmatpush3.bf16.msra.mxu1 %v8872_v62  ;;  %v8902_v11 = vld [vmem:[%s12166_s1 + $0x98] sm:$0xff]   ;;  %v8913_v22 = vld [vmem:[%s12166_s1 + $0xa0] sm:$0xff]   ;;  %v8952_v50 = vld [vmem:[%s12166_s1 + $0xf0] sm:$0xff]   ;;  %s12023_s18 = scalar_lea.vmem [#allocation5], %s6510_s17  ;;  %s6992_s19 = sshll.u32 %s8678_s28, 12 }
  0x47   : > { %v6704_v57 = vcombine.low %v357_v53, %v367_v54  ;;  %v376_v63 = vrot.slane %v375_v58, 4  ;;  %v412_v13 = vshll.u32 %v327_v4, 16  ;;  %8108 = vmatprep.subr.bf16.mxu1 %v8877_v0  ;;  %v395_v15 = vrot.slane %v393_v5, 4  ;;  %v8922_v27 = vld [vmem:[%s8772_s23 + $0x24] sm:$0xf]  ;;  %v8957_v54 = vld [vmem:[%s12166_s1 + $0xb0] sm:$0xff]   ;;  %s12115_s15 = scalar_lea.hbm %s12172_s7, %s6992_s19 }
  0x48   : > { %7002 = vmatpush3.bf16.msra.mxu0 %v8282_v9  ;;  %v386_v3 = vrot.slane %v385_v60, 4  ;;  %v398_v16 = vrot.slane %v396_v6, 5  ;;  %v404_v17 = vrot.slane %v402_v7, 5  ;;  %v417_v34 = vshrl.u32 %v8922_v27, 16  ;;  %v8967_v56 = vld [vmem:[%s8772_s23 + $0x38] sm:$0x1] }
  0x49   : > { %7003 = vmatprep.subr.bf16.mxu0 %v8283_v10  ;;  %3364 = vmatprep.mubr.bf16.mxu0 %v6704_v57  ;;  %v381_v9 = vsel %vm8833_vm5, %v376_v63, %v380_v55  ;;  %v406_v10 = vshrl.u32 %v8883_v2, 16  ;;  %v414_v26 = vrot.slane %v412_v13, 5  ;;  %v426_v41 = vshll.u32 %v8926_v30, 16  ;;  %v8961_v55 = vld [vmem:[%s8772_s23 + $0x30] sm:$0xf]  ;;  %v8402_v28 = vld [vmem:[#allocation2 + $0x20] sm:$0xff]  }
  0x4a   : > { %v399_v24 = vor.u32 %v398_v16, %v395_v15  ;;  %8116 = vmatpush3.bf16.msra.mxu1 %v8902_v11  ;;  %v430_v42 = vshrl.u32 %v8926_v30, 16  ;;  %v419_v44 = vrot.slane %v417_v34, 4  ;;  %v441_v60 = vshrl.u32 %v8961_v55, 16  ;;  %s6430_s16 = sshll.u32 %s12023_s18, 4  ;;  %s12124_s28 = scalar_lea.sflag [#allocation4], %s284_s8  ;;  %s12117_s16 = int_to_ptr.vmem [resolvable:$true] %s6430_s16 }
  0x4b   : > { %8109 = vmatprep.subr.bf16.mxu1 %v8908_v20  ;;  %v428_v47 = vrot.slane %v426_v41, 5  ;;  %v460_v4 = vshll.u32 %v8967_v56, 16  ;;  %v6690_v15 = vcombine.low %v8880_v1, %v8883_v2  ;;  %v6691_v1 = vcombine.low %v8922_v27, %v8926_v30  ;;  %s8614_s21 = smov [#allocation5]  }
  0x4c   : > { %7004 = vmatpush3.bf16.msra.mxu0 %v8284_v14  ;;  %v391_v14 = vsel %vm8833_vm5, %v386_v3, %v390_v61  ;;  %v400_v29 = vrot.slane %v399_v24, 4  ;;  %v432_v48 = vrot.slane %v430_v42, 4  ;;  %v444_v61 = vshll.u32 %v8961_v55, 16  ;;  %v9013_v42 = vld [vmem:[%s8772_s23 + $0x40] sm:$0xf]  ;;  %s8546_s22 = sshll.u32 %s8614_s21, 4  ;;  %s8547_s22 = int_to_ptr.vmem [resolvable:$false] %s8546_s22 }
  0x4d   : > { %7005 = vmatprep.subr.bf16.mxu0 %v8285_v19  ;;  %v6705_v18 = vcombine.low %v381_v9, %v391_v14  ;;  %v408_v19 = vrot.slane %v406_v10, 4  ;;  %v443_v7 = vrot.slane %v441_v60, 4  ;;  %v6536_v9 = vld [vmem:[%s8772_s23 + $0x3c] sm:$0xf]  ;;  %v8988_v10 = vld [vmem:[%s8772_s23 + $0x40] sm:$0xf]  ;;  %p8549_p2 = scmp.lt.s32.totalorder %s12117_s16, %s8547_s22 }
  0x4e   : > { %v405_v43 = vsel %vm8833_vm5, %v400_v29, %v404_v17  ;;  %8117 = vmatpush3.bf16.msra.mxu1 %v8913_v22  ;;  %v433_v53 = vor.u32 %v432_v48, %v428_v47  ;;  %v462_v29 = vrot.slane %v460_v4, 5  ;;  %v828_v30 = vrot.slane %v8967_v56, 5  ;;  %s8548_s29 = scalar_lea.vmem %s8547_s22, 8192 }
  0x4f   : > { %v409_v25 = vor.u32 %v408_v19, %v404_v17  ;;  %v8997_v17 = vld [vmem:[%s12166_s1 + $0xb8] sm:$0xff]  }
  0x50   : > { %7006 = vmatpush3.bf16.msra.mxu0 %v8286_v33  ;;  %v328_v33 = vld [vmem:[%s8772_s23 + $0x2c] sm:$0x1]  ;;  %v434_v58 = vrot.slane %v433_v53, 4  ;;  %v8336_v53 = vld [vmem:[%s12166_s1 + $0x1c0] sm:$0xff]  }
  0x51   : > { %7007 = vmatprep.subr.bf16.mxu0 %v8287_v37  ;;  %v410_v35 = vrot.slane %v409_v25, 4  ;;  %v420_v37 = vshll.u32 %v8922_v27, 16  ;;  %v436_v45 = vshll.u32 %v328_v33, 16  ;;  %v1056_v25 = vshll.u32 %v6536_v9, 16 }
  0x53   : > { %v422_v46 = vrot.slane %v420_v37, 5  ;;  %v438_v49 = vrot.slane %v436_v45, 5 }
  0x54   : > { %7008 = vmatpush3.bf16.msra.mxu0 %v8288_v52 }
  0x55   : > { %7105 = vmatprep.subr.bf16.mxu0 %v8801_v23  ;;  %v8919_v23 = vld [vmem:[%s12166_s1 + $0xe8] sm:$0xff]   ;;  %v423_v52 = vor.u32 %v422_v46, %v419_v44  ;;  %v439_v6 = vsel %vm8833_vm5, %v434_v58, %v438_v49  ;;  %v9025_v44 = vrot.slane %v1056_v25, 5  ;;  %v474_v49 = vshll.u32 %v9013_v42, 16 }
  0x56   : > { %8110 = vmatprep.subr.bf16.mxu1 %v8919_v23  ;;  %v9031_v46 = vld [vmem:[%s8772_s23 + $0x48] sm:$0xf]  ;;  %v478_v58 = vshrl.u32 %v9013_v42, 16  ;;  %v832_v25 = vrot.slane %v9013_v42, 5 }
  0x57   : > { %3365 = vmatmul.mubr.bf16.vlgmr.msra.gmra.mrb[0].mxu0 %v6688_v8  ;;  %v424_v57 = vrot.slane %v423_v52, 4  ;;  %v446_v8 = vrot.slane %v444_v61, 5  ;;  %v9039_v52 = vld [vmem:[%s8772_s23 + $0x4c] sm:$0xf]  ;;  %v733_v61 = vld [vmem:[%s8772_s23 + $0x3c] sm:$0xe] }
  0x58   : > { %7106 = vmatpush3.bf16.msra.mxu0 %v8814_v31  ;;  %3372 = vmatprep.mubr.bf16.mxu0 %v6705_v18  ;;  %v6689_v31 = vcombine.low %v8826_v36, %v8843_v40  ;;  %v8945_v36 = vld [vmem:[%s12166_s1 + $0xa8] sm:$0xff]   ;;  %v732_v18 = vld [vmem:[%s8772_s23 + $0x30] sm:$0xe] }
  0x59   : > { %7107 = vmatprep.subr.bf16.mxu0 %v8820_v32  ;;  %v415_v32 = vsel %vm8833_vm5, %v410_v35, %v414_v26  ;;  %8118 = vmatpush3.bf16.msra.mxu1 %v8945_v36  ;;  %v429_v5 = vsel %vm8833_vm5, %v424_v57, %v428_v47  ;;  %v447_v16 = vor.u32 %v446_v8, %v443_v7  ;;  %v9003_v26 = vld [vmem:[%s8772_s23 + $0x3c] sm:$0xf]  ;;  %v1062_v35 = vshll.u32 %v8988_v10, 16 }
  0x5a   : > { %v6706_v40 = vcombine.low %v405_v43, %v415_v32  ;;  %8111 = vmatprep.subr.bf16.mxu1 %v8952_v50  ;;  %v6707_v19 = vcombine.low %v429_v5, %v439_v6  ;;  %v6516_v37 = vrot.slane %v732_v18, 9  ;;  %v465_v43 = vshrl.u32 %v9003_v26, 16 }
  0x5b   : > { %v448_v2 = vrot.slane %v447_v16, 4  ;;  %v468_v32 = vshll.u32 %v9003_v26, 16  ;;  %v476_v5 = vrot.slane %v474_v49, 5  ;;  %v6741_v16 = vcombine.low %v9031_v46, %v9039_v52 }
  0x5c   : > { %7108 = vmatpush3.bf16.msra.mxu0 %v8854_v51  ;;  %v8964_v51 = vld [vmem:[%s8772_s23 + $0x34] sm:$0xf] }
  0x5d   : > { %7109 = vmatprep.subr.bf16.mxu0 %v8867_v59  ;;  %v8976_v59 = vld [vmem:[%s12166_s1 + $0xf8] sm:$0xff]   ;;  %v450_v63 = vshll.u32 %v8964_v51, 16  ;;  %v454_v3 = vshrl.u32 %v8964_v51, 16  ;;  %8119 = vmatpush3.bf16.msra.mxu1 %v8957_v54  ;;  %v6692_v33 = vcombine.low %v8961_v55, %v8964_v51  ;;  %v825_v41 = vrot.slane %v8964_v51, 5 }
  0x5e   : > { %8112 = vmatprep.subr.bf16.mxu1 %v8976_v59  ;;  %v470_v57 = vrot.slane %v468_v32, 5 }
  0x5f   : > { %3373 = vmatmul.mubr.bf16.gmra.mrb[4].mxu0 %v6689_v31  ;;  %v452_v13 = vrot.slane %v450_v63, 5  ;;  %v456_v14 = vrot.slane %v454_v3, 4  ;;  %v9022_v31 = vld [vmem:[%s8772_s23 + $0x44] sm:$0x1]  ;;  %v827_v45 = vrot.slane %v825_v41, 4  ;;  %v9054_v63 = vrot.slane %v1062_v35, 5 }
  0x60   : > { %3380 = vmatprep.mubr.bf16.mxu0 %v6706_v40  ;;  %7110 = vmatpush3.bf16.msra.mxu0 %v8872_v62  ;;  %v1053_v62 = vshrl.u32 %v6536_v9, 16  ;;  %v467_v40 = vrot.slane %v465_v43, 4  ;;  %v484_v60 = vshll.u32 %v9022_v31, 16 }
  0x61   : > { %7111 = vmatprep.subr.bf16.mxu0 %v8877_v0  ;;  %v457_v24 = vor.u32 %v456_v14, %v452_v13  ;;  %v6740_v0 = vcombine.low %v6536_v9, %v8988_v10  ;;  %8120 = vmatpush3.bf16.msra.mxu1 %v8997_v17  ;;  %v453_v47 = vsel %vm8833_vm5, %v448_v2, %v452_v13  ;;  %v480_v9 = vrot.slane %v478_v58, 4  ;;  %v9060_v13 = vld [vmem:[%s8772_s23 + $0x48] sm:$0xf]  ;;  %v9063_v14 = vld [vmem:[%s8772_s23 + $0x4c] sm:$0xf] }
  0x62   : > { %v9017_v27 = vrot.slane %v1053_v62, 4  ;;  %v829_v56 = vsel %vm8805_vm4, %v827_v45, %v828_v30  ;;  %7329 = vmatprep.subr.bf16.mxu1 %v8336_v53  ;;  %v471_v8 = vor.u32 %v470_v57, %v467_v40  ;;  %v6517_v62 = vrot.slane %v733_v61, 9  ;;  %v8334_v40 = vld [vmem:[%s12166_s1 + $0x140] sm:$0xff]   ;;  %v9118_v61 = vld [vmem:[%s8772_s23 + $0x54] sm:$0xf] }
  0x63   : > { %v458_v34 = vrot.slane %v457_v24, 4  ;;  %3557 = vmatprep.mubr.bf16.mxu1 %v6740_v0  ;;  %v486_v24 = vrot.slane %v484_v60, 5  ;;  %v8340_v0 = vld [vmem:[%s12166_s1 + $0x1c8] sm:$0xff]   ;;  %v835_v2 = vrot.slane %v9022_v31, 5  ;;  %v498_v35 = vshll.u32 %v9063_v14, 16 }
  0x64   : > { %7112 = vmatpush3.bf16.msra.mxu0 %v8902_v11  ;;  %v1066_v11 = vshrl.u32 %v8988_v10, 16  ;;  %v472_v18 = vrot.slane %v471_v8, 4  ;;  %v502_v43 = vshrl.u32 %v9063_v14, 16  ;;  %v1080_v45 = vshll.u32 %v9031_v46, 16  ;;  %v9124_v8 = vld [vmem:[%s8772_s23 + $0x58] sm:$0xf] }
  0x65   : > { %7113 = vmatprep.subr.bf16.mxu0 %v8908_v20  ;;  %v826_v20 = vsel %vm8805_vm4, %v6516_v37, %v825_v41  ;;  %v463_v48 = vsel %vm8833_vm5, %v458_v34, %v462_v29  ;;  %v9078_v29 = vld [vmem:[%s8772_s23 + $0x50] sm:$0x1]  ;;  %v492_v34 = vshll.u32 %v9060_v13, 16  ;;  %v834_v41 = vrot.slane %v832_v25, 4 }
  0x66   : > { %v6724_v4 = vcombine.low %v826_v20, %v829_v56  ;;  %v6708_v6 = vcombine.low %v453_v47, %v463_v48  ;;  %v9057_v7 = vrot.slane %v1066_v11, 4  ;;  %v9090_v31 = vrot.slane %v498_v35, 5  ;;  %v734_v48 = vld [vmem:[%s8772_s23 + $0x48] sm:$0xe] }
  0x67   : > { %3381 = vmatmul.mubr.bf16.gmra.mrb[8].mxu0 %v6690_v15  ;;  %v1077_v15 = vshrl.u32 %v9031_v46, 16  ;;  %v494_v30 = vrot.slane %v492_v34, 5  ;;  %v836_v32 = vsel %vm8805_vm4, %v834_v41, %v835_v2  ;;  %v508_v47 = vshll.u32 %v9078_v29, 16  ;;  %v8345_v2 = vld [vmem:[%s12166_s1 + $0x1d0] sm:$0xff]  }
  0x68   : > { %3388 = vmatprep.mubr.bf16.mxu0 %v6707_v19  ;;  %7114 = vmatpush3.bf16.msra.mxu0 %v8913_v22  ;;  %v8337_v22 = vld [vmem:[%s12166_s1 + $0x180] sm:$0xff]   ;;  %v481_v19 = vor.u32 %v480_v9, %v476_v5  ;;  %v504_v56 = vrot.slane %v502_v43, 4  ;;  %v6693_v58 = vcombine.low %v9003_v26, %v9013_v42  ;;  %v9127_v9 = vrot.slane %v1080_v45, 5 }
  0x69   : > { %7115 = vmatprep.subr.bf16.mxu0 %v8919_v23  ;;  %v1059_v23 = vor.u32 %v9025_v44, %v9017_v27  ;;  %3558 = vmatmul.mubr.bf16.vlgmr.msra.gmra.mrb[0].mxu1 %v6724_v4  ;;  %v9088_v27 = vld [vmem:[%s8772_s23 + $0x54] sm:$0xf]  ;;  %v9094_v44 = vld [vmem:[%s8772_s23 + $0x58] sm:$0xf]  ;;  %v510_v60 = vrot.slane %v508_v47, 5  ;;  %v522_v55 = vshll.u32 %v9124_v8, 16  ;;  %v6694_v43 = vcombine.low %v9060_v13, %v9063_v14 }
  0x6a   : > { %7330 = vmatpush3.bf16.msra.mxu1 %v8337_v22  ;;  %3565 = vmatprep.mubr.bf16.mxu1 %v6741_v16  ;;  %v482_v37 = vrot.slane %v481_v19, 4  ;;  %v505_v4 = vor.u32 %v504_v56, %v9090_v31  ;;  %v842_v16 = vrot.slane %v9078_v29, 5  ;;  %v513_v19 = vshrl.u32 %v9118_v61, 16 }
  0x6b   : > { %7331 = vmatprep.subr.bf16.mxu1 %v8340_v0  ;;  %v9111_v49 = vrot.slane %v1059_v23, 4  ;;  %v526_v51 = vshrl.u32 %v9124_v8, 16 }
  0x6c   : > { %7116 = vmatpush3.bf16.msra.mxu0 %v8945_v36  ;;  %v489_v36 = vshrl.u32 %v9060_v13, 16  ;;  %v487_v20 = vsel %vm8833_vm5, %v482_v37, %v486_v24  ;;  %v516_v24 = vshll.u32 %v9118_v61, 16  ;;  %v8346_v37 = vld [vmem:[%s12166_s1 + $0x190] sm:$0xff]  }
  0x6d   : > { %7117 = vmatprep.subr.bf16.mxu0 %v8952_v50  ;;  %v477_v50 = vsel %vm8833_vm5, %v472_v18, %v476_v5  ;;  %v6742_v5 = vcombine.low %v9088_v27, %v9094_v44  ;;  %v506_v18 = vrot.slane %v505_v4, 4 }
  0x6e   : > { %v491_v11 = vrot.slane %v489_v36, 4  ;;  %v6709_v57 = vcombine.low %v477_v50, %v487_v20  ;;  %v515_v36 = vrot.slane %v513_v19, 4  ;;  %v518_v34 = vrot.slane %v516_v24, 5  ;;  %v9157_v50 = vld [vmem:[%s8772_s23 + $0x64] sm:$0xf] }
  0x6f   : > { %3389 = vmatmul.mubr.bf16.gmra.mrb[12].mxu0 %v6691_v1  ;;  %v833_v1 = vsel %vm8805_vm4, %v6517_v62, %v832_v25  ;;  %v9133_v62 = vld [vmem:[%s8772_s23 + $0x5c] sm:$0x1]  ;;  %v511_v29 = vsel %vm8833_vm5, %v506_v18, %v510_v60  ;;  %v1104_v20 = vshll.u32 %v9088_v27, 16  ;;  %v846_v60 = vrot.slane %v9124_v8, 5 }
  0x70   : > { %3396 = vmatprep.mubr.bf16.mxu0 %v6708_v6  ;;  %7118 = vmatpush3.bf16.msra.mxu0 %v8957_v54  ;;  %v8342_v54 = vld [vmem:[%s12166_s1 + $0x188] sm:$0xff]   ;;  %v6725_v46 = vcombine.low %v833_v1, %v836_v32  ;;  %v495_v53 = vor.u32 %v494_v30, %v491_v11  ;;  %v6518_v6 = vrot.slane %v734_v48, 9  ;;  %v532_v35 = vshll.u32 %v9133_v62, 16 }
  0x71   : > { %7119 = vmatprep.subr.bf16.mxu0 %v8976_v59  ;;  %v9115_v59 = vrot.slane %v1077_v15, 4  ;;  %7332 = vmatpush3.bf16.msra.mxu1 %v8342_v54  ;;  %v839_v15 = vrot.slane %v9063_v14, 5  ;;  %v1101_v1 = vshrl.u32 %v9088_v27, 16  ;;  %v524_v11 = vrot.slane %v522_v55, 5  ;;  %v9177_v27 = vld [vmem:[%s8772_s23 + $0x64] sm:$0xf] }
  0x72   : > { %3566 = vmatmul.mubr.bf16.gmra.mrb[4].mxu1 %v6725_v46  ;;  %v496_v22 = vrot.slane %v495_v53, 4  ;;  %v528_v30 = vrot.slane %v526_v51, 4  ;;  %7333 = vmatprep.subr.bf16.mxu1 %v8345_v2  ;;  %v519_v32 = vor.u32 %v518_v34, %v515_v36  ;;  %v534_v54 = vrot.slane %v532_v35, 5  ;;  %v9171_v46 = vld [vmem:[%s8772_s23 + $0x60] sm:$0xf] }
  0x73   : > { %3573 = vmatprep.mubr.bf16.mxu1 %v6742_v5  ;;  %v840_v25 = vsel %vm8805_vm4, %v6518_v6, %v839_v15  ;;  %v841_v0 = vrot.slane %v839_v15, 4  ;;  %v9182_v4 = vrot.slane %v1101_v1, 4  ;;  %v849_v15 = vrot.slane %v9133_v62, 5  ;;  %v9213_v36 = vld [vmem:[%s8772_s23 + $0x70] sm:$0xf] }
  0x74   : > { %7120 = vmatpush3.bf16.msra.mxu0 %v8997_v17  ;;  %v501_v17 = vsel %vm8833_vm5, %v496_v22, %v9090_v31  ;;  %v735_v31 = vld [vmem:[%s8772_s23 + $0x54] sm:$0xe]  ;;  %v520_v53 = vrot.slane %v519_v32, 4  ;;  %v8349_v22 = vld [vmem:[%s12166_s1 + $0x1d8] sm:$0xff]   ;;  %v848_v19 = vrot.slane %v846_v60, 4  ;;  %v537_v24 = vshrl.u32 %v9171_v46, 16 }
  0x75   : > { %7217 = vmatprep.subr.bf16.mxu0 %v8334_v40  ;;  %v843_v41 = vsel %vm8805_vm4, %v841_v0, %v842_v16  ;;  %7334 = vmatpush3.bf16.msra.mxu1 %v8346_v37  ;;  %v6710_v47 = vcombine.low %v501_v17, %v511_v29  ;;  %v529_v40 = vor.u32 %v528_v30, %v524_v11  ;;  %v9187_v16 = vld [vmem:[%s8772_s23 + $0x68] sm:$0x1]  ;;  %v546_v26 = vshll.u32 %v9177_v27, 16  ;;  %v8351_v0 = vld [vmem:[%s12166_s1 + $0x198] sm:$0xff]  }
  0x76   : > { %v6726_v45 = vcombine.low %v840_v25, %v843_v41  ;;  %v525_v17 = vsel %vm8833_vm5, %v520_v53, %v524_v11  ;;  %v540_v25 = vshll.u32 %v9171_v46, 16  ;;  %v550_v42 = vshrl.u32 %v9177_v27, 16  ;;  %7335 = vmatprep.subr.bf16.mxu1 %v8349_v22  ;;  %12213 = vst [vmem:[#allocation8_spill] sm:$0xff] %v9213_v36  ;;  %v736_v41 = vld [vmem:[%s8772_s23 + $0x60] sm:$0xe] }
  0x77   : > { %3397 = vmatmul.mubr.bf16.gmra.mrb[16].mxu0 %v6692_v33  ;;  %v9148_v33 = vld [vmem:[%s8772_s23 + $0x60] sm:$0xf]  ;;  %v530_v5 = vrot.slane %v529_v40, 4  ;;  %v850_v51 = vsel %vm8805_vm4, %v848_v19, %v849_v15  ;;  %v539_v2 = vrot.slane %v537_v24, 4  ;;  %v556_v29 = vshll.u32 %v9187_v16, 16 }
  0x78   : > { %3404 = vmatprep.mubr.bf16.mxu0 %v6709_v57  ;;  %v6743_v56 = vcombine.low %v9148_v33, %v9157_v50  ;;  %v6519_v57 = vrot.slane %v735_v31, 9  ;;  %v1125_v6 = vshrl.u32 %v9148_v33, 16  ;;  %v1128_v55 = vshll.u32 %v9148_v33, 16  ;;  %v9227_v53 = vld [vmem:[%s8772_s23 + $0x70] sm:$0xf] }
  0x79   : > { %v535_v62 = vsel %vm8833_vm5, %v530_v5, %v534_v54  ;;  %v542_v35 = vrot.slane %v540_v25, 5  ;;  %v548_v37 = vrot.slane %v546_v26, 5  ;;  %v552_v1 = vrot.slane %v550_v42, 4  ;;  %7336 = vmatpush3.bf16.msra.mxu1 %v8351_v0  ;;  %v334_v24 = vld [vmem:[%s8772_s23 + $0x74] sm:$0x1] }
  0x7a   : > { %3574 = vmatmul.mubr.bf16.gmra.mrb[8].mxu1 %v6726_v45  ;;  %v847_v18 = vsel %vm8805_vm4, %v6519_v57, %v846_v60  ;;  %v9216_v11 = vrot.slane %v1104_v20, 5  ;;  %v6711_v30 = vcombine.low %v525_v17, %v535_v62  ;;  %v6695_v33 = vcombine.low %v9118_v61, %v9124_v8  ;;  %v9222_v45 = vld [vmem:[%s8772_s23 + $0x6c] sm:$0xf]  ;;  %v8354_v20 = vld [vmem:[%s12166_s1 + $0x1e0] sm:$0xff]   ;;  %v9256_v42 = vld [vmem:[%s8772_s23 + $0x78] sm:$0xf] }
  0x7b   : > { %3581 = vmatprep.mubr.bf16.mxu1 %v6743_v56  ;;  %v6727_v34 = vcombine.low %v847_v18, %v850_v51  ;;  %v543_v32 = vor.u32 %v542_v35, %v539_v2  ;;  %v558_v40 = vrot.slane %v556_v29, 5  ;;  %v9232_v56 = vrot.slane %v1125_v6, 4  ;;  %7337 = vmatprep.subr.bf16.mxu1 %v8354_v20  ;;  %v9259_v0 = vld [vmem:[%s8772_s23 + $0x7c] sm:$0xf]  ;;  %v9409_v31 = vld [vmem:[%s8772_s23 + $0xa0] sm:$0xf] }
  0x7c   : > { %v9234_v57 = vrot.slane %v1128_v55, 5  ;;  %v6520_v60 = vrot.slane %v736_v41, 9  ;;  %v853_v22 = vrot.slane %v9177_v27, 5  ;;  %v856_v17 = vrot.slane %v9187_v16, 5  ;;  %v8355_v16 = vld [vmem:[%s12166_s1 + $0x1a0] sm:$0xff]   ;;  %12214 = vst [vmem:[#allocation9_spill] sm:$0xff] %v9259_v0 }
  0x7d   : > { %v544_v5 = vrot.slane %v543_v32, 4  ;;  %v561_v18 = vshrl.u32 %v9222_v45, 16  ;;  %v564_v62 = vshll.u32 %v9222_v45, 16  ;;  %v570_v25 = vshll.u32 %v9227_v53, 16  ;;  %7338 = vmatpush3.bf16.msra.mxu1 %v8355_v16 }
  0x7e   : > { %v854_v6 = vsel %vm8805_vm4, %v6520_v60, %v853_v22  ;;  %v855_v19 = vrot.slane %v853_v22, 4  ;;  %v6696_v35 = vcombine.low %v9171_v46, %v9177_v27  ;;  %v580_v41 = vshll.u32 %v334_v24, 16 }
  0x7f   : > { %3405 = vmatmul.mubr.bf16.gmra.mrb[20].mxu0 %v6693_v58  ;;  %v9203_v58 = vld [vmem:[%s8772_s23 + $0x6c] sm:$0xf]  ;;  %v549_v26 = vsel %vm8833_vm5, %v544_v5, %v548_v37  ;;  %v563_v14 = vrot.slane %v561_v18, 4  ;;  %v566_v2 = vrot.slane %v564_v62, 5  ;;  %v572_v29 = vrot.slane %v570_v25, 5 }
  0x80   : > { %3412 = vmatprep.mubr.bf16.mxu0 %v6710_v47  ;;  %v553_v47 = vor.u32 %v552_v1, %v548_v37  ;;  %v6744_v54 = vcombine.low %v9203_v58, %v9213_v36  ;;  %v1149_v55 = vshrl.u32 %v9203_v58, 16  ;;  %v857_v51 = vsel %vm8805_vm4, %v855_v19, %v856_v17  ;;  %v9282_v25 = vld [vmem:[%s8772_s23 + $0x80] sm:$0x1] }
  0x81   : > { %v6728_v37 = vcombine.low %v854_v6, %v857_v51  ;;  %v1152_v32 = vshll.u32 %v9203_v58, 16  ;;  %v582_v60 = vrot.slane %v580_v41, 5  ;;  %v6745_v22 = vcombine.low %v9256_v42, %v9259_v0  ;;  %v9298_v51 = vld [vmem:[%s8772_s23 + $0x88] sm:$0xf] }
  0x82   : > { %3582 = vmatmul.mubr.bf16.gmra.mrb[12].mxu1 %v6727_v34  ;;  %v554_v15 = vrot.slane %v553_v47, 4  ;;  %v737_v34 = vld [vmem:[%s8772_s23 + $0x6c] sm:$0xe]  ;;  %v9277_v17 = vrot.slane %v1149_v55, 4  ;;  %v1173_v18 = vshrl.u32 %v9256_v42, 16  ;;  %v860_v6 = vrot.slane %v9227_v53, 5 }
  0x83   : > { %3589 = vmatprep.mubr.bf16.mxu1 %v6744_v54  ;;  %v9270_v54 = vld [vmem:[%s8772_s23 + $0x78] sm:$0xf]  ;;  %v6521_v5 = vrot.slane %v737_v34, 9  ;;  %v863_v62 = vrot.slane %v334_v24, 5  ;;  %v9295_v55 = vld [vmem:[%s8772_s23 + $0x84] sm:$0xf] }
  0x84   : > { %v559_v13 = vsel %vm8833_vm5, %v554_v15, %v558_v40  ;;  %v567_v40 = vor.u32 %v566_v2, %v563_v14  ;;  %v9275_v15 = vld [vmem:[%s8772_s23 + $0x7c] sm:$0xf]  ;;  %12215 = vst [vmem:[#allocation10_spill] sm:$0xff] %v9277_v17  ;;  %v585_v16 = vshrl.u32 %v9270_v54, 16  ;;  %12216 = vst [vmem:[#allocation11_spill] sm:$0xff] %v9298_v51  ;;  %v1176_v34 = vshll.u32 %v9256_v42, 16 }
  0x85   : > { %v861_v14 = vsel %vm8805_vm4, %v6521_v5, %v860_v6  ;;  %v594_v24 = vshll.u32 %v9275_v15, 16  ;;  %v598_v2 = vshrl.u32 %v9275_v15, 16  ;;  %v604_v41 = vshll.u32 %v9282_v25, 16  ;;  %v9314_v5 = vld [vmem:[%s8772_s23 + $0x88] sm:$0xf] }
  0x86   : > { %v568_v58 = vrot.slane %v567_v40, 4  ;;  %v587_v8 = vrot.slane %v585_v16, 4  ;;  %v9309_v40 = vld [vmem:[%s8772_s23 + $0x84] sm:$0xf]  ;;  %v9323_v16 = vld [vmem:[%s8772_s23 + $0x8c] sm:$0x1] }
  0x87   : > { %3413 = vmatmul.mubr.bf16.gmra.mrb[24].mxu0 %v6694_v43  ;;  %v574_v43 = vshrl.u32 %v9227_v53, 16 }
  0x88   : > { %3420 = vmatprep.mubr.bf16.mxu0 %v6711_v30  ;;  %v6712_v30 = vcombine.low %v549_v26, %v559_v13  ;;  %v588_v26 = vshll.u32 %v9270_v54, 16  ;;  %v573_v13 = vsel %vm8833_vm5, %v568_v58, %v572_v29  ;;  %v8358_v58 = vld [vmem:[%s12166_s1 + $0x1e8] sm:$0xff]  }
  0x89   : > { %v576_v1 = vrot.slane %v574_v43, 4  ;;  %v862_v43 = vrot.slane %v860_v6, 4  ;;  %v9319_v6 = vrot.slane %v1173_v18, 4  ;;  %7339 = vmatprep.subr.bf16.mxu1 %v8358_v58  ;;  %v1197_v18 = vshrl.u32 %v9295_v55, 16 }
  0x8a   : > { %3590 = vmatmul.mubr.bf16.gmra.mrb[16].mxu1 %v6728_v37  ;;  %v628_v58 = vshll.u32 %v9323_v16, 16 }
  0x8b   : > { %v577_v20 = vor.u32 %v576_v1, %v572_v29  ;;  %3597 = vmatprep.mubr.bf16.mxu1 %v6745_v22  ;;  %v738_v29 = vld [vmem:[%s8772_s23 + $0x78] sm:$0xe]  ;;  %v864_v37 = vsel %vm8805_vm4, %v862_v43, %v863_v62  ;;  %v596_v1 = vrot.slane %v594_v24, 5  ;;  %v600_v22 = vrot.slane %v598_v2, 4  ;;  %12218 = vst [vmem:[#allocation13_spill] sm:$0xff] %v9319_v6 }
  0x8c   : > { %v606_v62 = vrot.slane %v604_v41, 5  ;;  %v6522_v43 = vrot.slane %v738_v29, 9  ;;  %v9327_v24 = vrot.slane %v1176_v34, 5  ;;  %v609_v2 = vshrl.u32 %v9309_v40, 16  ;;  %v8360_v34 = vld [vmem:[%s12166_s1 + $0x1a8] sm:$0xff]  }
  0x8d   : > { %v578_v19 = vrot.slane %v577_v20, 4  ;;  %v6729_v20 = vcombine.low %v861_v14, %v864_v37  ;;  %v6746_v14 = vcombine.low %v9295_v55, %v9298_v51  ;;  %v612_v29 = vshll.u32 %v9309_v40, 16  ;;  %7340 = vmatpush3.bf16.msra.mxu1 %v8360_v34  ;;  %v9681_v51 = vld [vmem:[%s8772_s23 + $0x1c] sm:$0xf] }
  0x8e   : > { %12219 = vst [vmem:[#allocation14_spill] sm:$0xff] %v9327_v24  ;;  %v622_v41 = vshrl.u32 %v9314_v5, 16  ;;  %v611_v27 = vrot.slane %v609_v2, 4  ;;  %v8363_v2 = vld [vmem:[%s12166_s1 + $0x1f0] sm:$0xff]   ;;  %v1575_v0 = vshll.u32 %v9681_v51, 16 }
  0x8f   : > { %3421 = vmatmul.mubr.bf16.gmra.mrb[28].mxu0 %v6695_v33  ;;  %v583_v61 = vsel %vm8833_vm5, %v578_v19, %v582_v60  ;;  %v590_v33 = vrot.slane %v588_v26, 5  ;;  %7341 = vmatprep.subr.bf16.mxu1 %v8363_v2 }
  0x90   : > { %3428 = vmatprep.mubr.bf16.mxu0 %v6712_v30  ;;  %v9311_v30 = vrot.slane %v1152_v32, 5  ;;  %v6713_v42 = vcombine.low %v573_v13, %v583_v61  ;;  %v601_v32 = vor.u32 %v600_v22, %v596_v1  ;;  %v867_v13 = vrot.slane %v9275_v15, 5  ;;  %v739_v22 = vld [vmem:[%s8772_s23 + $0x84] sm:$0xe] }
  0x91   : > { %v591_v60 = vor.u32 %v590_v33, %v587_v8  ;;  %v870_v61 = vrot.slane %v9282_v25, 5  ;;  %v1577_v24 = vrot.slane %v1575_v0, 5 }
  0x92   : > { %12217 = vst [vmem:[#allocation12_spill] sm:$0xff] %v9311_v30  ;;  %3598 = vmatmul.mubr.bf16.gmra.mrb[20].mxu1 %v6729_v20  ;;  %v602_v33 = vrot.slane %v601_v32, 4  ;;  %v868_v25 = vsel %vm8805_vm4, %v6522_v43, %v867_v13  ;;  %v869_v37 = vrot.slane %v867_v13, 4  ;;  %v9347_v20 = vld [vmem:[%s8772_s23 + $0x90] sm:$0xf]  ;;  %v6697_v13 = vcombine.low %v9222_v45, %v9227_v53 }
  0x93   : > { %v592_v26 = vrot.slane %v591_v60, 4  ;;  %3605 = vmatprep.mubr.bf16.mxu1 %v6746_v14  ;;  %v9350_v60 = vld [vmem:[%s8772_s23 + $0x94] sm:$0xf]  ;;  %v624_v14 = vrot.slane %v622_v41, 4  ;;  %v9359_v43 = vld [vmem:[%s8772_s23 + $0x90] sm:$0xf] }
  0x94   : > { %12220 = vst [vmem:[#allocation15_spill] sm:$0xff] %v9350_v60  ;;  %v607_v46 = vsel %vm8833_vm5, %v602_v33, %v606_v62  ;;  %v9365_v33 = vld [vmem:[%s8772_s23 + $0x94] sm:$0xf]  ;;  %v874_v41 = vrot.slane %v9314_v5, 5 }
  0x95   : > { %v597_v8 = vsel %vm8833_vm5, %v592_v26, %v596_v1  ;;  %v618_v1 = vshll.u32 %v9314_v5, 16  ;;  %v871_v26 = vsel %vm8805_vm4, %v869_v37, %v870_v61  ;;  %v630_v37 = vrot.slane %v628_v58, 5  ;;  %v8364_v45 = vld [vmem:[%s12166_s1 + $0x1b0] sm:$0xff]  }
  0x96   : > { %v6730_v19 = vcombine.low %v868_v25, %v871_v26  ;;  %v6523_v25 = vrot.slane %v739_v22, 9  ;;  %v1224_v58 = vshll.u32 %v9347_v20, 16  ;;  %v633_v22 = vshrl.u32 %v9359_v43, 16  ;;  %7342 = vmatpush3.bf16.msra.mxu1 %v8364_v45 }
  0x97   : > { %3429 = vmatmul.mubr.bf16.gmra.mrb[32].mxu0 %v6696_v35  ;;  %v614_v35 = vrot.slane %v612_v29, 5  ;;  %v620_v32 = vrot.slane %v618_v1, 5  ;;  %v6714_v29 = vcombine.low %v597_v8, %v607_v46  ;;  %v9372_v1 = vld [vmem:[%s8772_s23 + $0x98] sm:$0x1]  ;;  %v9380_v8 = vrot.slane %v1197_v18, 4 }
  0x98   : > { %3436 = vmatprep.mubr.bf16.mxu0 %v6713_v42  ;;  %v1200_v42 = vshll.u32 %v9295_v55, 16  ;;  %v6747_v55 = vcombine.low %v9347_v20, %v9350_v60  ;;  %v875_v26 = vsel %vm8805_vm4, %v6523_v25, %v874_v41  ;;  %v9392_v18 = vld [vmem:[%s8772_s23 + $0xa0] sm:$0xf]  ;;  %v646_v2 = vshrl.u32 %v9365_v33, 16 }
  0x99   : > { %v615_v62 = vor.u32 %v614_v35, %v611_v27  ;;  %v625_v34 = vor.u32 %v624_v14, %v620_v32  ;;  %12221 = vst [vmem:[#allocation16_spill] sm:$0xff] %v9380_v8  ;;  %v1221_v27 = vshrl.u32 %v9347_v20, 16  ;;  %v877_v35 = vrot.slane %v9323_v16, 5  ;;  %12222 = vst [vmem:[#allocation17_spill] sm:$0xff] %v9392_v18 }
  0x9a   : > { %3606 = vmatmul.mubr.bf16.gmra.mrb[24].mxu1 %v6730_v19  ;;  %v876_v14 = vrot.slane %v874_v41, 4  ;;  %v636_v16 = vshll.u32 %v9359_v43, 16  ;;  %v642_v20 = vshll.u32 %v9365_v33, 16  ;;  %v635_v45 = vrot.slane %v633_v22, 4  ;;  %v9406_v41 = vld [vmem:[%s8772_s23 + $0x9c] sm:$0xf] }
  0x9b   : > { %v616_v53 = vrot.slane %v615_v62, 4  ;;  %v626_v46 = vrot.slane %v625_v34, 4  ;;  %3613 = vmatprep.mubr.bf16.mxu1 %v6747_v55  ;;  %v9389_v62 = vld [vmem:[%s8772_s23 + $0x9c] sm:$0xf]  ;;  %v740_v34 = vld [vmem:[%s8772_s23 + $0x90] sm:$0xe] }
  0x9c   : > { %v878_v25 = vsel %vm8805_vm4, %v876_v14, %v877_v35  ;;  %v644_v61 = vrot.slane %v642_v20, 5  ;;  %v648_v47 = vrot.slane %v646_v2, 4  ;;  %v9418_v35 = vrot.slane %v1221_v27, 4  ;;  %v9430_v27 = vld [vmem:[%s8772_s23 + $0xa4] sm:$0x1] }
  0x9d   : > { %v621_v19 = vsel %vm8833_vm5, %v616_v53, %v620_v32  ;;  %v631_v55 = vsel %vm8833_vm5, %v626_v46, %v630_v37  ;;  %v6731_v32 = vcombine.low %v875_v26, %v878_v25  ;;  %v638_v53 = vrot.slane %v636_v16, 5  ;;  %v8368_v26 = vld [vmem:[%s12166_s1 + $0x1b8] sm:$0xff]  }
  0x9e   : > { %v6698_v37 = vcombine.low %v9270_v54, %v9275_v15  ;;  %v9416_v46 = vrot.slane %v1200_v42, 5  ;;  %12224 = vst [vmem:[#allocation19_spill] sm:$0xff] %v9418_v35  ;;  %v9424_v22 = vrot.slane %v1224_v58, 5  ;;  %v649_v20 = vor.u32 %v648_v47, %v644_v61  ;;  %v9499_v35 = vld [vmem:[%s8772_s23 + $0xb8] sm:$0xf] }
  0x9f   : > { %3437 = vmatmul.mubr.bf16.gmra.mrb[36].mxu0 %v6697_v13  ;;  %v652_v13 = vshll.u32 %v9372_v1, 16  ;;  %v639_v16 = vor.u32 %v638_v53, %v635_v45  ;;  %v6748_v2 = vcombine.low %v9389_v62, %v9392_v18  ;;  %v6715_v25 = vcombine.low %v621_v19, %v631_v55  ;;  %v9439_v53 = vld [vmem:[%s8772_s23 + $0xa8] sm:$0xf] }
  0xa0   : > { %3444 = vmatprep.mubr.bf16.mxu0 %v6714_v29  ;;  %v8367_v29 = vld [vmem:[%s12166_s1 + $0x1f8] sm:$0xff]   ;;  %12223 = vst [vmem:[#allocation18_spill] sm:$0xff] %v9416_v46  ;;  %12225 = vst [vmem:[#allocation20_spill] sm:$0xff] %v9424_v22  ;;  %v6524_v15 = vrot.slane %v740_v34, 9  ;;  %v881_v42 = vrot.slane %v9365_v33, 5  ;;  %v650_v14 = vrot.slane %v649_v20, 4 }
  0xa1   : > { %7343 = vmatprep.subr.bf16.mxu1 %v8367_v29  ;;  %v654_v54 = vrot.slane %v652_v13, 5  ;;  %v640_v58 = vrot.slane %v639_v16, 4  ;;  %v884_v47 = vrot.slane %v9372_v1, 5  ;;  %v657_v45 = vshrl.u32 %v9406_v41, 16  ;;  %v9442_v29 = vld [vmem:[%s8772_s23 + $0xac] sm:$0xf] }
  0xa2   : > { %7344 = vmatpush3.bf16.msra.mxu1 %v8368_v26  ;;  %v882_v19 = vsel %vm8805_vm4, %v6524_v15, %v881_v42  ;;  %v883_v55 = vrot.slane %v881_v42, 4  ;;  %v660_v34 = vshll.u32 %v9406_v41, 16  ;;  %v666_v13 = vshll.u32 %v9409_v31, 16  ;;  %12226 = vst [vmem:[#allocation21_spill] sm:$0xff] %v9442_v29  ;;  %v9494_v22 = vld [vmem:[%s8772_s23 + $0xb4] sm:$0xf] }
  0xa3   : > { %3614 = vmatmul.mubr.bf16.gmra.mrb[28].mxu1 %v6731_v32  ;;  %v741_v32 = vld [vmem:[%s8772_s23 + $0x9c] sm:$0xe]  ;;  %v6699_v1 = vcombine.low %v9309_v40, %v9314_v5  ;;  %v659_v26 = vrot.slane %v657_v45, 4  ;;  %v670_v16 = vshrl.u32 %v9409_v31, 16  ;;  %v645_v20 = vsel %vm8833_vm5, %v640_v58, %v644_v61 }
  0xa4   : > { %3621 = vmatprep.mubr.bf16.mxu1 %v6748_v2  ;;  %v885_v2 = vsel %vm8805_vm4, %v883_v55, %v884_v47  ;;  %v662_v15 = vrot.slane %v660_v34, 5  ;;  %v668_v42 = vrot.slane %v666_v13, 5  ;;  %v676_v40 = vshll.u32 %v9430_v27, 16  ;;  %v9460_v47 = vld [vmem:[%s8772_s23 + $0xa8] sm:$0xf] }
  0xa5   : > { %v6732_v48 = vcombine.low %v882_v19, %v885_v2  ;;  %v672_v23 = vrot.slane %v670_v16, 4  ;;  %v1248_v61 = vshll.u32 %v9389_v62, 16  ;;  %v9466_v19 = vld [vmem:[%s8772_s23 + $0xac] sm:$0xf]  ;;  %v1269_v45 = vshrl.u32 %v9439_v53, 16 }
  0xa6   : > { %v663_v58 = vor.u32 %v662_v15, %v659_v26  ;;  %v678_v16 = vrot.slane %v676_v40, 5  ;;  %v9470_v26 = vld [vmem:[%s8772_s23 + $0xb0] sm:$0x1]  ;;  %v681_v15 = vshrl.u32 %v9460_v47, 16  ;;  %v690_v40 = vshll.u32 %v9466_v19, 16 }
  0xa7   : > { %3445 = vmatmul.mubr.bf16.gmra.mrb[40].mxu0 %v6698_v37  ;;  %v655_v37 = vsel %vm8833_vm5, %v650_v14, %v654_v54  ;;  %v673_v55 = vor.u32 %v672_v23, %v668_v42  ;;  %v6749_v14 = vcombine.low %v9439_v53, %v9442_v29  ;;  %v6525_v54 = vrot.slane %v741_v32, 9  ;;  %v9546_v29 = vld [vmem:[%s8772_s23 + $0xc] sm:$0xf] }
  0xa8   : > { %3452 = vmatprep.mubr.bf16.mxu0 %v6715_v25  ;;  %v1245_v25 = vshrl.u32 %v9389_v62, 16  ;;  %v6716_v34 = vcombine.low %v645_v20, %v655_v37  ;;  %v664_v13 = vrot.slane %v663_v58, 4  ;;  %v888_v62 = vrot.slane %v9409_v31, 5  ;;  %v9480_v58 = vld [vmem:[%s8772_s23 + $0xb4] sm:$0xf] }
  0xa9   : > { %v674_v2 = vrot.slane %v673_v55, 4  ;;  %v891_v23 = vrot.slane %v9430_v27, 5  ;;  %v684_v32 = vshll.u32 %v9460_v47, 16  ;;  %v742_v55 = vld [vmem:[%s8772_s23 + $0xa8] sm:$0xe]  ;;  %v1272_v27 = vshll.u32 %v9439_v53, 16 }
  0xaa   : > { %v889_v20 = vsel %vm8805_vm4, %v6525_v54, %v888_v62  ;;  %v890_v37 = vrot.slane %v888_v62, 4  ;;  %v683_v3 = vrot.slane %v681_v15, 4  ;;  %v669_v54 = vsel %vm8833_vm5, %v664_v13, %v668_v42 }
  0xab   : > { %3622 = vmatmul.mubr.bf16.gmra.mrb[32].mxu1 %v6732_v48  ;;  %v9483_v48 = vld [vmem:[%s8772_s23 + $0xb8] sm:$0xf]  ;;  %v686_v21 = vrot.slane %v684_v32, 5  ;;  %v692_v5 = vrot.slane %v690_v40, 5  ;;  %v700_v18 = vshll.u32 %v9470_v26, 16  ;;  %v679_v53 = vsel %vm8833_vm5, %v674_v2, %v678_v16 }
  0xac   : > { %3629 = vmatprep.mubr.bf16.mxu1 %v6749_v14  ;;  %12227 = vst [vmem:[#allocation22_spill] sm:$0xff] %v9483_v48  ;;  %v694_v14 = vshrl.u32 %v9466_v19, 16  ;;  %v892_v62 = vsel %vm8805_vm4, %v890_v37, %v891_v23  ;;  %v9503_v60 = vrot.slane %v1248_v61, 5  ;;  %v9505_v42 = vrot.slane %v1269_v45, 4  ;;  %v9509_v23 = vld [vmem:[%s8772_s23 + $0xbc] sm:$0x1] }
  0xad   : > { %v687_v15 = vor.u32 %v686_v21, %v683_v3  ;;  %v9511_v37 = vrot.slane %v1272_v27, 5  ;;  %v6750_v16 = vcombine.low %v9480_v58, %v9483_v48  ;;  %v6526_v21 = vrot.slane %v742_v55, 9  ;;  %v6576_v48 = vld [vmem:[%s8772_s23 + $0xc] sm:$0xe] }
  0xae   : > { %v696_v32 = vrot.slane %v694_v14, 4  ;;  %12229 = vst [vmem:[#allocation24_spill] sm:$0xff] %v9503_v60  ;;  %12230 = vst [vmem:[#allocation25_spill] sm:$0xff] %v9505_v42  ;;  %v6717_v3 = vcombine.low %v669_v54, %v679_v53  ;;  %v895_v61 = vrot.slane %v9466_v19, 5  ;;  %v898_v45 = vrot.slane %v9470_v26, 5 }
  0xaf   : > { %3453 = vmatmul.mubr.bf16.gmra.mrb[44].mxu0 %v6699_v1  ;;  %v6733_v1 = vcombine.low %v889_v20, %v892_v62  ;;  %12231 = vst [vmem:[#allocation26_spill] sm:$0xff] %v9511_v37  ;;  %v688_v2 = vrot.slane %v687_v15, 4  ;;  %v705_v27 = vshrl.u32 %v9494_v22, 16  ;;  %v708_v14 = vshll.u32 %v9494_v22, 16  ;;  %v9524_v53 = vld [vmem:[%s8772_s23 + $0xc0] sm:$0xf] }
  0xb0   : > { %3460 = vmatprep.mubr.bf16.mxu0 %v6716_v34  ;;  %v9501_v34 = vrot.slane %v1245_v25, 4  ;;  %v697_v40 = vor.u32 %v696_v32, %v692_v5  ;;  %v702_v25 = vrot.slane %v700_v18, 5  ;;  %v896_v62 = vsel %vm8805_vm4, %v6526_v21, %v895_v61  ;;  %v9527_v32 = vld [vmem:[%s8772_s23 + $0xc4] sm:$0xf]  ;;  %v743_v26 = vld [vmem:[%s8772_s23 + $0xb4] sm:$0xe] }
  0xb1   : > { %v897_v55 = vrot.slane %v895_v61, 4  ;;  %v714_v54 = vshll.u32 %v9499_v35, 16  ;;  %v718_v18 = vshrl.u32 %v9499_v35, 16  ;;  %12232 = vst [vmem:[#allocation27_spill] sm:$0xff] %v9527_v32  ;;  %v1293_v15 = vshrl.u32 %v9480_v58, 16 }
  0xb2   : > { %12228 = vst [vmem:[#allocation23_spill] sm:$0xff] %v9501_v34  ;;  %v698_v20 = vrot.slane %v697_v40, 4  ;;  %v707_v40 = vrot.slane %v705_v27, 4  ;;  %v724_v21 = vshll.u32 %v9509_v23, 16  ;;  %v6701_v61 = vcombine.low %v9406_v41, %v9409_v31  ;;  %v9678_v34 = vld [vmem:[%s8772_s23 + $0x18] sm:$0xf] }
  0xb3   : > { %3630 = vmatmul.mubr.bf16.gmra.mrb[36].mxu1 %v6733_v1  ;;  %v12233_v1 = vcombine.low %v9359_v43, %v9365_v33  ;;  %v899_v13 = vsel %vm8805_vm4, %v897_v55, %v898_v45  ;;  %v716_v37 = vrot.slane %v714_v54, 5  ;;  %v720_v42 = vrot.slane %v718_v18, 4 }
  0xb4   : > { %3637 = vmatprep.mubr.bf16.mxu1 %v6750_v16  ;;  %v710_v16 = vrot.slane %v708_v14, 5  ;;  %v693_v43 = vsel %vm8833_vm5, %v688_v2, %v692_v5  ;;  %v703_v33 = vsel %vm8833_vm5, %v698_v20, %v702_v25  ;;  %v6734_v27 = vcombine.low %v896_v62, %v899_v13  ;;  %v9552_v2 = vld [vmem:[%s8772_s23 + $0x10] sm:$0xf]  ;;  %v728_v62 = vld [vmem:[%s8772_s23] sm:$0xe] }
  0xb5   : > { %v721_v31 = vor.u32 %v720_v42, %v716_v37  ;;  %v726_v41 = vrot.slane %v724_v21, 5  ;;  %v6751_v55 = vcombine.low %v9524_v53, %v9527_v32  ;;  %v6527_v54 = vrot.slane %v743_v26, 9 }
  0xb6   : > { %v711_v14 = vor.u32 %v710_v16, %v707_v40  ;;  %v902_v5 = vrot.slane %v9499_v35, 5  ;;  %v6718_v13 = vcombine.low %v693_v43, %v703_v33  ;;  %v1317_v20 = vshrl.u32 %v9524_v53, 16 }
  0xb7   : > { %3461 = vmatmul.mubr.bf16.gmra.mrb[48].mxu0 %v12233_v1  ;;  %v722_v25 = vrot.slane %v721_v31, 4  ;;  %v6702_v42 = vcombine.low %v9460_v47, %v9466_v19  ;;  %v957_v40 = vshrl.u32 %v9546_v29, 16  ;;  %v1320_v16 = vshll.u32 %v9524_v53, 16  ;;  %v9613_v1 = vld [vmem:[%s8772_s23 + $0x30] sm:$0xf] }
  0xb8   : > { %3468 = vmatprep.mubr.bf16.mxu0 %v6717_v3  ;;  %v1296_v3 = vshll.u32 %v9480_v58, 16  ;;  %v712_v45 = vrot.slane %v711_v14, 4  ;;  %v905_v58 = vrot.slane %v9509_v23, 5  ;;  %v903_v18 = vsel %vm8805_vm4, %v6527_v54, %v902_v5  ;;  %v8476_v31 = vld [vmem:[%s8772_s23 + $0x20] sm:$0x1] }
  0xb9   : > { %v904_v26 = vrot.slane %v902_v5, 4  ;;  %v960_v21 = vshll.u32 %v9546_v29, 16  ;;  %v966_v23 = vshll.u32 %v9552_v2, 16  ;;  %v970_v43 = vshrl.u32 %v9552_v2, 16 }
  0xba   : > { %v9566_v47 = vrot.slane %v1293_v15, 4  ;;  %v717_v19 = vsel %vm8833_vm5, %v712_v45, %v716_v37  ;;  %v727_v33 = vsel %vm8833_vm5, %v722_v25, %v726_v41  ;;  %v9575_v14 = vrot.slane %v1296_v3, 5  ;;  %v9584_v45 = vld [vmem:[%s8772_s23 + $0x1c] sm:$0xf]  ;;  %v730_v25 = vld [vmem:[%s8772_s23 + $0x18] sm:$0xe] }
  0xbb   : > { %3638 = vmatmul.mubr.bf16.gmra.mrb[40].mxu1 %v6734_v27  ;;  %v906_v53 = vsel %vm8805_vm4, %v904_v26, %v905_v58  ;;  %v729_v27 = vld [vmem:[%s8772_s23 + $0xc] sm:$0xe]  ;;  %v959_v15 = vrot.slane %v957_v40, 4  ;;  %v962_v54 = vrot.slane %v960_v21, 5  ;;  %v9581_v5 = vrot.slane %v966_v23, 5 }
  0xbc   : > { %3645 = vmatprep.mubr.bf16.mxu1 %v6751_v55  ;;  %12234 = vst [vmem:[#allocation28_spill] sm:$0xff] %v9566_v47  ;;  %12235 = vst [vmem:[#allocation29_spill] sm:$0xff] %v9575_v14  ;;  %v9579_v55 = vld [vmem:[%s8772_s23 + $0x18] sm:$0xf]  ;;  %v972_v37 = vrot.slane %v970_v43, 4  ;;  %v6512_v41 = vrot.slane %v728_v62, 9 }
  0xbd   : > { %v9589_v58 = vrot.slane %v1317_v20, 4  ;;  %v12238_v26 = vrot.slane %v8784_v12, 5  ;;  %v981_v62 = vshrl.u32 %v9579_v55, 16  ;;  %v984_v21 = vshll.u32 %v9579_v55, 16  ;;  %v8473_v23 = vld [vmem:[%s8772_s23 + $0x10] sm:$0xf] }
  0xbe   : > { %v804_v43 = vrot.slane %v8473_v23, 5  ;;  %v6513_v12 = vrot.slane %v729_v27, 9  ;;  %v9618_v3 = vld [vmem:[%s8772_s23 + $0x28] sm:$0xf]  ;;  %v1406_v47 = vrot.slane %v9552_v2, 5  ;;  %v6592_v46 = vrot.slane %v6576_v48, 9 }
  0xbf   : > { %3469 = vmatmul.mubr.bf16.gmra.mrb[52].mxu0 %v6701_v61  ;;  %v6735_v61 = vcombine.low %v903_v18, %v906_v53  ;;  %12236 = vst [vmem:[#allocation30_spill] sm:$0xff] %v9589_v58  ;;  %v9591_v18 = vrot.slane %v1320_v16, 5  ;;  %v9597_v40 = vsel %vm8805_vm4, %v6512_v41, %v12238_v26  ;;  %v9608_v53 = vld [vmem:[%s8772_s23 + $0x24] sm:$0xf]  ;;  %v963_v41 = vor.u32 %v962_v54, %v959_v15 }
  0xc0   : > { %3476 = vmatprep.mubr.bf16.mxu0 %v6718_v13  ;;  %v6719_v13 = vcombine.low %v717_v19, %v727_v33  ;;  %v8474_v19 = vld [vmem:[%s8772_s23 + $0x14] sm:$0x1]  ;;  %v973_v26 = vor.u32 %v972_v37, %v9581_v5  ;;  %v806_v23 = vrot.slane %v804_v43, 4  ;;  %v1005_v27 = vshrl.u32 %v9608_v53, 16 }
  0xc1   : > { %12237 = vst [vmem:[#allocation31_spill] sm:$0xff] %v9591_v18  ;;  %v807_v33 = vrot.slane %v8474_v19, 5  ;;  %v6514_v19 = vrot.slane %v730_v25, 9  ;;  %v9622_v15 = vrot.slane %v981_v62, 4  ;;  %v9624_v54 = vrot.slane %v984_v21, 5 }
  0xc2   : > { %v1008_v37 = vshll.u32 %v9608_v53, 16  ;;  %v814_v18 = vrot.slane %v8476_v31, 5  ;;  %v9630_v20 = vsel %vm8805_vm4, %v6513_v12, %v804_v43  ;;  %v1029_v62 = vshrl.u32 %v9613_v1, 16  ;;  %v731_v21 = vld [vmem:[%s8772_s23 + $0x24] sm:$0xe] }
  0xc3   : > { %3646 = vmatmul.mubr.bf16.gmra.mrb[44].mxu1 %v6735_v61  ;;  %v8475_v61 = vld [vmem:[%s8772_s23 + $0x1c] sm:$0xf]  ;;  %v9634_v25 = vsel %vm8805_vm4, %v806_v23, %v807_v33  ;;  %v9639_v58 = vrot.slane %v963_v41, 4  ;;  %v9641_v32 = vrot.slane %v973_v26, 4  ;;  %v9645_v43 = vrot.slane %v1005_v27, 4 }
  0xc4   : > { %v811_v16 = vrot.slane %v8475_v61, 5  ;;  %v6560_v61 = vld [vmem:[%s8772_s23 + $0x14] sm:$0x1]  ;;  %v8477_v41 = vld [vmem:[%s8772_s23 + $0x28] sm:$0xf]  ;;  %v9661_v27 = vrot.slane %v1008_v37, 5  ;;  %v12240_v48 = vcombine.low %v9546_v29, %v9552_v2  ;;  %v12242_v30 = vcombine.low %v9597_v40, %v8839_v39 }
  0xc5   : > { %v9656_v23 = vld [vmem:[%s8772_s23 + $0x34] sm:$0xf]  ;;  %v818_v26 = vrot.slane %v8477_v41, 5  ;;  %v6515_v14 = vrot.slane %v731_v21, 9  ;;  %v8478_v31 = vld [vmem:[%s8772_s23 + $0x2c] sm:$0x1]  ;;  %v12239_v41 = vcombine.low %v9494_v22, %v9499_v35  ;;  %v969_v35 = vsel %vm8833_vm5, %v9639_v58, %v9581_v5 }
  0xc6   : > { %v9649_v12 = vsel %vm8805_vm4, %v6514_v19, %v811_v16  ;;  %v976_v19 = vshll.u32 %v6560_v61, 16  ;;  %v6640_v21 = vld [vmem:[%s8772_s23 + $0x20] sm:$0x1]  ;;  %v1566_v8 = vshrl.u32 %v9678_v34, 16  ;;  %v1408_v37 = vrot.slane %v1406_v47, 4 }
  0xc7   : > { %3477 = vmatmul.mubr.bf16.gmra.mrb[56].mxu0 %v6702_v42  ;;  %v813_v42 = vrot.slane %v811_v16, 4  ;;  %v821_v16 = vrot.slane %v8478_v31, 5  ;;  %v1569_v31 = vshll.u32 %v9678_v34, 16  ;;  %v1585_v6 = vshll.u32 %v6640_v21, 16  ;;  %v6577_v5 = vld [vmem:[%s8772_s23 + $0x18] sm:$0xe] }
  0xc8   : > { %3484 = vmatprep.mubr.bf16.mxu0 %v6719_v13  ;;  %v1032_v13 = vshll.u32 %v9613_v1, 16  ;;  %v1568_v22 = vrot.slane %v1566_v8, 4  ;;  %v1413_v29 = vrot.slane %v9584_v45, 5  ;;  %v987_v8 = vor.u32 %v9624_v54, %v9622_v15  ;;  %v9717_v58 = vld [vmem:[%s8772_s23 + $0x24] sm:$0xf] }
  0xc9   : > { %v9653_v33 = vsel %vm8805_vm4, %v813_v42, %v814_v18  ;;  %v9666_v18 = vrot.slane %v1029_v62, 4  ;;  %v820_v62 = vrot.slane %v818_v26, 4  ;;  %v1409_v42 = vrot.slane %v6560_v61, 5  ;;  %v9731_v21 = vld [vmem:[%s8772_s23 + $0x28] sm:$0xf]  ;;  %v8335_v15 = vld [vmem:[%s12166_s1 + $0x100] sm:$0xff]  }
  0xca   : > { %v9672_v60 = vrot.slane %v1032_v13, 5  ;;  %v9688_v13 = vrot.slane %v976_v19, 5  ;;  %v9697_v61 = vsel %vm8805_vm4, %v6515_v14, %v818_v26  ;;  %v1579_v19 = vshrl.u32 %v9681_v51, 16 }
  0xcb   : > { %v9707_v2 = vsel %vm8805_vm4, %v820_v62, %v821_v16  ;;  %v9711_v14 = vsel %vm8805_vm4, %v6592_v46, %v1406_v47  ;;  %v9721_v0 = vsel %vm8805_vm4, %v1408_v37, %v1409_v42  ;;  %v6784_v46 = vcombine.low %v9678_v34, %v9681_v51  ;;  %v6561_v47 = vld [vmem:[%s8772_s23 + $0x20] sm:$0x1] }
  0xcc   : > { %v1581_v26 = vrot.slane %v1579_v19, 4  ;;  %v979_v16 = vsel %vm8833_vm5, %v9641_v32, %v9688_v13  ;;  %v1587_v42 = vrot.slane %v1585_v6, 5  ;;  %v990_v37 = vshll.u32 %v9584_v45, 16  ;;  %v8338_v32 = vld [vmem:[%s12166_s1 + $0x148] sm:$0xff]  }
  0xcd   : > { %v6593_v34 = vrot.slane %v6577_v5, 9  ;;  %v1415_v13 = vrot.slane %v1413_v29, 4  ;;  %v1000_v36 = vshll.u32 %v6561_v47, 16  ;;  %v1593_v6 = vshll.u32 %v9717_v58, 16 }
  0xce   : > { %v1582_v54 = vor.u32 %v1581_v26, %v1577_v24  ;;  %v6641_v26 = vld [vmem:[%s8772_s23 + $0x2c] sm:$0x1]  ;;  %v1416_v17 = vrot.slane %v6561_v47, 5  ;;  %v1599_v5 = vshll.u32 %v9731_v21, 16  ;;  %v8343_v47 = vld [vmem:[%s12166_s1 + $0x150] sm:$0xff]  }
  0xcf   : > { %3485 = vmatmul.mubr.bf16.gmra.mrb[60].mxu0 %v12239_v41  ;;  %v1571_v41 = vrot.slane %v1569_v31, 5  ;;  %v12241_v31 = vshrl.u32 %v9584_v45, 16  ;;  %v1595_v40 = vrot.slane %v1593_v6, 5  ;;  %v9775_v6 = vcombine.low %v969_v35, %v979_v16 }
  0xd0   : > { %3525 = vmatprep.mubr.bf16.mxu0 %v12240_v48  ;;  %v1583_v19 = vrot.slane %v1582_v54, 4  ;;  %v8339_v54 = vld [vmem:[%s12166_s1 + $0x108] sm:$0xff]   ;;  %v9792_v35 = vsel %vm8805_vm4, %v1415_v13, %v1416_v17  ;;  %v1420_v17 = vrot.slane %v9618_v3, 5  ;;  %v9806_v13 = vld [vmem:[%s8772_s23 + $0x34] sm:$0xf] }
  0xd1   : > { %v1572_v62 = vor.u32 %v1571_v41, %v1568_v22  ;;  %v996_v48 = vrot.slane %v12241_v31, 4  ;;  %v1590_v22 = vshrl.u32 %v9717_v58, 16  ;;  %v9743_v41 = vrot.slane %v990_v37, 5  ;;  %12244 = vst [vmem:[#allocation32_spill] sm:$0xff] %v9775_v6 }
  0xd2   : > { %v12243_v37 = vcombine.low %v9579_v55, %v9584_v45  ;;  %v1588_v39 = vsel %vm8833_vm5, %v1583_v19, %v1587_v42  ;;  %v1603_v55 = vshrl.u32 %v9731_v21, 16  ;;  %v1609_v45 = vshll.u32 %v6641_v26, 16  ;;  %v9782_v26 = vld [vmem:[%s8772_s23 + $0x2c] sm:$0x1] }
  0xd3   : > { %v1573_v51 = vrot.slane %v1572_v62, 4  ;;  %v1592_v62 = vrot.slane %v1590_v22, 4  ;;  %v6723_v42 = vcombine.low %v9697_v61, %v9707_v2  ;;  %v1002_v22 = vrot.slane %v1000_v36, 5  ;;  %v8344_v36 = vld [vmem:[%s12166_s1 + $0x110] sm:$0xff]  }
  0xd4   : > { %v12253_v2 = vrot.slane %v8988_v10, 5 }
  0xd5   : > { %v1578_v31 = vsel %vm8833_vm5, %v1573_v51, %v1577_v24  ;;  %v997_v24 = vor.u32 %v996_v48, %v9743_v41  ;;  %v1601_v51 = vrot.slane %v1599_v5, 5  ;;  %v1596_v19 = vor.u32 %v1595_v40, %v1592_v62  ;;  %v9771_v48 = vld [vmem:[%s8772_s23 + $0x24] sm:$0xe]  ;;  %v8347_v62 = vld [vmem:[%s12166_s1 + $0x158] sm:$0xff]  }
  0xd6   : > { %v1605_v5 = vrot.slane %v1603_v55, 4  ;;  %v12246_v40 = vcombine.low %v9630_v20, %v9634_v25  ;;  %v1024_v20 = vshll.u32 %v9782_v26, 16  ;;  %v6642_v25 = vld [vmem:[%s8772_s23 + $0x38] sm:$0x1] }
  0xd7   : > { %3526 = vmatmul.mubr.bf16.vlgmr.msra.gmra.mrb[64].mxu0 %v12242_v30  ;;  %v9761_v30 = vrot.slane %v987_v8, 4  ;;  %v998_v8 = vrot.slane %v997_v24, 4  ;;  %v1597_v16 = vrot.slane %v1596_v19, 4  ;;  %v1623_v19 = vshll.u32 %v9806_v13, 16 }
  0xd8   : > { %7218 = vmatpush3.bf16.msra.mxu0 %v8335_v15  ;;  %3533 = vmatprep.mubr.bf16.mxu0 %v12243_v37  ;;  %v6800_v15 = vcombine.low %v1578_v31, %v1588_v39  ;;  %v9779_v31 = vsel %vm8805_vm4, %v6593_v34, %v1413_v29  ;;  %v9785_v37 = vld [vmem:[%s8772_s23 + $0x30] sm:$0xf]  ;;  %v6785_v34 = vcombine.low %v9717_v58, %v9731_v21  ;;  %v6594_v39 = vrot.slane %v9771_v48, 9 }
  0xd9   : > { %7219 = vmatprep.subr.bf16.mxu0 %v8338_v32  ;;  %v6768_v32 = vcombine.low %v9711_v14, %v9721_v0  ;;  %v993_v29 = vsel %vm8833_vm5, %v9761_v30, %v9743_v41  ;;  %v1003_v41 = vsel %vm8833_vm5, %v998_v8, %v1002_v22  ;;  %v1011_v58 = vor.u32 %v9661_v27, %v9645_v43 }
  0xda   : > { %3847 = vmatprep.mubr.bf16.mxu1 %v6800_v15  ;;  %v1014_v21 = vshll.u32 %v9618_v3, 16  ;;  %v12245_v30 = vshrl.u32 %v9618_v3, 16  ;;  %v1602_v15 = vsel %vm8833_vm5, %v1597_v16, %v1601_v51  ;;  %v1614_v43 = vshrl.u32 %v9785_v37, 16 }
  0xdb   : > { %3848 = vmatmul.mubr.bf16.vlgmr.msra.gmra.mrb[48].mxu1 %v6784_v46  ;;  %v1611_v46 = vrot.slane %v1609_v45, 5  ;;  %v1423_v45 = vrot.slane %v9782_v26, 5  ;;  %v12247_v27 = vcombine.low %v9608_v53, %v9618_v3  ;;  %v1617_v22 = vshll.u32 %v9785_v37, 16 }
  0xdc   : > { %7220 = vmatpush3.bf16.msra.mxu0 %v8339_v54  ;;  %v1606_v54 = vor.u32 %v1605_v5, %v1601_v51  ;;  %v1020_v24 = vrot.slane %v12245_v30, 4  ;;  %v9828_v8 = vrot.slane %v1014_v21, 5  ;;  %v8352_v51 = vld [vmem:[%s12166_s1 + $0x160] sm:$0xff]   ;;  %v1422_v5 = vrot.slane %v1420_v17, 4 }
  0xdd   : > { %7221 = vmatprep.subr.bf16.mxu0 %v8343_v47  ;;  %v8348_v47 = vld [vmem:[%s12166_s1 + $0x118] sm:$0xff]   ;;  %v1616_v3 = vrot.slane %v1614_v43, 4  ;;  %v1627_v53 = vshrl.u32 %v9806_v13, 16  ;;  %v9840_v26 = vrot.slane %v1011_v58, 4  ;;  %v6769_v21 = vcombine.low %v9779_v31, %v9792_v35 }
  0xde   : > { %v1607_v55 = vrot.slane %v1606_v54, 4  ;;  %v1021_v16 = vor.u32 %v1020_v24, %v9828_v8  ;;  %v1619_v54 = vrot.slane %v1617_v22, 5  ;;  %v1625_v30 = vrot.slane %v1623_v19, 5  ;;  %v6579_v22 = vld [vmem:[%s8772_s23 + $0x30] sm:$0xe] }
  0xdf   : > { %3534 = vmatmul.mubr.bf16.gmra.mrb[68].mxu0 %v12246_v40  ;;  %v1629_v40 = vrot.slane %v1627_v53, 4  ;;  %v9851_v58 = vcombine.low %v993_v29, %v1003_v41  ;;  %v9862_v29 = vsel %vm8805_vm4, %v1422_v5, %v1423_v45  ;;  %v1017_v41 = vsel %vm8833_vm5, %v9840_v26, %v9828_v8  ;;  %v8357_v8 = vld [vmem:[%s12166_s1 + $0x128] sm:$0xff]  }
  0xe0   : > { %7222 = vmatpush3.bf16.msra.mxu0 %v8344_v36  ;;  %3541 = vmatprep.mubr.bf16.mxu0 %v12247_v27  ;;  %v1612_v48 = vsel %vm8833_vm5, %v1607_v55, %v1611_v46  ;;  %v8356_v46 = vld [vmem:[%s12166_s1 + $0x168] sm:$0xff]   ;;  %v1022_v24 = vrot.slane %v1021_v16, 4  ;;  %v1026_v55 = vrot.slane %v1024_v20, 5  ;;  %v1620_v43 = vor.u32 %v1619_v54, %v1616_v3  ;;  %v6563_v27 = vld [vmem:[%s8772_s23 + $0x38] sm:$0x1]  ;;  %v8361_v16 = vld [vmem:[%s12166_s1 + $0x170] sm:$0xff]  }
  0xe1   : > { %7223 = vmatprep.subr.bf16.mxu0 %v8347_v62  ;;  %v6801_v36 = vcombine.low %v1602_v15, %v1612_v48  ;;  %v8353_v62 = vld [vmem:[%s12166_s1 + $0x120] sm:$0xff]   ;;  %v1633_v15 = vshll.u32 %v6642_v25, 16  ;;  %12248 = vst [vmem:[#allocation33_spill] sm:$0xff] %v9851_v58  ;;  %v9857_v48 = vsel %vm8805_vm4, %v6594_v39, %v1420_v17  ;;  %v1630_v19 = vor.u32 %v1629_v40, %v1625_v30  ;;  %v9871_v25 = vld [vmem:[%s8772_s23 + $0x3c] sm:$0xf] }
  0xe2   : > { %v1621_v20 = vrot.slane %v1620_v43, 4  ;;  %v12249_v39 = vcombine.low %v9649_v12, %v9653_v33  ;;  %v1430_v45 = vrot.slane %v6563_v27, 5  ;;  %v1038_v5 = vshll.u32 %v9656_v23, 16  ;;  %v9878_v3 = vld [vmem:[%s8772_s23 + $0x40] sm:$0xf] }
  0xe3   : > { %3855 = vmatprep.mubr.bf16.mxu1 %v6801_v36  ;;  %v1635_v53 = vrot.slane %v1633_v15, 5  ;;  %v1631_v17 = vrot.slane %v1630_v19, 4  ;;  %v1027_v12 = vsel %vm8833_vm5, %v1022_v24, %v1026_v55  ;;  %v12251_v36 = vshrl.u32 %v9656_v23, 16  ;;  %v6643_v40 = vld [vmem:[%s8772_s23 + $0x44] sm:$0x1] }
  0xe4   : > { %7224 = vmatpush3.bf16.msra.mxu0 %v8348_v47  ;;  %3856 = vmatmul.mubr.bf16.gmra.mrb[52].mxu1 %v6785_v34  ;;  %v1427_v47 = vrot.slane %v9656_v23, 5  ;;  %v6786_v34 = vcombine.low %v9785_v37, %v9806_v13  ;;  %v12250_v37 = vcombine.low %v9613_v1, %v9656_v23  ;;  %v1626_v33 = vsel %vm8833_vm5, %v1621_v20, %v1625_v30  ;;  %v9913_v19 = vld [vmem:[%s8772_s23 + $0x44] sm:$0x1] }
  0xe5   : > { %7225 = vmatprep.subr.bf16.mxu0 %v8352_v51  ;;  %v6595_v51 = vrot.slane %v6579_v22, 9  ;;  %v1035_v13 = vor.u32 %v9672_v60, %v9666_v18  ;;  %v1044_v26 = vrot.slane %v12251_v36, 4  ;;  %v1636_v1 = vsel %vm8833_vm5, %v1631_v17, %v1635_v53  ;;  %v9931_v36 = vld [vmem:[%s8772_s23 + $0x3c] sm:$0xe] }
  0xe6   : > { %v1429_v54 = vrot.slane %v1427_v47, 4  ;;  %v1638_v30 = vshrl.u32 %v9871_v25, 16  ;;  %v6802_v15 = vcombine.low %v1626_v33, %v1636_v1  ;;  %v1048_v60 = vshll.u32 %v6563_v27, 16  ;;  %v8365_v27 = vld [vmem:[%s12166_s1 + $0x178] sm:$0xff]  }
  0xe7   : > { %3542 = vmatmul.mubr.bf16.gmra.mrb[72].mxu0 %v12249_v39  ;;  %v1641_v23 = vshll.u32 %v9871_v25, 16  ;;  %v1647_v18 = vshll.u32 %v9878_v3, 16  ;;  %v6770_v24 = vcombine.low %v9857_v48, %v9862_v29  ;;  %v1651_v22 = vshrl.u32 %v9878_v3, 16  ;;  %v10082_v48 = vld [vmem:[%s8772_s23 + $0x64] sm:$0xf] }
  0xe8   : > { %7226 = vmatpush3.bf16.msra.mxu0 %v8353_v62  ;;  %3549 = vmatprep.mubr.bf16.mxu0 %v12250_v37  ;;  %v9899_v62 = vrot.slane %v1038_v5, 5  ;;  %v1640_v43 = vrot.slane %v1638_v30, 4  ;;  %v9920_v53 = vsel %vm8805_vm4, %v6595_v51, %v1427_v47  ;;  %v1657_v17 = vshll.u32 %v6643_v40, 16  ;;  %v8381_v29 = vld [vmem:[%s12166_s1 + $0x220] sm:$0xff]  }
  0xe9   : > { %7227 = vmatprep.subr.bf16.mxu0 %v8356_v46  ;;  %v8362_v46 = vld [vmem:[%s12166_s1 + $0x130] sm:$0xff]   ;;  %3863 = vmatprep.mubr.bf16.mxu1 %v6802_v15  ;;  %v1643_v20 = vrot.slane %v1641_v23, 5  ;;  %v1649_v39 = vrot.slane %v1647_v18, 5  ;;  %v9922_v5 = vcombine.low %v1017_v41, %v1027_v12  ;;  %v9928_v37 = vrot.slane %v1035_v13, 4 }
  0xea   : > { %v1045_v55 = vor.u32 %v1044_v26, %v9899_v62  ;;  %v1653_v33 = vrot.slane %v1651_v22, 4  ;;  %v9933_v26 = vrot.slane %v1048_v60, 5  ;;  %v6787_v51 = vcombine.low %v9871_v25, %v9878_v3 }
  0xeb   : > { %12252 = vst [vmem:[#allocation34_spill] sm:$0xff] %v9922_v5  ;;  %v1644_v47 = vor.u32 %v1643_v20, %v1640_v43  ;;  %v1065_v41 = vsel %vm8833_vm5, %v9111_v49, %v9054_v63  ;;  %v1659_v25 = vrot.slane %v1657_v17, 5  ;;  %v1069_v3 = vor.u32 %v9057_v7, %v9054_v63  ;;  %v8369_v63 = vld [vmem:[%s12166_s1 + $0x200] sm:$0xff]   ;;  %v8372_v20 = vld [vmem:[%s12166_s1 + $0x208] sm:$0xff]  }
  0xec   : > { %7228 = vmatpush3.bf16.msra.mxu0 %v8357_v8  ;;  %3864 = vmatmul.mubr.bf16.gmra.mrb[56].mxu1 %v6786_v34  ;;  %v9926_v8 = vsel %vm8805_vm4, %v1429_v54, %v1430_v45  ;;  %v9942_v34 = vld [vmem:[%s8772_s23 + $0x48] sm:$0xf]  ;;  %v8366_v45 = vld [vmem:[%s12166_s1 + $0x138] sm:$0xff]   ;;  %v9950_v12 = vrot.slane %v1045_v55, 4  ;;  %v1654_v13 = vor.u32 %v1653_v33, %v1649_v39  ;;  %v6596_v61 = vrot.slane %v9931_v36, 9 }
  0xed   : > { %7229 = vmatprep.subr.bf16.mxu0 %v8361_v16  ;;  %v9955_v16 = vld [vmem:[%s8772_s23 + $0x4c] sm:$0xf]  ;;  %v1645_v49 = vrot.slane %v1644_v47, 4  ;;  %v1072_v1 = vshll.u32 %v9913_v19, 16  ;;  %v6644_v54 = vld [vmem:[%s8772_s23 + $0x50] sm:$0x1]  ;;  %v1041_v17 = vsel %vm8833_vm5, %v9928_v37, %v9899_v62 }
  0xee   : > { %v1655_v7 = vrot.slane %v1654_v13, 4  ;;  %v1437_v40 = vrot.slane %v9913_v19, 5  ;;  %v1070_v30 = vrot.slane %v1069_v3, 4  ;;  %v1662_v14 = vshrl.u32 %v9942_v34, 16  ;;  %v8479_v3 = vld [vmem:[%s8772_s23 + $0x4c] sm:$0xf] }
  0xef   : > { %3550 = vmatmul.mubr.bf16.gmra.mrb[76].mxu0 %v6723_v42  ;;  %v1436_v42 = vrot.slane %v12253_v2, 4  ;;  %v1650_v0 = vsel %vm8833_vm5, %v1645_v49, %v1649_v39  ;;  %v1665_v15 = vshll.u32 %v9942_v34, 16  ;;  %v1671_v60 = vshll.u32 %v9955_v16, 16  ;;  %v9997_v2 = vld [vmem:[%s8772_s23 + $0x54] sm:$0xf] }
  0xf0   : > { %7230 = vmatpush3.bf16.msra.mxu0 %v8362_v46  ;;  %3686 = vmatprep.mubr.bf16.mxu0 %v6768_v32  ;;  %v1074_v32 = vrot.slane %v1072_v1, 5  ;;  %v1660_v23 = vsel %vm8833_vm5, %v1655_v7, %v1659_v25  ;;  %v1664_v18 = vrot.slane %v1662_v14, 4  ;;  %v1675_v46 = vshrl.u32 %v9955_v16, 16  ;;  %v6581_v25 = vld [vmem:[%s8772_s23 + $0x48] sm:$0xe] }
  0xf1   : > { %7231 = vmatprep.subr.bf16.mxu0 %v8365_v27  ;;  %v1681_v55 = vshll.u32 %v6644_v54, 16  ;;  %v6803_v43 = vcombine.low %v1650_v0, %v1660_v23  ;;  %v1667_v19 = vrot.slane %v1665_v15, 5  ;;  %v1673_v27 = vrot.slane %v1671_v60, 5  ;;  %v6565_v37 = vld [vmem:[%s8772_s23 + $0x50] sm:$0x1] }
  0xf2   : > { %v1075_v22 = vsel %vm8833_vm5, %v1070_v30, %v1074_v32  ;;  %v6771_v39 = vcombine.low %v9920_v53, %v9926_v8  ;;  %v1677_v36 = vrot.slane %v1675_v46, 4  ;;  %v1051_v47 = vsel %vm8833_vm5, %v9950_v12, %v9933_v26  ;;  %v6645_v30 = vld [vmem:[%s8772_s23 + $0x5c] sm:$0x1] }
  0xf3   : > { %v9988_v33 = vcombine.low %v1065_v41, %v1075_v22  ;;  %3871 = vmatprep.mubr.bf16.mxu1 %v6803_v43  ;;  %v1683_v13 = vrot.slane %v1681_v55, 5  ;;  %v1441_v49 = vrot.slane %v8479_v3, 5  ;;  %v1083_v41 = vor.u32 %v9127_v9, %v9115_v59 }
  0xf4   : > { %7232 = vmatpush3.bf16.msra.mxu0 %v8366_v45  ;;  %v1668_v45 = vor.u32 %v1667_v19, %v1664_v18  ;;  %3872 = vmatmul.mubr.bf16.gmra.mrb[60].mxu1 %v6787_v51  ;;  %v1678_v62 = vor.u32 %v1677_v36, %v1673_v27  ;;  %v1086_v1 = vshll.u32 %v8479_v3, 16  ;;  %v12255_v26 = vshrl.u32 %v9039_v52, 16  ;;  %v8375_v52 = vld [vmem:[%s12166_s1 + $0x210] sm:$0xff]   ;;  %v8378_v19 = vld [vmem:[%s12166_s1 + $0x218] sm:$0xff]  }
  0xf5   : > { %7961 = vmatprep.subr.bf16.mxu0 %v8369_v63  ;;  %12254 = vst [vmem:[#allocation35_spill] sm:$0xff] %v9988_v33  ;;  %v12256_v54 = vrot.slane %v8988_v10, 5  ;;  %v10016_v7 = vsel %vm8805_vm4, %v1436_v42, %v1437_v40  ;;  %v6788_v9 = vcombine.low %v9942_v34, %v9955_v16  ;;  %v6597_v35 = vrot.slane %v6581_v25, 9 }
  0xf6   : > { %v1092_v12 = vrot.slane %v12255_v26, 4  ;;  %v1669_v59 = vrot.slane %v1668_v45, 4  ;;  %v1679_v31 = vrot.slane %v1678_v62, 4  ;;  %v10023_v10 = vrot.slane %v1086_v1, 5  ;;  %v6582_v62 = vld [vmem:[%s8772_s23 + $0x54] sm:$0xe] }
  0xf7   : > { %3687 = vmatmul.mubr.bf16.vlgmr.msra.gmra.mrb[80].mxu0 %v9775_v6  ;;  %v10012_v51 = vsel %vm8805_vm4, %v6596_v61, %v12256_v54  ;;  %v1686_v61 = vshrl.u32 %v9997_v2, 16  ;;  %v1096_v40 = vshll.u32 %v6565_v37, 16  ;;  %v1689_v14 = vshll.u32 %v9997_v2, 16  ;;  %v8480_v26 = vld [vmem:[%s8772_s23 + $0x58] sm:$0xf] }
  0xf8   : > { %7962 = vmatpush3.bf16.msra.mxu0 %v8369_v63  ;;  %3694 = vmatprep.mubr.bf16.mxu0 %v6769_v21  ;;  %v10026_v21 = vld [vmem:[%s8772_s23 + $0x58] sm:$0xf]  ;;  %v1674_v42 = vsel %vm8833_vm5, %v1669_v59, %v1673_v27  ;;  %v1444_v63 = vrot.slane %v6565_v37, 5  ;;  %v1684_v34 = vsel %vm8833_vm5, %v1679_v31, %v1683_v13  ;;  %v1443_v16 = vrot.slane %v1441_v49, 4  ;;  %v10069_v37 = vld [vmem:[%s8772_s23 + $0x60] sm:$0xf] }
  0xf9   : > { %7963 = vmatprep.subr.bf16.mxu0 %v8372_v20  ;;  %v10035_v0 = vrot.slane %v1083_v41, 4  ;;  %v1093_v32 = vor.u32 %v1092_v12, %v10023_v10  ;;  %v6804_v15 = vcombine.low %v1674_v42, %v1684_v34  ;;  %v1688_v60 = vrot.slane %v1686_v61, 4  ;;  %v6646_v42 = vld [vmem:[%s8772_s23 + $0x68] sm:$0x1]  ;;  %v8490_v6 = vld [vmem:[%s8772_s23 + $0x1c] sm:$0xf] }
  0xfa   : > { %v1691_v23 = vrot.slane %v1689_v14, 5  ;;  %v1695_v18 = vshll.u32 %v10026_v21, 16  ;;  %v10039_v46 = vcombine.low %v1041_v17, %v1051_v47  ;;  %v6772_v55 = vcombine.low %v10012_v51, %v10016_v7  ;;  %v10052_v47 = vld [vmem:[%s8772_s23 + $0x5c] sm:$0x1]  ;;  %v6568_v7 = vld [vmem:[%s8772_s23 + $0x74] sm:$0x1] }
  0xfb   : > { %v1699_v43 = vshrl.u32 %v10026_v21, 16  ;;  %v1705_v22 = vshll.u32 %v6645_v30, 16  ;;  %3879 = vmatprep.mubr.bf16.mxu1 %v6804_v15  ;;  %v10047_v27 = vrot.slane %v1093_v32, 4  ;;  %v10057_v45 = vsel %vm8805_vm4, %v6597_v35, %v1441_v49 }
  0xfc   : > { %7964 = vmatpush3.bf16.msra.mxu0 %v8372_v20  ;;  %12257 = vst [vmem:[#allocation36_spill] sm:$0xff] %v10039_v46  ;;  %v10049_v20 = vrot.slane %v1096_v40, 5  ;;  %v1692_v17 = vor.u32 %v1691_v23, %v1688_v60  ;;  %v1697_v36 = vrot.slane %v1695_v18, 5  ;;  %3880 = vmatmul.mubr.bf16.gmra.mrb[64].mxu1 %v6788_v9  ;;  %v10061_v13 = vsel %vm8805_vm4, %v1443_v16, %v1444_v63  ;;  %v6583_v60 = vld [vmem:[%s8772_s23 + $0x60] sm:$0xe] }
  0xfd   : > { %7965 = vmatprep.subr.bf16.mxu0 %v8375_v52  ;;  %v1089_v25 = vsel %vm8833_vm5, %v10035_v0, %v10023_v10  ;;  %v1701_v3 = vrot.slane %v1699_v43, 4  ;;  %v1707_v41 = vrot.slane %v1705_v22, 5  ;;  %v6789_v1 = vcombine.low %v9997_v2, %v10026_v21  ;;  %v8482_v10 = vld [vmem:[%s8772_s23 + $0x70] sm:$0xf] }
  0xfe   : > { %v1693_v49 = vrot.slane %v1692_v17, 4  ;;  %v1448_v12 = vrot.slane %v8480_v26, 5  ;;  %v1107_v59 = vor.u32 %v9216_v11, %v9182_v4  ;;  %v1110_v9 = vshll.u32 %v8480_v26, 16  ;;  %v10109_v17 = vld [vmem:[%s8772_s23 + $0x68] sm:$0x1] }
  0xff   : > { %3695 = vmatmul.mubr.bf16.gmra.mrb[84].mxu0 %v9851_v58  ;;  %v1702_v54 = vor.u32 %v1701_v3, %v1697_v36  ;;  %v12258_v31 = vshrl.u32 %v9094_v44, 16  ;;  %v6598_v2 = vrot.slane %v6582_v62, 9  ;;  %v1710_v4 = vshrl.u32 %v10069_v37, 16 }
 0x100   : > { %3702 = vmatprep.mubr.bf16.mxu0 %v6770_v24  ;;  %7966 = vmatpush3.bf16.msra.mxu0 %v8375_v52  ;;  %v1099_v24 = vsel %vm8833_vm5, %v10047_v27, %v10049_v20  ;;  %v1451_v52 = vrot.slane %v10052_v47, 5  ;;  %v1698_v44 = vsel %vm8833_vm5, %v1693_v49, %v1697_v36  ;;  %v10095_v21 = vrot.slane %v1110_v9, 5 }
 0x101   : > { %v1116_v35 = vrot.slane %v12258_v31, 4  ;;  %7967 = vmatprep.subr.bf16.mxu0 %v8378_v19  ;;  %v1703_v11 = vrot.slane %v1702_v54, 4  ;;  %v1120_v61 = vshll.u32 %v10052_v47, 16  ;;  %v1450_v63 = vrot.slane %v1448_v12, 4  ;;  %v8481_v54 = vld [vmem:[%s8772_s23 + $0x64] sm:$0xf] }
 0x102   : > { %v1712_v40 = vrot.slane %v1710_v4, 4  ;;  %v1713_v30 = vshll.u32 %v10069_v37, 16  ;;  %v1719_v14 = vshll.u32 %v10082_v48, 16  ;;  %v10103_v16 = vrot.slane %v1107_v59, 4 }
 0x103   : > { %v1708_v34 = vsel %vm8833_vm5, %v1703_v11, %v1707_v41  ;;  %v1117_v32 = vor.u32 %v1116_v35, %v10095_v21  ;;  %v1723_v15 = vshrl.u32 %v10082_v48, 16  ;;  %v1729_v22 = vshll.u32 %v6646_v42, 16  ;;  %v10155_v42 = vld [vmem:[%s8772_s23 + $0x70] sm:$0xf] }
 0x104   : > { %7968 = vmatpush3.bf16.msra.mxu0 %v8378_v19  ;;  %v6805_v23 = vcombine.low %v1698_v44, %v1708_v34  ;;  %v1715_v18 = vrot.slane %v1713_v30, 5  ;;  %v1721_v43 = vrot.slane %v1719_v14, 5  ;;  %v8384_v19 = vld [vmem:[%s12166_s1 + $0x228] sm:$0xff]   ;;  %v10117_v36 = vsel %vm8805_vm4, %v6598_v2, %v1448_v12 }
 0x105   : > { %7969 = vmatprep.subr.bf16.mxu0 %v8381_v29  ;;  %v1118_v47 = vrot.slane %v1117_v32, 4  ;;  %v1122_v3 = vrot.slane %v1120_v61, 5  ;;  %v1725_v62 = vrot.slane %v1723_v15, 4  ;;  %v1731_v41 = vrot.slane %v1729_v22, 5  ;;  %v10127_v2 = vld [vmem:[%s8772_s23 + $0x6c] sm:$0xf] }
 0x106   : > { %3887 = vmatprep.mubr.bf16.mxu1 %v6805_v23  ;;  %v1716_v49 = vor.u32 %v1715_v18, %v1712_v40  ;;  %v6599_v26 = vrot.slane %v6583_v60, 9  ;;  %v1455_v59 = vrot.slane %v8481_v54, 5  ;;  %v1458_v31 = vrot.slane %v10109_v17, 5  ;;  %v8390_v15 = vld [vmem:[%s12166_s1 + $0x238] sm:$0xff]  }
 0x107   : > { %3703 = vmatmul.mubr.bf16.gmra.mrb[88].mxu0 %v9922_v5  ;;  %3888 = vmatmul.mubr.bf16.gmra.mrb[68].mxu1 %v6789_v1  ;;  %v1726_v9 = vor.u32 %v1725_v62, %v1721_v43  ;;  %v1131_v12 = vor.u32 %v9234_v57, %v9232_v56  ;;  %v1134_v35 = vshll.u32 %v8481_v54, 16  ;;  %v10131_v53 = vsel %vm8805_vm4, %v1450_v63, %v1451_v52  ;;  %v8387_v56 = vld [vmem:[%s12166_s1 + $0x230] sm:$0xff]   ;;  %v12305_v5 = vld [vmem:[#allocation31_spill] sm:$0xff] }
 0x108   : > { %3710 = vmatprep.mubr.bf16.mxu0 %v6771_v39  ;;  %7970 = vmatpush3.bf16.msra.mxu0 %v8381_v29  ;;  %v1113_v8 = vsel %vm8833_vm5, %v10103_v16, %v10095_v21  ;;  %v1717_v39 = vrot.slane %v1716_v49, 4  ;;  %v1457_v1 = vrot.slane %v1455_v59, 4  ;;  %v6790_v29 = vcombine.low %v10069_v37, %v10082_v48  ;;  %v6647_v63 = vld [vmem:[%s8772_s23 + $0x74] sm:$0x1] }
 0x109   : > { %7971 = vmatprep.subr.bf16.mxu0 %v8384_v19  ;;  %v1727_v57 = vrot.slane %v1726_v9, 4  ;;  %v10142_v4 = vrot.slane %v1134_v35, 5  ;;  %v12259_v52 = vshrl.u32 %v9157_v50, 16  ;;  %v1123_v11 = vsel %vm8833_vm5, %v1118_v47, %v1122_v3  ;;  %v10216_v9 = vld [vmem:[%s8772_s23 + $0x7c] sm:$0xf] }
 0x10a   : > { %v1722_v21 = vsel %vm8833_vm5, %v1717_v39, %v1721_v43  ;;  %v10152_v61 = vsel %vm8805_vm4, %v6599_v26, %v1455_v59  ;;  %v1734_v37 = vshrl.u32 %v10127_v2, 16  ;;  %v10163_v50 = vsel %vm8805_vm4, %v1457_v1, %v1458_v31  ;;  %v12263_v26 = vld [vmem:[#allocation12_spill] sm:$0xff] }
 0x10b   : > { %v1140_v44 = vrot.slane %v12259_v52, 4  ;;  %v1732_v48 = vsel %vm8833_vm5, %v1727_v57, %v1731_v41  ;;  %v10165_v40 = vrot.slane %v1131_v12, 4  ;;  %v1144_v30 = vshll.u32 %v10109_v17, 16  ;;  %v12262_v41 = vld [vmem:[#allocation10_spill] sm:$0xff]  ;;  %v6648_v31 = vld [vmem:[%s8772_s23 + $0x80] sm:$0x1] }
 0x10c   : > { %7972 = vmatpush3.bf16.msra.mxu0 %v8384_v19  ;;  %v6806_v14 = vcombine.low %v1722_v21, %v1732_v48  ;;  %v1736_v16 = vrot.slane %v1734_v37, 4  ;;  %v1737_v32 = vshll.u32 %v10127_v2, 16  ;;  %v6773_v60 = vcombine.low %v10057_v45, %v10061_v13 }
 0x10d   : > { %v1141_v34 = vor.u32 %v1140_v44, %v10142_v4  ;;  %7973 = vmatprep.subr.bf16.mxu0 %v8387_v56  ;;  %v1743_v23 = vshll.u32 %v10155_v42, 16  ;;  %v1747_v18 = vshrl.u32 %v10155_v42, 16  ;;  %v1753_v43 = vshll.u32 %v6647_v63, 16 }
 0x10e   : > { %v10191_v45 = vcombine.low %v1089_v25, %v1099_v24  ;;  %v6774_v13 = vcombine.low %v10117_v36, %v10131_v53  ;;  %v10195_v22 = vcombine.low %v1113_v8, %v1123_v11  ;;  %3895 = vmatprep.mubr.bf16.mxu1 %v6806_v14  ;;  %v1739_v51 = vrot.slane %v1737_v32, 5  ;;  %v10203_v25 = vld [vmem:[%s8772_s23 + $0x78] sm:$0xf]  ;;  %v12264_v8 = vld [vmem:[#allocation8_spill] sm:$0xff] }
 0x10f   : > { %3711 = vmatmul.mubr.bf16.gmra.mrb[92].mxu0 %v10039_v46  ;;  %3896 = vmatmul.mubr.bf16.gmra.mrb[72].mxu1 %v6790_v29  ;;  %v6775_v27 = vcombine.low %v10152_v61, %v10163_v50  ;;  %v1745_v20 = vrot.slane %v1743_v23, 5  ;;  %v1749_v17 = vrot.slane %v1747_v18, 4  ;;  %v1462_v0 = vrot.slane %v8482_v10, 5  ;;  %v12304_v46 = vld [vmem:[#allocation30_spill] sm:$0xff] }
 0x110   : > { %3718 = vmatprep.mubr.bf16.mxu0 %v6772_v55  ;;  %12260 = vst [vmem:[#allocation37_spill] sm:$0xff] %v10191_v45  ;;  %12261 = vst [vmem:[#allocation38_spill] sm:$0xff] %v10195_v22  ;;  %v6584_v55 = vld [vmem:[%s8772_s23 + $0x6c] sm:$0xe]  ;;  %7974 = vmatpush3.bf16.msra.mxu0 %v8387_v56  ;;  %v1137_v24 = vsel %vm8833_vm5, %v10165_v40, %v10142_v4  ;;  %v10209_v19 = vrot.slane %v1141_v34, 4  ;;  %v10211_v47 = vrot.slane %v1144_v30, 5 }
 0x111   : > { %v1740_v3 = vor.u32 %v1739_v51, %v1736_v16  ;;  %7975 = vmatprep.subr.bf16.mxu0 %v8390_v15  ;;  %v1750_v62 = vor.u32 %v1749_v17, %v1745_v20  ;;  %v1755_v49 = vrot.slane %v1753_v43, 5  ;;  %v1155_v54 = vor.u32 %v12263_v26, %v12262_v41  ;;  %v6569_v51 = vld [vmem:[%s8772_s23 + $0x80] sm:$0x1]  ;;  %v10262_v26 = vld [vmem:[%s8772_s23 + $0x88] sm:$0xf]  ;;  %v12274_v4 = vld [vmem:[#allocation11_spill] sm:$0xff] }
 0x112   : > { %v1158_v59 = vshll.u32 %v8482_v10, 16  ;;  %v6600_v35 = vrot.slane %v6584_v55, 9  ;;  %v12265_v39 = vshrl.u32 %v12264_v8, 16  ;;  %v1758_v56 = vshrl.u32 %v10203_v25, 16  ;;  %v8483_v10 = vld [vmem:[%s8772_s23 + $0x7c] sm:$0xf] }
 0x113   : > { %v1741_v12 = vrot.slane %v1740_v3, 4  ;;  %v1751_v57 = vrot.slane %v1750_v62, 4  ;;  %v1464_v29 = vrot.slane %v1462_v0, 4  ;;  %v1465_v52 = vrot.slane %v6568_v7, 5  ;;  %v12266_v8 = vld [vmem:[#allocation13_spill] sm:$0xff] }
 0x114   : > { %v1164_v1 = vrot.slane %v12265_v39, 4  ;;  %v10222_v44 = vrot.slane %v1158_v59, 5  ;;  %7976 = vmatpush3.bf16.msra.mxu0 %v8390_v15  ;;  %v6791_v21 = vcombine.low %v10127_v2, %v10155_v42  ;;  %v10228_v63 = vrot.slane %v1155_v54, 4  ;;  %v6585_v15 = vld [vmem:[%s8772_s23 + $0x78] sm:$0xe]  ;;  %v12267_v39 = vld [vmem:[#allocation14_spill] sm:$0xff] }
 0x115   : > { %v1746_v11 = vsel %vm8833_vm5, %v1741_v12, %v1745_v20  ;;  %v1168_v37 = vshll.u32 %v6568_v7, 16  ;;  %v1756_v48 = vsel %vm8833_vm5, %v1751_v57, %v1755_v49  ;;  %v1760_v14 = vrot.slane %v1758_v56, 4  ;;  %v10252_v7 = vld [vmem:[%s8772_s23 + $0x84] sm:$0xf]  ;;  %v12268_v57 = vld [vmem:[#allocation9_spill] sm:$0xff] }
 0x116   : > { %v1165_v30 = vor.u32 %v1164_v1, %v10222_v44  ;;  %v1761_v34 = vshll.u32 %v10203_v25, 16  ;;  %v6807_v16 = vcombine.low %v1746_v11, %v1756_v48  ;;  %v1767_v2 = vshll.u32 %v10216_v9, 16 }
 0x117   : > { %3719 = vmatmul.mubr.bf16.gmra.mrb[96].mxu0 %v9988_v33  ;;  %v1771_v42 = vshrl.u32 %v10216_v9, 16  ;;  %v1777_v32 = vshll.u32 %v6648_v31, 16  ;;  %v1147_v23 = vsel %vm8833_vm5, %v10209_v19, %v10211_v47  ;;  %v10244_v18 = vsel %vm8805_vm4, %v6600_v35, %v1462_v0 }
 0x118   : > { %3726 = vmatprep.mubr.bf16.mxu0 %v6773_v60  ;;  %v10248_v60 = vsel %vm8805_vm4, %v1464_v29, %v1465_v52  ;;  %v1763_v43 = vrot.slane %v1761_v34, 5  ;;  %3903 = vmatprep.mubr.bf16.mxu1 %v6807_v16  ;;  %v10254_v55 = vrot.slane %v1168_v37, 5  ;;  %v1769_v20 = vrot.slane %v1767_v2, 5 }
 0x119   : > { %v1773_v17 = vrot.slane %v1771_v42, 4  ;;  %v1469_v3 = vrot.slane %v8483_v10, 5  ;;  %3904 = vmatmul.mubr.bf16.gmra.mrb[76].mxu1 %v6791_v21  ;;  %v1161_v0 = vsel %vm8833_vm5, %v10228_v63, %v10222_v44  ;;  %v1166_v62 = vrot.slane %v1165_v30, 4  ;;  %v6649_v44 = vld [vmem:[%s8772_s23 + $0x8c] sm:$0x1] }
 0x11a   : > { %v1764_v49 = vor.u32 %v1763_v43, %v1760_v14  ;;  %v6601_v41 = vrot.slane %v6585_v15, 9  ;;  %v1779_v59 = vrot.slane %v1777_v32, 5  ;;  %v6792_v31 = vcombine.low %v10203_v25, %v10216_v9  ;;  %v10292_v42 = vld [vmem:[%s8772_s23 + $0x8c] sm:$0x1] }
 0x11b   : > { %v1774_v54 = vor.u32 %v1773_v17, %v1769_v20  ;;  %v1472_v12 = vrot.slane %v6569_v51, 5  ;;  %v1179_v1 = vor.u32 %v12267_v39, %v12266_v8  ;;  %v1182_v56 = vshll.u32 %v8483_v10, 16  ;;  %v12271_v8 = vld [vmem:[#allocation18_spill] sm:$0xff] }
 0x11c   : > { %v1765_v35 = vrot.slane %v1764_v49, 4  ;;  %v12269_v29 = vshrl.u32 %v12268_v57, 16  ;;  %v1471_v21 = vrot.slane %v1469_v3, 4  ;;  %v1192_v63 = vshll.u32 %v6569_v51, 16 }
 0x11d   : > { %v1775_v11 = vrot.slane %v1774_v54, 4  ;;  %v1782_v37 = vshrl.u32 %v10252_v7, 16  ;;  %v1171_v25 = vsel %vm8833_vm5, %v1166_v62, %v10254_v55  ;;  %v10278_v48 = vrot.slane %v1182_v56, 5  ;;  %v8484_v62 = vld [vmem:[%s8772_s23 + $0x88] sm:$0xf] }
 0x11e   : > { %v1188_v52 = vrot.slane %v12269_v29, 4  ;;  %v1770_v9 = vsel %vm8833_vm5, %v1765_v35, %v1769_v20  ;;  %v1785_v30 = vshll.u32 %v10252_v7, 16  ;;  %v10288_v34 = vsel %vm8805_vm4, %v6601_v41, %v1469_v3  ;;  %v10311_v41 = vld [vmem:[%s8772_s23 + $0x90] sm:$0xf]  ;;  %v12270_v35 = vld [vmem:[#allocation16_spill] sm:$0xff] }
 0x11f   : > { %3727 = vmatmul.mubr.bf16.gmra.mrb[100].mxu0 %v10191_v45  ;;  %v1780_v14 = vsel %vm8833_vm5, %v1775_v11, %v1779_v59  ;;  %v1784_v16 = vrot.slane %v1782_v37, 4  ;;  %v1791_v2 = vshll.u32 %v10262_v26, 16  ;;  %v10294_v15 = vrot.slane %v1179_v1, 4  ;;  %v10317_v1 = vld [vmem:[%s8772_s23 + $0x94] sm:$0xf] }
 0x120   : > { %3734 = vmatprep.mubr.bf16.mxu0 %v6774_v13  ;;  %v6808_v32 = vcombine.low %v1770_v9, %v1780_v14  ;;  %v1189_v36 = vor.u32 %v1188_v52, %v10278_v48  ;;  %v1787_v53 = vrot.slane %v1785_v30, 5  ;;  %v10298_v13 = vld [vmem:[%s8772_s23 + $0x84] sm:$0xe]  ;;  %v10302_v43 = vsel %vm8805_vm4, %v1471_v21, %v1472_v12 }
 0x121   : > { %v1793_v51 = vrot.slane %v1791_v2, 5  ;;  %v1795_v55 = vshrl.u32 %v10262_v26, 16  ;;  %v1801_v20 = vshll.u32 %v6649_v44, 16  ;;  %v10307_v10 = vrot.slane %v1192_v63, 5 }
 0x122   : > { %3911 = vmatprep.mubr.bf16.mxu1 %v6808_v32  ;;  %v10305_v17 = vrot.slane %v1189_v36, 4  ;;  %v1788_v3 = vor.u32 %v1787_v53, %v1784_v16  ;;  %v1476_v49 = vrot.slane %v8484_v62, 5  ;;  %v6602_v12 = vrot.slane %v10298_v13, 9  ;;  %v10362_v13 = vld [vmem:[%s8772_s23 + $0x90] sm:$0xe] }
 0x123   : > { %3912 = vmatmul.mubr.bf16.gmra.mrb[80].mxu1 %v6792_v31  ;;  %v1797_v54 = vrot.slane %v1795_v55, 4  ;;  %v1803_v59 = vrot.slane %v1801_v20, 5  ;;  %v1203_v39 = vor.u32 %v12271_v8, %v12270_v35  ;;  %v10329_v31 = vcombine.low %v1137_v24, %v1147_v23  ;;  %v6650_v23 = vld [vmem:[%s8772_s23 + $0x98] sm:$0x1] }
 0x124   : > { %v1789_v56 = vrot.slane %v1788_v3, 4  ;;  %v1479_v57 = vrot.slane %v10292_v42, 5  ;;  %v6776_v29 = vcombine.low %v10244_v18, %v10248_v60  ;;  %v1478_v44 = vrot.slane %v1476_v49, 4  ;;  %v10375_v3 = vld [vmem:[%s8772_s23 + $0x98] sm:$0x1] }
 0x125   : > { %12272 = vst [vmem:[#allocation10_spill] sm:$0xff] %v10329_v31  ;;  %v1798_v52 = vor.u32 %v1797_v54, %v1793_v51  ;;  %v1206_v11 = vshll.u32 %v8484_v62, 16  ;;  %v10335_v21 = vcombine.low %v1161_v0, %v1171_v25  ;;  %v6777_v19 = vcombine.low %v10288_v34, %v10302_v43  ;;  %v10378_v62 = vld [vmem:[%s8772_s23 + $0x9c] sm:$0xf] }
 0x126   : > { %v10339_v47 = vrot.slane %v1203_v39, 4  ;;  %v12275_v40 = vshrl.u32 %v12274_v4, 16  ;;  %v1794_v18 = vsel %vm8833_vm5, %v1789_v56, %v1793_v51  ;;  %v1806_v0 = vshrl.u32 %v10311_v41, 16 }
 0x127   : > { %3735 = vmatmul.mubr.bf16.gmra.mrb[104].mxu0 %v10195_v22  ;;  %12273 = vst [vmem:[#allocation12_spill] sm:$0xff] %v10335_v21  ;;  %v1799_v60 = vrot.slane %v1798_v52, 4  ;;  %v10349_v63 = vrot.slane %v1206_v11, 5  ;;  %v1216_v37 = vshll.u32 %v10292_v42, 16  ;;  %v1809_v25 = vshll.u32 %v10311_v41, 16 }
 0x128   : > { %v1212_v24 = vrot.slane %v12275_v40, 4  ;;  %3742 = vmatprep.mubr.bf16.mxu0 %v6775_v27  ;;  %v1815_v9 = vshll.u32 %v10317_v1, 16  ;;  %v1819_v30 = vshrl.u32 %v10317_v1, 16  ;;  %v6793_v50 = vcombine.low %v10252_v7, %v10262_v26 }
 0x129   : > { %v1804_v61 = vsel %vm8833_vm5, %v1799_v60, %v1803_v59  ;;  %v1808_v16 = vrot.slane %v1806_v0, 4  ;;  %v1811_v32 = vrot.slane %v1809_v25, 5  ;;  %v1185_v20 = vsel %vm8833_vm5, %v10294_v15, %v10278_v48  ;;  %v10402_v0 = vld [vmem:[%s8772_s23 + $0xa0] sm:$0xf]  ;;  %v12278_v25 = vld [vmem:[#allocation19_spill] sm:$0xff] }
 0x12a   : > { %v7009_v14 = vpop.f32.mrb[0].mxu0  ;;  %v1213_v27 = vor.u32 %v1212_v24, %v10349_v63  ;;  %v6809_v42 = vcombine.low %v1794_v18, %v1804_v61  ;;  %v1817_v36 = vrot.slane %v1815_v9, 5  ;;  %v1821_v53 = vrot.slane %v1819_v30, 4  ;;  %v12279_v9 = vld [vmem:[#allocation20_spill] sm:$0xff] }
 0x12b   : > { %v7010_v2 = vpop.f32.mrb[1].mxu0  ;;  %v1195_v7 = vsel %vm8833_vm5, %v10305_v17, %v10307_v10  ;;  %v1825_v26 = vshll.u32 %v6650_v23, 16  ;;  %v1218_v35 = vrot.slane %v1216_v37, 5  ;;  %v1812_v8 = vor.u32 %v1811_v32, %v1808_v16  ;;  %v8485_v17 = vld [vmem:[%s8772_s23 + $0x94] sm:$0xf]  ;;  %v12276_v23 = vld [vmem:[#allocation15_spill] sm:$0xff] }
 0x12c   : > { %v10364_v51 = vadd.f32 %v7010_v2, %v7009_v14  ;;  %v7012_v55 = vpop.f32.mrb[2].mxu0  ;;  %3919 = vmatprep.mubr.bf16.mxu1 %v6809_v42  ;;  %v1214_v59 = vrot.slane %v1213_v27, 4  ;;  %v1822_v39 = vor.u32 %v1821_v53, %v1817_v36  ;;  %v10384_v48 = vsel %vm8805_vm4, %v6602_v12, %v1476_v49 }
 0x12d   : > { %v7013_v54 = vpop.f32.mrb[3].mxu0  ;;  %3920 = vmatmul.mubr.bf16.gmra.mrb[84].mxu1 %v6793_v50  ;;  %v1827_v15 = vrot.slane %v1825_v26, 5  ;;  %v1483_v10 = vrot.slane %v8485_v17, 5  ;;  %v10390_v52 = vsel %vm8805_vm4, %v1478_v44, %v1479_v57  ;;  %v1209_v11 = vsel %vm8833_vm5, %v10339_v47, %v10349_v63 }
 0x12e   : > { %v10380_v56 = vadd.f32 %v7013_v54, %v7012_v55  ;;  %v1813_v4 = vrot.slane %v1812_v8, 4  ;;  %v1823_v40 = vrot.slane %v1822_v39, 4  ;;  %v6794_v49 = vcombine.low %v10311_v41, %v10317_v1  ;;  %v6588_v8 = vld [vmem:[%s8772_s23 + $0x9c] sm:$0xe] }
 0x12f   : > { %3743 = vmatmul.mubr.bf16.gmra.mrb[108].mxu0 %v10329_v31  ;;  %v6603_v12 = vrot.slane %v10362_v13, 9  ;;  %v1230_v24 = vshll.u32 %v8485_v17, 16  ;;  %v12277_v18 = vshrl.u32 %v12276_v23, 16  ;;  %v1486_v47 = vrot.slane %v10375_v3, 5  ;;  %v10435_v17 = vld [vmem:[%s8772_s23 + $0xa8] sm:$0xf] }
 0x130   : > { %3750 = vmatprep.mubr.bf16.mxu0 %v6776_v29  ;;  %v1818_v57 = vsel %vm8833_vm5, %v1813_v4, %v1817_v36  ;;  %v1828_v44 = vsel %vm8833_vm5, %v1823_v40, %v1827_v15  ;;  %v6651_v29 = vld [vmem:[%s8772_s23 + $0xa4] sm:$0x1]  ;;  %v1830_v63 = vshrl.u32 %v10378_v62, 16  ;;  %v1485_v37 = vrot.slane %v1483_v10, 4  ;;  %v8486_v40 = vld [vmem:[%s8772_s23 + $0xa0] sm:$0xf] }
 0x131   : > { %v1236_v60 = vrot.slane %v12277_v18, 4  ;;  %v6810_v1 = vcombine.low %v1818_v57, %v1828_v44  ;;  %v1227_v30 = vor.u32 %v12279_v9, %v12278_v25  ;;  %v10413_v14 = vrot.slane %v1230_v24, 5  ;;  %v12285_v25 = vld [vmem:[#allocation17_spill] sm:$0xff]  ;;  %v8489_v31 = vld [vmem:[%s8772_s23 + $0xc4] sm:$0xf] }
 0x132   : > { %v7015_v41 = vpop.f32.mrb[4].mxu0  ;;  %v1219_v50 = vsel %vm8833_vm5, %v1214_v59, %v1218_v35  ;;  %v1240_v27 = vshll.u32 %v10375_v3, 16  ;;  %v1832_v16 = vrot.slane %v1830_v63, 4  ;;  %v1833_v2 = vshll.u32 %v10378_v62, 16  ;;  %v6572_v35 = vld [vmem:[%s8772_s23 + $0xa4] sm:$0x1] }
 0x133   : > { %v7016_v61 = vpop.f32.mrb[5].mxu0  ;;  %v10421_v36 = vcombine.low %v1185_v20, %v1195_v7  ;;  %3927 = vmatprep.mubr.bf16.mxu1 %v6810_v1  ;;  %v1237_v53 = vor.u32 %v1236_v60, %v10413_v14  ;;  %v1839_v13 = vshll.u32 %v10402_v0, 16  ;;  %v6778_v26 = vcombine.low %v10384_v48, %v10390_v52  ;;  %v12284_v63 = vld [vmem:[#allocation24_spill] sm:$0xff]  ;;  %v10457_v9 = vld [vmem:[%s8772_s23 + $0xac] sm:$0xf] }
 0x134   : > { %v10419_v42 = vadd.f32 %v7016_v61, %v7015_v41  ;;  %v7018_v32 = vpop.f32.mrb[6].mxu0  ;;  %v1835_v3 = vrot.slane %v1833_v2, 5  ;;  %v1843_v54 = vshrl.u32 %v10402_v0, 16  ;;  %v1849_v59 = vshll.u32 %v6651_v29, 16  ;;  %v12283_v29 = vld [vmem:[#allocation23_spill] sm:$0xff] }
 0x135   : > { %12280 = vst [vmem:[#allocation8_spill] sm:$0xff] %v10421_v36  ;;  %v7019_v55 = vpop.f32.mrb[7].mxu0  ;;  %v10432_v20 = vcombine.low %v1209_v11, %v1219_v50  ;;  %3928 = vmatmul.mubr.bf16.gmra.mrb[88].mxu1 %v6794_v49  ;;  %v1228_v7 = vrot.slane %v1227_v30, 4  ;;  %v1841_v15 = vrot.slane %v1839_v13, 5  ;;  %v1242_v4 = vrot.slane %v1240_v27, 5 }
 0x136   : > { %v10430_v39 = vadd.f32 %v7019_v55, %v7018_v32  ;;  %v1836_v48 = vor.u32 %v1835_v3, %v1832_v16  ;;  %v1845_v52 = vrot.slane %v1843_v54, 4  ;;  %v1490_v24 = vrot.slane %v8486_v40, 5 }
 0x137   : > { %12282 = vst [vmem:[#allocation14_spill] sm:$0xff] %v10432_v20  ;;  %3751 = vmatmul.mubr.bf16.gmra.mrb[112].mxu0 %v10335_v21  ;;  %v10444_v11 = vsel %vm8805_vm4, %v6603_v12, %v1483_v10  ;;  %v10448_v49 = vsel %vm8805_vm4, %v1485_v37, %v1486_v47  ;;  %v1238_v23 = vrot.slane %v1237_v53, 4  ;;  %v1254_v18 = vshll.u32 %v8486_v40, 16  ;;  %v10460_v47 = vld [vmem:[%s8772_s23 + $0xb0] sm:$0x1] }
 0x138   : > { %12281 = vst [vmem:[#allocation13_spill] sm:$0xff] %v10430_v39  ;;  %3758 = vmatprep.mubr.bf16.mxu0 %v6777_v19  ;;  %v1837_v60 = vrot.slane %v1836_v48, 4  ;;  %v1846_v57 = vor.u32 %v1845_v52, %v1841_v15  ;;  %v1851_v44 = vrot.slane %v1849_v59, 5  ;;  %v1251_v41 = vor.u32 %v12284_v63, %v12283_v29  ;;  %v6589_v29 = vld [vmem:[%s8772_s23 + $0xa8] sm:$0xe] }
 0x139   : > { %v6604_v34 = vrot.slane %v6588_v8, 9  ;;  %v1493_v43 = vrot.slane %v6572_v35, 5  ;;  %v10452_v19 = vrot.slane %v1254_v18, 5  ;;  %v12286_v10 = vshrl.u32 %v12285_v25, 16  ;;  %v8487_v25 = vld [vmem:[%s8772_s23 + $0xac] sm:$0xf] }
 0x13a   : > { %v7021_v1 = vpop.f32.mrb[8].mxu0  ;;  %v1842_v30 = vsel %vm8833_vm5, %v1837_v60, %v1841_v15  ;;  %v1847_v61 = vrot.slane %v1846_v57, 4  ;;  %v1492_v50 = vrot.slane %v1490_v24, 4  ;;  %v1854_v27 = vshrl.u32 %v10435_v17, 16 }
 0x13b   : > { %v1260_v12 = vrot.slane %v12286_v10, 4  ;;  %v7022_v37 = vpop.f32.mrb[9].mxu0  ;;  %v1233_v32 = vsel %vm8833_vm5, %v1228_v7, %v10413_v14  ;;  %v6795_v53 = vcombine.low %v10378_v62, %v10402_v0  ;;  %v1264_v13 = vshll.u32 %v6572_v35, 16 }
 0x13c   : > { %v10465_v16 = vadd.f32 %v7022_v37, %v7021_v1  ;;  %v7024_v2 = vpop.f32.mrb[10].mxu0  ;;  %v1243_v3 = vsel %vm8833_vm5, %v1238_v23, %v1242_v4  ;;  %v1852_v54 = vsel %vm8833_vm5, %v1847_v61, %v1851_v44  ;;  %v10476_v59 = vrot.slane %v1251_v41, 4  ;;  %v7145_v4 = vpop.f32.mrb[0].mxu1 }
 0x13d   : > { %v7025_v55 = vpop.f32.mrb[11].mxu0  ;;  %v1261_v8 = vor.u32 %v1260_v12, %v10452_v19  ;;  %v6811_v48 = vcombine.low %v1842_v30, %v1852_v54  ;;  %v1856_v52 = vrot.slane %v1854_v27, 4  ;;  %v1857_v14 = vshll.u32 %v10435_v17, 16  ;;  %v7146_v18 = vpop.f32.mrb[1].mxu1  ;;  %v10508_v12 = vld [vmem:[%s8772_s23 + $0xb4] sm:$0xf] }
 0x13e   : > { %12287 = vst [vmem:[#allocation9_spill] sm:$0xff] %v10465_v16  ;;  %v10479_v15 = vadd.f32 %v7025_v55, %v7024_v2  ;;  %v6779_v62 = vcombine.low %v10444_v11, %v10448_v49  ;;  %v1863_v0 = vshll.u32 %v10457_v9, 16  ;;  %v1867_v35 = vshrl.u32 %v10457_v9, 16  ;;  %v7148_v41 = vpop.f32.mrb[2].mxu1  ;;  %v10522_v54 = vld [vmem:[%s8772_s23 + $0xbc] sm:$0x1] }
 0x13f   : > { %3759 = vmatmul.mubr.bf16.gmra.mrb[116].mxu0 %v10421_v36  ;;  %v1873_v7 = vshll.u32 %v10460_v47, 16  ;;  %3935 = vmatprep.mubr.bf16.mxu1 %v6811_v48  ;;  %v10490_v40 = vsel %vm8805_vm4, %v6604_v34, %v1490_v24  ;;  %v10494_v23 = vsel %vm8805_vm4, %v1492_v50, %v1493_v43  ;;  %v1266_v11 = vrot.slane %v1264_v13, 5  ;;  %v6573_v43 = vld [vmem:[%s8772_s23 + $0xb0] sm:$0x1]  ;;  %v7149_v30 = vpop.f32.mrb[3].mxu1 }
 0x140   : > { %12288 = vst [vmem:[#allocation16_spill] sm:$0xff] %v10479_v15  ;;  %3766 = vmatprep.mubr.bf16.mxu0 %v6778_v26  ;;  %v1859_v49 = vrot.slane %v1857_v14, 5  ;;  %v10496_v60 = vcombine.low %v1233_v32, %v1243_v3  ;;  %3936 = vmatmul.mubr.bf16.gmra.mrb[92].mxu1 %v6795_v53  ;;  %v1262_v26 = vrot.slane %v1261_v8, 4  ;;  %v1865_v57 = vrot.slane %v1863_v0, 5  ;;  %v10513_v32 = vld [vmem:[%s8772_s23 + $0xb8] sm:$0xf] }
 0x141   : > { %v1869_v44 = vrot.slane %v1867_v35, 4  ;;  %v10499_v63 = vadd.f32 %v7146_v18, %v7145_v4  ;;  %v1257_v1 = vsel %vm8833_vm5, %v10476_v59, %v10452_v19  ;;  %v1497_v10 = vrot.slane %v8487_v25, 5  ;;  %v12291_v14 = vld [vmem:[#allocation21_spill] sm:$0xff] }
 0x142   : > { %12289 = vst [vmem:[#allocation18_spill] sm:$0xff] %v10496_v60  ;;  %v7027_v24 = vpop.f32.mrb[12].mxu0  ;;  %v1860_v34 = vor.u32 %v1859_v49, %v1856_v52  ;;  %v6780_v61 = vcombine.low %v10490_v40, %v10494_v23  ;;  %v1875_v27 = vrot.slane %v1873_v7, 5  ;;  %v1278_v2 = vshll.u32 %v8487_v25, 16 }
 0x143   : > { %v7028_v37 = vpop.f32.mrb[13].mxu0  ;;  %v1870_v50 = vor.u32 %v1869_v44, %v1865_v57  ;;  %v10517_v13 = vadd.f32 %v7149_v30, %v7148_v41  ;;  %v6796_v3 = vcombine.low %v10435_v17, %v10457_v9  ;;  %v1267_v8 = vsel %vm8833_vm5, %v1262_v26, %v1266_v11  ;;  %v12294_v11 = vld [vmem:[#allocation25_spill] sm:$0xff]  ;;  %v12295_v26 = vld [vmem:[#allocation26_spill] sm:$0xff] }
 0x144   : > { %v10515_v53 = vadd.f32 %v7028_v37, %v7027_v24  ;;  %v7030_v19 = vpop.f32.mrb[14].mxu0  ;;  %v1861_v55 = vrot.slane %v1860_v34, 4  ;;  %v10526_v52 = vrot.slane %v1278_v2, 5  ;;  %v12292_v0 = vshrl.u32 %v12291_v14, 16 }
 0x145   : > { %v7031_v59 = vpop.f32.mrb[15].mxu0  ;;  %v1871_v48 = vrot.slane %v1870_v50, 4  ;;  %v6605_v49 = vrot.slane %v6589_v29, 9  ;;  %v1499_v18 = vrot.slane %v1497_v10, 4  ;;  %v1500_v44 = vrot.slane %v6573_v43, 5  ;;  %v7151_v34 = vpop.f32.mrb[4].mxu1 }
 0x146   : > { %12290 = vst [vmem:[#allocation11_spill] sm:$0xff] %v10515_v53  ;;  %v1284_v35 = vrot.slane %v12292_v0, 4  ;;  %v10530_v7 = vadd.f32 %v7031_v59, %v7030_v19  ;;  %v1866_v4 = vsel %vm8833_vm5, %v1861_v55, %v1865_v57  ;;  %v1275_v24 = vor.u32 %v12295_v26, %v12294_v11  ;;  %v7152_v29 = vpop.f32.mrb[5].mxu1  ;;  %v6590_v26 = vld [vmem:[%s8772_s23 + $0xb4] sm:$0xe] }
 0x147   : > { %3767 = vmatmul.mubr.bf16.gmra.mrb[120].mxu0 %v10432_v20  ;;  %v1876_v17 = vsel %vm8833_vm5, %v1871_v48, %v1875_v27  ;;  %v1878_v41 = vshrl.u32 %v10508_v12, 16  ;;  %v1288_v37 = vshll.u32 %v6573_v43, 16  ;;  %v1881_v30 = vshll.u32 %v10508_v12, 16 }
 0x148   : > { %12293 = vst [vmem:[#allocation15_spill] sm:$0xff] %v10530_v7  ;;  %3774 = vmatprep.mubr.bf16.mxu0 %v6779_v62  ;;  %v6812_v25 = vcombine.low %v1866_v4, %v1876_v17  ;;  %v1887_v57 = vshll.u32 %v10513_v32, 16  ;;  %v1285_v50 = vor.u32 %v1284_v35, %v10526_v52  ;;  %v1891_v27 = vshrl.u32 %v10513_v32, 16  ;;  %v7154_v62 = vpop.f32.mrb[6].mxu1 }
 0x149   : > { %v1880_v2 = vrot.slane %v1878_v41, 4  ;;  %v1897_v19 = vshll.u32 %v10522_v54, 16  ;;  %v10545_v59 = vadd.f32 %v7152_v29, %v7151_v34  ;;  %v10547_v48 = vcombine.low %v1257_v1, %v1267_v8  ;;  %v7155_v4 = vpop.f32.mrb[7].mxu1  ;;  %v10560_v8 = vld [vmem:[%s8772_s23 + $0xbc] sm:$0x1] }
 0x14a   : > { %v7033_v55 = vpop.f32.mrb[16].mxu0  ;;  %3943 = vmatprep.mubr.bf16.mxu1 %v6812_v25  ;;  %v1883_v43 = vrot.slane %v1881_v30, 5  ;;  %v1889_v14 = vrot.slane %v1887_v57, 5  ;;  %v10551_v35 = vsel %vm8805_vm4, %v6605_v49, %v1497_v10  ;;  %v10555_v17 = vsel %vm8805_vm4, %v1499_v18, %v1500_v44  ;;  %v10570_v49 = vld [vmem:[%s8772_s23 + $0xc0] sm:$0xf] }
 0x14b   : > { %12296 = vst [vmem:[#allocation19_spill] sm:$0xff] %v10547_v48  ;;  %v7034_v0 = vpop.f32.mrb[17].mxu0  ;;  %3944 = vmatmul.mubr.bf16.gmra.mrb[96].mxu1 %v6796_v3  ;;  %v10557_v11 = vrot.slane %v1275_v24, 4  ;;  %v1893_v1 = vrot.slane %v1891_v27, 4  ;;  %v10565_v25 = vadd.f32 %v7155_v4, %v7154_v62  ;;  %v10567_v3 = vrot.slane %v1288_v37, 5  ;;  %v12298_v4 = vld [vmem:[#allocation29_spill] sm:$0xff] }
 0x14c   : > { %v10563_v41 = vadd.f32 %v7034_v0, %v7033_v55  ;;  %v7036_v34 = vpop.f32.mrb[18].mxu0  ;;  %v1884_v10 = vor.u32 %v1883_v43, %v1880_v2  ;;  %v10572_v18 = vrot.slane %v1285_v50, 4  ;;  %v1899_v24 = vrot.slane %v1897_v19, 5  ;;  %v8488_v57 = vld [vmem:[%s8772_s23 + $0xb8] sm:$0xf]  ;;  %v12297_v0 = vld [vmem:[#allocation28_spill] sm:$0xff] }
 0x14d   : > { %v7037_v30 = vpop.f32.mrb[19].mxu0  ;;  %v1894_v44 = vor.u32 %v1893_v1, %v1889_v14  ;;  %v1504_v29 = vrot.slane %v8488_v57, 5  ;;  %v6781_v55 = vcombine.low %v10551_v35, %v10555_v17  ;;  %v1302_v37 = vshll.u32 %v8488_v57, 16  ;;  %v10585_v1 = vld [vmem:[%s8772_s23 + $0xc4] sm:$0xf] }
 0x14e   : > { %v10575_v27 = vadd.f32 %v7037_v30, %v7036_v34  ;;  %v1885_v62 = vrot.slane %v1884_v10, 4  ;;  %v6797_v43 = vcombine.low %v10508_v12, %v10513_v32  ;;  %v6606_v50 = vrot.slane %v6590_v26, 9  ;;  %v7157_v34 = vpop.f32.mrb[8].mxu1  ;;  %v12299_v30 = vld [vmem:[#allocation22_spill] sm:$0xff] }
 0x14f   : > { %3775 = vmatmul.mubr.bf16.gmra.mrb[124].mxu0 %v10496_v60  ;;  %v1895_v2 = vrot.slane %v1894_v44, 4  ;;  %v1299_v19 = vor.u32 %v12298_v4, %v12297_v0  ;;  %v1507_v17 = vrot.slane %v10560_v8, 5  ;;  %v10593_v10 = vrot.slane %v1302_v37, 5  ;;  %v10598_v44 = vld [vmem:[%s8772_s23 + $0xc8] sm:$0x1]  ;;  %v7158_v57 = vpop.f32.mrb[9].mxu1 }
 0x150   : > { %3782 = vmatprep.mubr.bf16.mxu0 %v6780_v61  ;;  %v1890_v35 = vsel %vm8833_vm5, %v1885_v62, %v1889_v14  ;;  %v12300_v12 = vshrl.u32 %v12299_v30, 16  ;;  %v1506_v4 = vrot.slane %v1504_v29, 4  ;;  %v1312_v40 = vshll.u32 %v10560_v8, 16  ;;  %v7160_v62 = vpop.f32.mrb[10].mxu1 }
 0x151   : > { %v1900_v0 = vsel %vm8833_vm5, %v1895_v2, %v1899_v24  ;;  %v1902_v23 = vshrl.u32 %v10570_v49, 16  ;;  %v10604_v14 = vadd.f32 %v7158_v57, %v7157_v34  ;;  %v1281_v37 = vsel %vm8833_vm5, %v10557_v11, %v10526_v52  ;;  %v7161_v8 = vpop.f32.mrb[11].mxu1 }
 0x152   : > { %v1308_v26 = vrot.slane %v12300_v12, 4  ;;  %v7039_v61 = vpop.f32.mrb[20].mxu0  ;;  %v1291_v24 = vsel %vm8833_vm5, %v10572_v18, %v10567_v3  ;;  %v6813_v2 = vcombine.low %v1890_v35, %v1900_v0  ;;  %v10614_v12 = vrot.slane %v1299_v19, 4  ;;  %v6591_v18 = vld [vmem:[%s8772_s23 + $0xc0] sm:$0xe] }
 0x153   : > { %v7040_v30 = vpop.f32.mrb[21].mxu0  ;;  %v1904_v57 = vrot.slane %v1902_v23, 4  ;;  %v1905_v60 = vshll.u32 %v10570_v49, 16  ;;  %v10620_v52 = vadd.f32 %v7161_v8, %v7160_v62  ;;  %v1911_v11 = vshll.u32 %v10585_v1, 16 }
 0x154   : > { %v1309_v34 = vor.u32 %v1308_v26, %v10593_v10  ;;  %v10618_v20 = vadd.f32 %v7040_v30, %v7039_v61  ;;  %v7042_v36 = vpop.f32.mrb[22].mxu0  ;;  %3951 = vmatprep.mubr.bf16.mxu1 %v6813_v2  ;;  %v1915_v3 = vshrl.u32 %v10585_v1, 16  ;;  %v1505_v19 = vsel %vm8805_vm4, %v6606_v50, %v1504_v29  ;;  %v10631_v61 = vld [vmem:[%s8772_s23 + $0xc8] sm:$0x1] }
 0x155   : > { %v7043_v35 = vpop.f32.mrb[23].mxu0  ;;  %3952 = vmatmul.mubr.bf16.gmra.mrb[100].mxu1 %v6797_v43  ;;  %v10627_v26 = vrot.slane %v1312_v40, 5  ;;  %v1907_v0 = vrot.slane %v1905_v60, 5  ;;  %v1921_v23 = vshll.u32 %v10598_v44, 16  ;;  %v1508_v2 = vsel %vm8805_vm4, %v1506_v4, %v1507_v17  ;;  %v7163_v60 = vpop.f32.mrb[12].mxu1 }
 0x156   : > { %v10633_v62 = vadd.f32 %v7043_v35, %v7042_v36  ;;  %v1913_v30 = vrot.slane %v1911_v11, 5  ;;  %v1917_v8 = vrot.slane %v1915_v3, 4  ;;  %v1310_v43 = vrot.slane %v1309_v34, 4  ;;  %v7164_v35 = vpop.f32.mrb[13].mxu1  ;;  %v10642_v11 = vld [vmem:[%s8772_s23 + $0xcc] sm:$0xf] }
 0x157   : > { %3783 = vmatmul.mubr.bf16.gmra.mrb[128].mxu0 %v10547_v48  ;;  %v1908_v29 = vor.u32 %v1907_v0, %v1904_v57  ;;  %v1923_v50 = vrot.slane %v1921_v23, 5  ;;  %v10638_v40 = vcombine.low %v1281_v37, %v1291_v24  ;;  %v1511_v36 = vrot.slane %v8489_v31, 5  ;;  %v7166_v57 = vpop.f32.mrb[14].mxu1  ;;  %v10650_v0 = vld [vmem:[%s8772_s23 + $0xd0] sm:$0xf] }
 0x158   : > { %3790 = vmatprep.mubr.bf16.mxu0 %v6781_v55  ;;  %v1918_v21 = vor.u32 %v1917_v8, %v1913_v30  ;;  %v6782_v22 = vcombine.low %v1505_v19, %v1508_v2  ;;  %v6607_v17 = vrot.slane %v6591_v18, 9  ;;  %v1326_v4 = vshll.u32 %v8489_v31, 16  ;;  %v7167_v19 = vpop.f32.mrb[15].mxu1  ;;  %v12302_v8 = vld [vmem:[#allocation27_spill] sm:$0xff] }
 0x159   : > { %12301 = vst [vmem:[#allocation20_spill] sm:$0xff] %v10638_v40  ;;  %v1909_v45 = vrot.slane %v1908_v29, 4  ;;  %v10644_v34 = vadd.f32 %v7164_v35, %v7163_v60  ;;  %v6798_v37 = vcombine.low %v10570_v49, %v10585_v1  ;;  %v1514_v24 = vrot.slane %v10631_v61, 5  ;;  %v10659_v35 = vld [vmem:[%s8772_s23 + $0xd4] sm:$0x1] }
 0x15a   : > { %v7045_v3 = vpop.f32.mrb[24].mxu0  ;;  %v1919_v55 = vrot.slane %v1918_v21, 4  ;;  %v1513_v31 = vrot.slane %v1511_v36, 4  ;;  %v10654_v2 = vrot.slane %v1326_v4, 5  ;;  %v12303_v29 = vshrl.u32 %v12302_v8, 16 }
 0x15b   : > { %v7046_v23 = vpop.f32.mrb[25].mxu0  ;;  %v1914_v18 = vsel %vm8833_vm5, %v1909_v45, %v1913_v30  ;;  %v10663_v48 = vadd.f32 %v7167_v19, %v7166_v57  ;;  %v1323_v58 = vor.u32 %v12305_v5, %v12304_v46  ;;  %v1305_v30 = vsel %vm8833_vm5, %v10614_v12, %v10593_v10  ;;  %v8394_v19 = vld [vmem:[#allocation2] sm:$0xff]  }
 0x15c   : > { %v1332_v60 = vrot.slane %v12303_v29, 4  ;;  %v10661_v21 = vadd.f32 %v7046_v23, %v7045_v3  ;;  %v7048_v49 = vpop.f32.mrb[26].mxu0  ;;  %v1924_v33 = vsel %vm8833_vm5, %v1919_v55, %v1923_v50  ;;  %v1315_v4 = vsel %vm8833_vm5, %v1310_v43, %v10627_v26  ;;  %v8393_v55 = vld [vmem:[#allocation2 + $0x40] sm:$0xff]   ;;  %v6656_v43 = vld [vmem:[%s8772_s23 + $0x18] sm:$0xe] }
 0x15d   : > { %v7049_v45 = vpop.f32.mrb[27].mxu0  ;;  %v6814_v3 = vcombine.low %v1914_v18, %v1924_v33  ;;  %v1512_v57 = vsel %vm8805_vm4, %v6607_v17, %v1511_v36  ;;  %v1336_v5 = vshll.u32 %v10631_v61, 16  ;;  %v1926_v46 = vshrl.u32 %v10642_v11, 16  ;;  %v7169_v61 = vpop.f32.mrb[16].mxu1  ;;  %7465 = vmatprep.subr.bf16.mxu1 %v8393_v55 }
 0x15e   : > { %v10678_v23 = vadd.f32 %v7049_v45, %v7048_v49  ;;  %v1333_v50 = vor.u32 %v1332_v60, %v10654_v2  ;;  %v1515_v10 = vsel %vm8805_vm4, %v1513_v31, %v1514_v24  ;;  %v1929_v33 = vshll.u32 %v10642_v11, 16  ;;  %v7170_v29 = vpop.f32.mrb[17].mxu1  ;;  %7466 = vmatpush3.bf16.msra.mxu1 %v8394_v19 }
 0x15f   : > { %3791 = vmatmul.mubr.bf16.gmra.mrb[132].mxu0 %v10638_v40  ;;  %3959 = vmatprep.mubr.bf16.mxu1 %v6814_v3  ;;  %v1935_v12 = vshll.u32 %v10650_v0, 16  ;;  %v1939_v26 = vshrl.u32 %v10650_v0, 16  ;;  %v10690_v36 = vrot.slane %v1323_v58, 4  ;;  %v1928_v17 = vrot.slane %v1926_v46, 4  ;;  %v7172_v3 = vpop.f32.mrb[18].mxu1 }
 0x160   : > { %3798 = vmatprep.mubr.bf16.mxu0 %v6782_v22  ;;  %3960 = vmatmul.mubr.bf16.gmra.mrb[104].mxu1 %v6798_v37  ;;  %v1945_v18 = vshll.u32 %v10659_v35, 16  ;;  %v10693_v8 = vcombine.low %v1305_v30, %v1315_v4  ;;  %v1931_v60 = vrot.slane %v1929_v33, 5  ;;  %v10695_v45 = vadd.f32 %v7170_v29, %v7169_v61  ;;  %v7173_v40 = vpop.f32.mrb[19].mxu1 }
 0x161   : > { %v1937_v24 = vrot.slane %v1935_v12, 5  ;;  %v1941_v31 = vrot.slane %v1939_v26, 4  ;;  %v6783_v22 = vcombine.low %v1512_v57, %v1515_v10  ;;  %v1334_v37 = vrot.slane %v1333_v50, 4  ;;  %v8491_v57 = vld [vmem:[%s8772_s23 + $0x20] sm:$0x1] }
 0x162   : > { %12306 = vst [vmem:[#allocation23_spill] sm:$0xff] %v10693_v8  ;;  %v7051_v49 = vpop.f32.mrb[28].mxu0  ;;  %v1338_v58 = vrot.slane %v1336_v5, 5  ;;  %v1932_v30 = vor.u32 %v1931_v60, %v1928_v17  ;;  %v1947_v33 = vrot.slane %v1945_v18, 5  ;;  %v2015_v12 = vrot.slane %v8490_v6, 5 }
 0x163   : > { %v7052_v46 = vpop.f32.mrb[29].mxu0  ;;  %v1942_v4 = vor.u32 %v1941_v31, %v1937_v24  ;;  %v10700_v61 = vadd.f32 %v7173_v40, %v7172_v3  ;;  %v6672_v29 = vrot.slane %v6656_v43, 9  ;;  %v2018_v50 = vrot.slane %v8491_v57, 5  ;;  %v6657_v17 = vld [vmem:[%s8772_s23 + $0x24] sm:$0xe] }
 0x164   : > { %v10698_v26 = vadd.f32 %v7052_v46, %v7051_v49  ;;  %v7054_v55 = vpop.f32.mrb[30].mxu0  ;;  %v1933_v19 = vrot.slane %v1932_v30, 4  ;;  %v2017_v7 = vrot.slane %v2015_v12, 4  ;;  %v6658_v18 = vld [vmem:[%s8772_s23 + $0x30] sm:$0xe]  ;;  %v6799_v43 = vcombine.low %v10642_v11, %v10650_v0 }
 0x165   : > { %v7055_v5 = vpop.f32.mrb[31].mxu0  ;;  %v1943_v10 = vrot.slane %v1942_v4, 4  ;;  %v8492_v31 = vld [vmem:[%s8772_s23 + $0x28] sm:$0xf]  ;;  %v1329_v3 = vsel %vm8833_vm5, %v10690_v36, %v10654_v2  ;;  %v1339_v46 = vsel %vm8833_vm5, %v1334_v37, %v1338_v58  ;;  %v8493_v4 = vld [vmem:[%s8772_s23 + $0x34] sm:$0xf]  ;;  %v2016_v11 = vsel %vm8805_vm4, %v6672_v29, %v2015_v12 }
 0x166   : > { %v10704_v60 = vadd.f32 %v7055_v5, %v7054_v55  ;;  %v1938_v6 = vsel %vm8833_vm5, %v1933_v19, %v1937_v24  ;;  %v2022_v49 = vrot.slane %v8492_v31, 5  ;;  %v7175_v24 = vpop.f32.mrb[20].mxu1  ;;  %v2029_v55 = vrot.slane %v8493_v4, 5  ;;  %v8494_v57 = vld [vmem:[%s8772_s23 + $0x2c] sm:$0x1] }
 0x167   : > { %3799 = vmatmul.mubr.bf16.gmra.mrb[136].mxu0 %v10693_v8  ;;  %v1948_v40 = vsel %vm8833_vm5, %v1943_v10, %v1947_v33  ;;  %v7176_v33 = vpop.f32.mrb[21].mxu1  ;;  %v2025_v5 = vrot.slane %v8494_v57, 5  ;;  %v6673_v36 = vrot.slane %v6657_v17, 9  ;;  %v10730_v37 = vld [vmem:[%s8772_s23 + $0x3c] sm:$0xe]  ;;  %v6674_v10 = vrot.slane %v6658_v18, 9 }
 0x168   : > { %3806 = vmatprep.mubr.bf16.mxu0 %v6783_v22  ;;  %v6815_v30 = vcombine.low %v1938_v6, %v1948_v40  ;;  %v2019_v22 = vsel %vm8805_vm4, %v2017_v7, %v2018_v50  ;;  %v10727_v2 = vadd.f32 %v7176_v33, %v7175_v24  ;;  %v7178_v38 = vpop.f32.mrb[22].mxu1  ;;  %v10735_v58 = vld [vmem:[%s12167_s2] ss:$0 sm:$0xff]  ;;  %v10737_v7 = vcombine.low %v1329_v3, %v1339_v46  ;;  %v6660_v24 = vld [vmem:[%s8772_s23 + $0x48] sm:$0xe] }
 0x169   : > { %v7179_v29 = vpop.f32.mrb[23].mxu1  ;;  %v2024_v50 = vrot.slane %v2022_v49, 4  ;;  %v6816_v17 = vcombine.low %v2016_v11, %v2019_v22  ;;  %v8495_v33 = vld [vmem:[%s8772_s23 + $0x38] sm:$0x1]  ;;  %v8496_v8 = vld [vmem:[%s8772_s23 + $0x40] sm:$0xf]  ;;  %v10751_v18 = vadd.f32 %v10575_v27, %v10735_v58 }
 0x16a   : > { %v7057_v19 = vpop.f32.mrb[32].mxu0  ;;  %3967 = vmatprep.mubr.bf16.mxu1 %v6815_v30  ;;  %12307 = vst [vmem:[#allocation24_spill] sm:$0xff] %v10737_v7  ;;  %v10739_v31 = vadd.f32 %v7179_v29, %v7178_v38  ;;  %v2031_v30 = vrot.slane %v2029_v55, 4  ;;  %v2032_v57 = vrot.slane %v8495_v33, 5  ;;  %v2036_v3 = vrot.slane %v8496_v8, 5  ;;  %v8396_v38 = vld [vmem:[#allocation2 + $0x8] sm:$0xff]  }
 0x16b   : > { %v7058_v12 = vpop.f32.mrb[33].mxu0  ;;  %3968 = vmatmul.mubr.bf16.gmra.mrb[108].mxu1 %v6799_v43  ;;  %v8497_v46 = vld [vmem:[%s8772_s23 + $0x4c] sm:$0xf]  ;;  %v10747_v43 = vadd.f32 %v10563_v41, %v10735_v58  ;;  %v2023_v8 = vsel %vm8805_vm4, %v6673_v36, %v2022_v49  ;;  %v6675_v41 = vrot.slane %v10730_v37, 9  ;;  %v6661_v29 = vld [vmem:[%s8772_s23 + $0x54] sm:$0xe] }
 0x16c   : > { %v7059_v6 = vadd.f32 %v7058_v12, %v7057_v19  ;;  %v7060_v40 = vpop.f32.mrb[34].mxu0  ;;  %v2043_v53 = vrot.slane %v8497_v46, 5  ;;  %v8395_v19 = vld [vmem:[#allocation2 + $0x48] sm:$0xff]   ;;  %v2030_v12 = vsel %vm8805_vm4, %v6674_v10, %v2029_v55  ;;  %v8498_v27 = vld [vmem:[%s8772_s23 + $0x58] sm:$0xf]  ;;  %v2033_v37 = vsel %vm8805_vm4, %v2031_v30, %v2032_v57 }
 0x16d   : > { %v7061_v4 = vpop.f32.mrb[35].mxu0  ;;  %v2050_v33 = vrot.slane %v8498_v27, 5  ;;  %v7181_v49 = vpop.f32.mrb[24].mxu1  ;;  %v8499_v36 = vld [vmem:[%s8772_s23 + $0x44] sm:$0x1]  ;;  %v2038_v10 = vrot.slane %v2036_v3, 4  ;;  %7467 = vmatprep.subr.bf16.mxu1 %v8395_v19  ;;  %v10782_v30 = vadd.f32 %v10618_v20, %v10735_v58  ;;  %v10790_v20 = vadd.f32 %v10633_v62, %v10735_v58 }
 0x16e   : > { %v7062_v11 = vadd.f32 %v7061_v4, %v7060_v40  ;;  %v3431_v22 = vadd.f32 %v7059_v6, %v10735_v58  ;;  %v2026_v4 = vsel %vm8805_vm4, %v2024_v50, %v2025_v5  ;;  %v2039_v46 = vrot.slane %v8499_v36, 5  ;;  %v7182_v55 = vpop.f32.mrb[25].mxu1  ;;  %v8500_v50 = vld [vmem:[%s8772_s23 + $0x50] sm:$0x1]  ;;  %7468 = vmatpush3.bf16.msra.mxu1 %v8396_v38 }
 0x16f   : > { %3807 = vmatmul.mubr.bf16.gmra.mrb[140].mxu0 %v10737_v7  ;;  %v6676_v7 = vrot.slane %v6660_v24, 9  ;;  %v2045_v27 = vrot.slane %v2043_v53, 4  ;;  %v7184_v5 = vpop.f32.mrb[26].mxu1  ;;  %v2046_v36 = vrot.slane %v8500_v50, 5  ;;  %v6817_v57 = vcombine.low %v2023_v8, %v2026_v4  ;;  %v8502_v50 = vld [vmem:[%s8772_s23 + $0x64] sm:$0xf] }
 0x170   : > { %v10763_v40 = vadd.f32 %v10695_v45, %v3431_v22  ;;  %v3434_v6 = vadd.f32 %v7062_v11, %v10735_v58  ;;  %7977 = vmatprep.mubr.bf16.mxu0 %v6816_v17  ;;  %v10772_v45 = vld [vmem:[%s8772_s23 + $0x60] sm:$0xe]  ;;  %v10777_v22 = vadd.f32 %v7182_v55, %v7181_v49  ;;  %v7185_v19 = vpop.f32.mrb[27].mxu1  ;;  %v2052_v15 = vrot.slane %v2050_v33, 4 }
 0x171   : > { %v6818_v55 = vcombine.low %v2030_v12, %v2033_v37  ;;  %v10785_v16 = vadd.f32 %v7185_v19, %v7184_v5  ;;  %v10794_v38 = vadd.f32 %v10661_v21, %v10735_v58  ;;  %v2037_v4 = vsel %vm8805_vm4, %v6675_v41, %v2036_v3  ;;  %v6663_v37 = vld [vmem:[%s8772_s23 + $0x6c] sm:$0xe]  ;;  %v8504_v41 = vld [vmem:[%s8772_s23 + $0x70] sm:$0xf]  ;;  %v6664_v19 = vld [vmem:[%s8772_s23 + $0x78] sm:$0xe] }
 0x172   : > { %12308 = vst [vmem:[#allocation17_spill] sm:$0xff] %v10763_v40  ;;  %v10775_v17 = vadd.f32 %v10700_v61, %v3434_v6  ;;  %v7063_v11 = vpop.f32.mrb[36].mxu0  ;;  %v6677_v40 = vrot.slane %v6661_v29, 9  ;;  %v8501_v61 = vld [vmem:[%s8772_s23 + $0x5c] sm:$0x1]  ;;  %v2057_v29 = vrot.slane %v8502_v50, 5  ;;  %v10800_v12 = vsel %vm8805_vm4, %v6676_v7, %v2043_v53 }
 0x173   : > { %v7064_v24 = vpop.f32.mrb[37].mxu0  ;;  %v2053_v6 = vrot.slane %v8501_v61, 5  ;;  %v2040_v62 = vsel %vm8805_vm4, %v2038_v10, %v2039_v46  ;;  %v6678_v21 = vrot.slane %v10772_v45, 9  ;;  %v8503_v53 = vld [vmem:[%s8772_s23 + $0x68] sm:$0x1]  ;;  %v2109_v39 = vrot.slane %v10522_v54, 5 }
 0x174   : > { %12309 = vst [vmem:[#allocation21_spill] sm:$0xff] %v10775_v17  ;;  %v7065_v17 = vadd.f32 %v7064_v24, %v7063_v11  ;;  %v7066_v49 = vpop.f32.mrb[38].mxu0  ;;  %v2047_v24 = vsel %vm8805_vm4, %v2045_v27, %v2046_v36  ;;  %v10811_v3 = vsel %vm8805_vm4, %v6677_v40, %v2050_v33  ;;  %v2060_v7 = vrot.slane %v8503_v53, 5  ;;  %v10825_v40 = vld [vmem:[%s8772_s23 + $0x84] sm:$0xe] }
 0x175   : > { %v7067_v8 = vpop.f32.mrb[39].mxu0  ;;  %v10822_v27 = vsel %vm8805_vm4, %v2052_v15, %v2053_v6  ;;  %v2059_v33 = vrot.slane %v2057_v29, 4  ;;  %v10829_v36 = vadd.f32 %v10678_v23, %v10735_v58  ;;  %v8506_v53 = vld [vmem:[%s8772_s23 + $0x74] sm:$0x1]  ;;  %v10925_v54 = vld [vmem:[%s8772_s23 + $0x98] sm:$0x1] }
 0x176   : > { %v7068_v11 = vadd.f32 %v7067_v8, %v7066_v49  ;;  %v3439_v5 = vadd.f32 %v7065_v17, %v10735_v58  ;;  %v2064_v17 = vrot.slane %v8504_v41, 5  ;;  %v7187_v45 = vpop.f32.mrb[28].mxu1  ;;  %v8505_v49 = vld [vmem:[%s8772_s23 + $0x7c] sm:$0xf]  ;;  %v2067_v23 = vrot.slane %v8506_v53, 5 }
 0x177   : > { %7978 = vmatmul.mubr.bf16.vlgmr.msra.gmra.mrb[144].mxu0 %v6817_v57  ;;  %v6819_v57 = vcombine.low %v2037_v4, %v2040_v62  ;;  %v7188_v61 = vpop.f32.mrb[29].mxu1  ;;  %v2071_v50 = vrot.slane %v8505_v49, 5  ;;  %v10844_v62 = vsel %vm8805_vm4, %v6678_v21, %v2057_v29  ;;  %v10854_v49 = vsel %vm8805_vm4, %v2059_v33, %v2060_v7 }
 0x178   : > { %v10817_v46 = vadd.f32 %v10727_v2, %v3439_v5  ;;  %v3442_v10 = vadd.f32 %v7068_v11, %v10735_v58  ;;  %7981 = vmatprep.mubr.bf16.mxu0 %v6818_v55  ;;  %v6679_v2 = vrot.slane %v6663_v37, 9  ;;  %v6668_v55 = vld [vmem:[%s8772_s23 + $0xa8] sm:$0xe]  ;;  %v10836_v15 = vadd.f32 %v7188_v61, %v7187_v45  ;;  %v7190_v6 = vpop.f32.mrb[30].mxu1  ;;  %v6669_v37 = vld [vmem:[%s8772_s23 + $0xb4] sm:$0xe] }
 0x179   : > { %v6820_v5 = vcombine.low %v10800_v12, %v2047_v24  ;;  %v7191_v4 = vpop.f32.mrb[31].mxu1  ;;  %v6680_v53 = vrot.slane %v6664_v19, 9  ;;  %v10861_v21 = vrot.slane %v2071_v50, 4  ;;  %v6684_v19 = vrot.slane %v6668_v55, 9 }
 0x17a   : > { %12310 = vst [vmem:[#allocation25_spill] sm:$0xff] %v10817_v46  ;;  %v10834_v8 = vadd.f32 %v10739_v31, %v3442_v10  ;;  %v7069_v11 = vpop.f32.mrb[40].mxu0  ;;  %v2066_v31 = vrot.slane %v2064_v17, 4  ;;  %v10847_v10 = vld [vmem:[%s8772_s23 + $0x88] sm:$0xf]  ;;  %v10850_v24 = vadd.f32 %v7191_v4, %v7190_v6  ;;  %v10859_v29 = vsel %vm8805_vm4, %v6679_v2, %v2064_v17  ;;  %v8397_v17 = vld [vmem:[#allocation2 + $0x50] sm:$0xff]  }
 0x17b   : > { %v7070_v41 = vpop.f32.mrb[41].mxu0  ;;  %v10864_v46 = vld [vmem:[%s8772_s23 + $0x80] sm:$0x1]  ;;  %v2099_v33 = vrot.slane %v10457_v9, 5  ;;  %v8398_v2 = vld [vmem:[#allocation2 + $0x10] sm:$0xff]   ;;  %v6822_v45 = vcombine.low %v10844_v62, %v10854_v49  ;;  %v12312_v6 = vrot.slane %v10847_v10, 5  ;;  %v10890_v62 = vsel %vm8805_vm4, %v6680_v53, %v2071_v50  ;;  %7469 = vmatprep.subr.bf16.mxu1 %v8397_v17 }
 0x17c   : > { %12311 = vst [vmem:[#allocation26_spill] sm:$0xff] %v10834_v8  ;;  %v7071_v61 = vadd.f32 %v7070_v41, %v7069_v11  ;;  %v7072_v12 = vpop.f32.mrb[42].mxu0  ;;  %v10869_v41 = vld [vmem:[%s8772_s23 + $0x90] sm:$0xe]  ;;  %v10877_v11 = vsel %vm8805_vm4, %v2066_v31, %v2067_v23  ;;  %v2102_v55 = vrot.slane %v10460_v47, 5  ;;  %7470 = vmatpush3.bf16.msra.mxu1 %v8398_v2  ;;  %v2088_v2 = vrot.slane %v10925_v54, 5 }
 0x17d   : > { %v7073_v8 = vpop.f32.mrb[43].mxu0  ;;  %v10893_v23 = vld [vmem:[%s8772_s23 + $0x8c] sm:$0x1]  ;;  %v10899_v47 = vsel %vm8805_vm4, %v6684_v19, %v2099_v33 }
 0x17e   : > { %v7074_v4 = vadd.f32 %v7073_v8, %v7072_v12  ;;  %v3447_v7 = vadd.f32 %v7071_v61, %v10735_v58  ;;  %v10881_v8 = vrot.slane %v12312_v6, 4  ;;  %v6670_v12 = vld [vmem:[%s8772_s23 + $0xc0] sm:$0xe]  ;;  %v6685_v6 = vrot.slane %v6669_v37, 9  ;;  %v10911_v37 = vld [vmem:[%s8772_s23 + $0x94] sm:$0xf] }
 0x17f   : > { %7982 = vmatmul.mubr.bf16.gmra.mrb[148].mxu0 %v6819_v57  ;;  %v7193_v57 = vpop.f32.mrb[32].mxu1 }
 0x180   : > { %v10885_v61 = vadd.f32 %v10777_v22, %v3447_v7  ;;  %v3450_v9 = vadd.f32 %v7074_v4, %v10735_v58  ;;  %7985 = vmatprep.mubr.bf16.mxu0 %v6820_v5  ;;  %v7194_v49 = vpop.f32.mrb[33].mxu1  ;;  %v2101_v22 = vrot.slane %v2099_v33, 4  ;;  %v2106_v5 = vrot.slane %v10513_v32, 5  ;;  %v6671_v4 = vld [vmem:[%s8772_s23 + $0xcc] sm:$0xe] }
 0x181   : > { %v10906_v7 = vadd.f32 %v7194_v49, %v7193_v57  ;;  %v7196_v31 = vpop.f32.mrb[34].mxu1  ;;  %v12315_v32 = vcombine.low %v10811_v3, %v10822_v27  ;;  %v12317_v27 = vrot.slane %v10911_v37, 5 }
 0x182   : > { %12313 = vst [vmem:[#allocation28_spill] sm:$0xff] %v10885_v61  ;;  %v10904_v50 = vadd.f32 %v10785_v16, %v3450_v9  ;;  %v7075_v53 = vpop.f32.mrb[44].mxu0  ;;  %v7197_v33 = vpop.f32.mrb[35].mxu1  ;;  %v10916_v16 = vsel %vm8805_vm4, %v2101_v22, %v2102_v55  ;;  %v10920_v17 = vsel %vm8805_vm4, %v6685_v6, %v2106_v5  ;;  %v2108_v9 = vrot.slane %v2106_v5, 4 }
 0x183   : > { %v7076_v19 = vpop.f32.mrb[45].mxu0  ;;  %v10922_v61 = vadd.f32 %v7197_v33, %v7196_v31  ;;  %v6686_v22 = vrot.slane %v6670_v12, 9  ;;  %v2113_v6 = vrot.slane %v10585_v1, 5  ;;  %v2116_v5 = vrot.slane %v10598_v44, 5 }
 0x184   : > { %12314 = vst [vmem:[#allocation29_spill] sm:$0xff] %v10904_v50  ;;  %v7077_v57 = vadd.f32 %v7076_v19, %v7075_v53  ;;  %v7078_v49 = vpop.f32.mrb[46].mxu0  ;;  %v10932_v55 = vsel %vm8805_vm4, %v2108_v9, %v2109_v39  ;;  %v6687_v33 = vrot.slane %v6671_v4, 9  ;;  %v2120_v1 = vrot.slane %v10650_v0, 5 }
 0x185   : > { %v7079_v50 = vpop.f32.mrb[47].mxu0  ;;  %v6829_v19 = vcombine.low %v10920_v17, %v10932_v55  ;;  %v10944_v39 = vsel %vm8805_vm4, %v6686_v22, %v2113_v6  ;;  %v2115_v12 = vrot.slane %v2113_v6, 4  ;;  %v2123_v44 = vrot.slane %v10659_v35, 5 }
 0x186   : > { %v7080_v53 = vadd.f32 %v7079_v50, %v7078_v49  ;;  %v3455_v31 = vadd.f32 %v7077_v57, %v10735_v58  ;;  %v7199_v4 = vpop.f32.mrb[36].mxu1  ;;  %v12316_v57 = vrot.slane %v10864_v46, 5  ;;  %v3423_v0 = vadd.f32 %v10698_v26, %v10735_v58 }
 0x187   : > { %7986 = vmatmul.mubr.bf16.gmra.mrb[152].mxu0 %v12315_v32  ;;  %v2087_v32 = vrot.slane %v12317_v27, 4  ;;  %v7200_v35 = vpop.f32.mrb[37].mxu1  ;;  %v2122_v46 = vrot.slane %v2120_v1, 4  ;;  %v3426_v49 = vadd.f32 %v10704_v60, %v10735_v58  ;;  %v10985_v60 = vadd.f32 %v10499_v63, %v10747_v43 }
 0x188   : > { %v10949_v50 = vadd.f32 %v10836_v15, %v3455_v31  ;;  %v3458_v9 = vadd.f32 %v7080_v53, %v10735_v58  ;;  %7989 = vmatprep.mubr.bf16.mxu0 %v6822_v45  ;;  %v2075_v3 = vsel %vm8805_vm4, %v10861_v21, %v12316_v57  ;;  %v10963_v15 = vsel %vm8805_vm4, %v2115_v12, %v2116_v5  ;;  %v7202_v53 = vpop.f32.mrb[38].mxu1 }
 0x189   : > { %v10967_v45 = vsel %vm8805_vm4, %v6687_v33, %v2120_v1  ;;  %v7201_v6 = vadd.f32 %v7200_v35, %v7199_v4  ;;  %v6830_v26 = vcombine.low %v10944_v39, %v10963_v15  ;;  %v6823_v5 = vcombine.low %v10859_v29, %v10877_v11  ;;  %v7203_v12 = vpop.f32.mrb[39].mxu1 }
 0x18a   : > { %v10972_v21 = vadd.f32 %v10850_v24, %v3458_v9  ;;  %v7081_v22 = vpop.f32.mrb[48].mxu0  ;;  %v6824_v33 = vcombine.low %v10890_v62, %v2075_v3  ;;  %v10981_v1 = vsel %vm8805_vm4, %v2122_v46, %v2123_v44  ;;  %v7204_v4 = vadd.f32 %v7203_v12, %v7202_v53 }
 0x18b   : > { %v7082_v31 = vpop.f32.mrb[49].mxu0  ;;  %v6831_v57 = vcombine.low %v10967_v45, %v10981_v1  ;;  %v10991_v29 = vadd.f32 %v10517_v13, %v10751_v18  ;;  %v10995_v62 = vadd.f32 %v10545_v59, %v10782_v30  ;;  %v10999_v44 = vadd.f32 %v10565_v25, %v10790_v20  ;;  %v8399_v25 = vld [vmem:[#allocation2 + $0x58] sm:$0xff]  }
 0x18c   : > { %v7083_v24 = vadd.f32 %v7082_v31, %v7081_v22  ;;  %v7084_v9 = vpop.f32.mrb[50].mxu0  ;;  %v11003_v63 = vadd.f32 %v10604_v14, %v10794_v38  ;;  %v11007_v43 = vadd.f32 %v10620_v52, %v10829_v36  ;;  %v11011_v59 = vadd.f32 %v10644_v34, %v3423_v0  ;;  %v8400_v20 = vld [vmem:[#allocation2 + $0x18] sm:$0xff]   ;;  %7471 = vmatprep.subr.bf16.mxu1 %v8399_v25 }
 0x18d   : > { %v7085_v11 = vpop.f32.mrb[51].mxu0  ;;  %v11014_v30 = vadd.f32 %v10663_v48, %v3426_v49  ;;  %v12318_v14 = vrot.slane %v10847_v10, 5  ;;  %v12319_v38 = vrot.slane %v10825_v40, 9  ;;  %v12320_v34 = vrot.slane %v10893_v23, 5  ;;  %v6667_v0 = vld [vmem:[%s8772_s23 + $0x9c] sm:$0xe]  ;;  %7472 = vmatpush3.bf16.msra.mxu1 %v8400_v20 }
 0x18e   : > { %v3463_v13 = vadd.f32 %v7083_v24, %v10735_v58  ;;  %v7086_v18 = vadd.f32 %v7085_v11, %v7084_v9  ;;  %v7205_v27 = vpop.f32.mrb[40].mxu1  ;;  %v8512_v10 = vld [vmem:[%s8772_s23 + $0xa0] sm:$0xf]  ;;  %v12321_v46 = vrot.slane %v10911_v37, 5  ;;  %v12322_v49 = vrot.slane %v10869_v41, 9 }
 0x18f   : > { %7990 = vmatmul.mubr.bf16.gmra.mrb[156].mxu0 %v6823_v5  ;;  %v2079_v52 = vsel %vm8805_vm4, %v12319_v38, %v12318_v14  ;;  %v2082_v48 = vsel %vm8805_vm4, %v10881_v8, %v12320_v34  ;;  %v2092_v40 = vrot.slane %v8512_v10, 5  ;;  %v7206_v35 = vpop.f32.mrb[41].mxu1  ;;  %v2089_v23 = vsel %vm8805_vm4, %v2087_v32, %v2088_v2  ;;  %v8513_v41 = vld [vmem:[%s8772_s23 + $0xa4] sm:$0x1]  ;;  %s8542_s23 = scalar_lea.vmem %s12117_s16, 4096 }
 0x190   : > { %v3466_v36 = vadd.f32 %v7086_v18, %v10735_v58  ;;  %v11024_v3 = vadd.f32 %v10906_v7, %v3463_v13  ;;  %7993 = vmatprep.mubr.bf16.mxu0 %v6824_v33  ;;  %v2086_v7 = vsel %vm8805_vm4, %v12322_v49, %v12321_v46  ;;  %v7207_v53 = vadd.f32 %v7206_v35, %v7205_v27  ;;  %v7208_v31 = vpop.f32.mrb[42].mxu1  ;;  %p8543_p6 = scmp.ne.s32.totalorder %s12117_s16, %s8542_s23  ;;  %p8550_p3 = scmp.lt.s32.totalorder %s8548_s29, %s8542_s23 }
 0x191   : > { %v6825_v33 = vcombine.low %v2079_v52, %v2082_v48  ;;  %v7209_v37 = vpop.f32.mrb[43].mxu1  ;;  %v6683_v12 = vrot.slane %v6667_v0, 9  ;;  %v2095_v24 = vrot.slane %v8513_v41, 5  ;;  %v6826_v13 = vcombine.low %v2086_v7, %v2089_v23 }
 0x192   : > { %v11044_v8 = vadd.f32 %v10922_v61, %v3466_v36  ;;  %v7087_v22 = vpop.f32.mrb[52].mxu0  ;;  %v7210_v54 = vadd.f32 %v7209_v37, %v7208_v31  ;;  %v2094_v18 = vrot.slane %v2092_v40, 4  ;;  %v8401_v31 = vld [vmem:[#allocation2 + $0x60] sm:$0xff]   ;;  %v3370_v55 = vadd.f32 %v10380_v56, %v10735_v58  ;;  %p8544_p10 = pnand %p8543_p6, %p12355_p9  ;;  %p8551_p4 = por %p8550_p3, %p8549_p2 }
 0x193   : > { %v7088_v5 = vpop.f32.mrb[53].mxu0  ;;  %v2093_v14 = vsel %vm8805_vm4, %v6683_v12, %v2092_v40  ;;  %7473 = vmatprep.subr.bf16.mxu1 %v8401_v31 }
 0x194   : > { %v7089_v9 = vadd.f32 %v7088_v5, %v7087_v22  ;;  %v7090_v11 = vpop.f32.mrb[54].mxu0  ;;  %v2096_v38 = vsel %vm8805_vm4, %v2094_v18, %v2095_v24  ;;  %7474 = vmatpush3.bf16.msra.mxu1 %v8402_v28  ;;  %p8545_p12 = pneg %p8544_p10 }
 0x195   : > { %v7091_v25 = vpop.f32.mrb[55].mxu0  ;;  %v6827_v35 = vcombine.low %v2093_v14, %v2096_v38  ;;  %v8403_v38 = vld [vmem:[#allocation2 + $0x68] sm:$0xff]  }
 0x196   : > { %v3471_v2 = vadd.f32 %v7089_v9, %v10735_v58  ;;  %v7092_v32 = vadd.f32 %v7091_v25, %v7090_v11  ;;  %v7211_v52 = vpop.f32.mrb[44].mxu1  ;;  %7475 = vmatprep.subr.bf16.mxu1 %v8403_v38  ;;  %p8552_p7 = pnand %p8551_p4, %p8545_p12 }
 0x197   : > { %7994 = vmatmul.mubr.bf16.gmra.mrb[160].mxu0 %v6825_v33  ;;  %v7212_v36 = vpop.f32.mrb[45].mxu1  ;;  %v12323_v33 = vcombine.low %v10899_v47, %v10916_v16 }
 0x198   : > { %v3474_v61 = vadd.f32 %v7092_v32, %v10735_v58  ;;  %v11049_v20 = vadd.f32 %v7201_v6, %v3471_v2  ;;  %7997 = vmatprep.mubr.bf16.mxu0 %v6826_v13  ;;  %v7213_v27 = vadd.f32 %v7212_v36, %v7211_v52  ;;  %v7214_v0 = vpop.f32.mrb[46].mxu1  ;;  %v3367_v2 = vadd.f32 %v10364_v51, %v10735_v58  ;;  %v8404_v52 = vld [vmem:[#allocation2 + $0x28] sm:$0xff]  }
 0x199   : > { %v7215_v46 = vpop.f32.mrb[47].mxu1  ;;  %7476 = vmatpush3.bf16.msra.mxu1 %v8404_v52 }
 0x19a   : > { %v11055_v34 = vadd.f32 %v7204_v4, %v3474_v61  ;;  %v7093_v48 = vpop.f32.mrb[56].mxu0  ;;  %v7216_v7 = vadd.f32 %v7215_v46, %v7214_v0  ;;  %v12324_v46 = vld [vmem:[#allocation13_spill] sm:$0xff] }
 0x19b   : > { %v7094_v10 = vpop.f32.mrb[57].mxu0 }
 0x19c   : > { %v7095_v49 = vadd.f32 %v7094_v10, %v7093_v48  ;;  %v7096_v6 = vpop.f32.mrb[58].mxu0  ;;  %v3375_v10 = vadd.f32 %v10419_v42, %v10735_v58  ;;  %v12325_v42 = vld [vmem:[#allocation9_spill] sm:$0xff] }
 0x19d   : > { %v7097_v23 = vpop.f32.mrb[59].mxu0 }
 0x19e   : > { %v3479_v22 = vadd.f32 %v7095_v49, %v10735_v58  ;;  %v7098_v40 = vadd.f32 %v7097_v23, %v7096_v6  ;;  %v3378_v49 = vadd.f32 %v12324_v46, %v10735_v58 }
 0x19f   : > { %7998 = vmatmul.mubr.bf16.gmra.mrb[164].mxu0 %v6827_v35 }
 0x1a0   : > { %v3482_v5 = vadd.f32 %v7098_v40, %v10735_v58  ;;  %v11059_v4 = vadd.f32 %v7207_v53, %v3479_v22  ;;  %8001 = vmatprep.mubr.bf16.mxu0 %v12323_v33 }
 0x1a2   : > { %v11064_v37 = vadd.f32 %v7210_v54, %v3482_v5  ;;  %v7099_v12 = vpop.f32.mrb[60].mxu0 }
 0x1a3   : > { %v7100_v41 = vpop.f32.mrb[61].mxu0 }
 0x1a4   : > { %v7101_v24 = vadd.f32 %v7100_v41, %v7099_v12  ;;  %v7102_v9 = vpop.f32.mrb[62].mxu0  ;;  %v3383_v12 = vadd.f32 %v12325_v42, %v10735_v58 }
 0x1a5   : > { %v7103_v11 = vpop.f32.mrb[63].mxu0 }
 0x1a6   : > { %v3487_v13 = vadd.f32 %v7101_v24, %v10735_v58  ;;  %v7104_v18 = vadd.f32 %v7103_v11, %v7102_v9 }
 0x1a7   : > { %8002 = vmatmul.mubr.bf16.gmra.mrb[168].mxu0 %v6829_v19 }
 0x1a8   : > { %v3490_v53 = vadd.f32 %v7104_v18, %v10735_v58  ;;  %v11071_v47 = vadd.f32 %v7213_v27, %v3487_v13  ;;  %8005 = vmatprep.mubr.bf16.mxu0 %v6830_v26  ;;  %v12326_v18 = vld [vmem:[#allocation16_spill] sm:$0xff] }
 0x1aa   : > { %v11076_v16 = vadd.f32 %v7216_v7, %v3490_v53  ;;  %v7121_v54 = vpop.f32.mrb[64].mxu0  ;;  %v3386_v53 = vadd.f32 %v12326_v18, %v10735_v58 }
 0x1ab   : > { %v7122_v25 = vpop.f32.mrb[65].mxu0 }
 0x1ac   : > { %v7123_v32 = vadd.f32 %v7122_v25, %v7121_v54  ;;  %v7124_v61 = vpop.f32.mrb[66].mxu0  ;;  %v8405_v25 = vld [vmem:[#allocation2 + $0x70] sm:$0xff]  }
 0x1ad   : > { %v7125_v14 = vpop.f32.mrb[67].mxu0  ;;  %7477 = vmatprep.subr.bf16.mxu1 %v8405_v25 }
 0x1ae   : > { %v11080_v17 = vadd.f32 %v7123_v32, %v3367_v2  ;;  %v7126_v19 = vadd.f32 %v7125_v14, %v7124_v61  ;;  %v7345_v39 = vpop.f32.mrb[48].mxu1  ;;  %v8406_v2 = vld [vmem:[#allocation2 + $0x30] sm:$0xff]   ;;  %v8407_v32 = vld [vmem:[#allocation2 + $0xc0] sm:$0xff]  }
 0x1af   : > { %8006 = vmatmul.mubr.bf16.gmra.mrb[172].mxu0 %v6831_v57  ;;  %v7346_v26 = vpop.f32.mrb[49].mxu1  ;;  %7577 = vmatprep.subr.bf16.mxu0 %v8407_v32 }
 0x1b0   : > { %v11087_v15 = vadd.f32 %v7126_v19, %v3370_v55  ;;  %v11089_v51 = vadd.f32 %v7346_v26, %v7345_v39  ;;  %v7348_v36 = vpop.f32.mrb[50].mxu1  ;;  %v8408_v55 = vld [vmem:[#allocation2 + $0x80] sm:$0xff]   ;;  %v8409_v19 = vld [vmem:[#allocation2 + $0xc8] sm:$0xff]   ;;  %7478 = vmatpush3.bf16.msra.mxu1 %v8406_v2 }
 0x1b1   : > { %v7349_v27 = vpop.f32.mrb[51].mxu1  ;;  %7578 = vmatpush3.bf16.msra.mxu0 %v8408_v55 }
 0x1b2   : > { %v7127_v48 = vpop.f32.mrb[68].mxu0  ;;  %v11091_v56 = vadd.f32 %v7349_v27, %v7348_v36  ;;  %v8410_v36 = vld [vmem:[#allocation2 + $0x88] sm:$0xff]   ;;  %7579 = vmatprep.subr.bf16.mxu0 %v8409_v19  ;;  %v8415_v19 = vld [vmem:[#allocation2 + $0x78] sm:$0xff]  }
 0x1b3   : > { %v7128_v0 = vpop.f32.mrb[69].mxu0  ;;  %7479 = vmatprep.subr.bf16.mxu1 %v8415_v19 }
 0x1b4   : > { %v7129_v35 = vadd.f32 %v7128_v0, %v7127_v48  ;;  %v7130_v45 = vpop.f32.mrb[70].mxu0  ;;  %v12327_v0 = vld [vmem:[#allocation11_spill] sm:$0xff] }
 0x1b5   : > { %v7131_v1 = vpop.f32.mrb[71].mxu0  ;;  %7580 = vmatpush3.bf16.msra.mxu0 %v8410_v36 }
 0x1b6   : > { %v11095_v57 = vadd.f32 %v7129_v35, %v3375_v10  ;;  %v7132_v6 = vadd.f32 %v7131_v1, %v7130_v45  ;;  %v3391_v10 = vadd.f32 %v12327_v0, %v10735_v58 }
 0x1b7   : > { %v7351_v23 = vpop.f32.mrb[52].mxu1 }
 0x1b8   : > { %v11099_v7 = vadd.f32 %v7132_v6, %v3378_v49  ;;  %v7352_v22 = vpop.f32.mrb[53].mxu1  ;;  %v12328_v6 = vld [vmem:[#allocation15_spill] sm:$0xff] }
 0x1b9   : > { %v11101_v31 = vadd.f32 %v7352_v22, %v7351_v23  ;;  %v7354_v28 = vpop.f32.mrb[54].mxu1  ;;  %v3394_v23 = vadd.f32 %v12328_v6, %v10735_v58 }
 0x1ba   : > { %v7133_v40 = vpop.f32.mrb[72].mxu0  ;;  %v7355_v33 = vpop.f32.mrb[55].mxu1 }
 0x1bb   : > { %v7134_v5 = vpop.f32.mrb[73].mxu0  ;;  %v11105_v9 = vadd.f32 %v7355_v33, %v7354_v28  ;;  %v8413_v33 = vld [vmem:[#allocation2 + $0xd8] sm:$0xff]  }
 0x1bc   : > { %v7135_v41 = vadd.f32 %v7134_v5, %v7133_v40  ;;  %v7136_v24 = vpop.f32.mrb[74].mxu0  ;;  %v8411_v40 = vld [vmem:[#allocation2 + $0xd0] sm:$0xff]  }
 0x1bd   : > { %v7137_v11 = vpop.f32.mrb[75].mxu0  ;;  %7581 = vmatprep.subr.bf16.mxu0 %v8411_v40  ;;  %v8412_v5 = vld [vmem:[#allocation2 + $0x90] sm:$0xff]   ;;  %v8417_v40 = vld [vmem:[#allocation2 + $0xe0] sm:$0xff]  }
 0x1be   : > { %v11107_v13 = vadd.f32 %v7135_v41, %v3383_v12  ;;  %v7138_v54 = vadd.f32 %v7137_v11, %v7136_v24  ;;  %7582 = vmatpush3.bf16.msra.mxu0 %v8412_v5  ;;  %v8414_v41 = vld [vmem:[#allocation2 + $0x98] sm:$0xff]  }
 0x1bf   : > { %v7357_v14 = vpop.f32.mrb[56].mxu1  ;;  %7583 = vmatprep.subr.bf16.mxu0 %v8413_v33  ;;  %v8418_v33 = vld [vmem:[#allocation2 + $0xa0] sm:$0xff]  }
 0x1c0   : > { %v11111_v61 = vadd.f32 %v7138_v54, %v3386_v53  ;;  %v7358_v38 = vpop.f32.mrb[57].mxu1 }
 0x1c1   : > { %v11113_v39 = vadd.f32 %v7358_v38, %v7357_v14  ;;  %v7360_v26 = vpop.f32.mrb[58].mxu1 }
 0x1c2   : > { %v7139_v52 = vpop.f32.mrb[76].mxu0  ;;  %v7361_v27 = vpop.f32.mrb[59].mxu1  ;;  %7584 = vmatpush3.bf16.msra.mxu0 %v8414_v41 }
 0x1c3   : > { %v7140_v48 = vpop.f32.mrb[77].mxu0  ;;  %v11117_v1 = vadd.f32 %v7361_v27, %v7360_v26  ;;  %7585 = vmatprep.subr.bf16.mxu0 %v8417_v40 }
 0x1c4   : > { %v7141_v35 = vadd.f32 %v7140_v48, %v7139_v52  ;;  %v7142_v45 = vpop.f32.mrb[78].mxu0 }
 0x1c5   : > { %v7143_v46 = vpop.f32.mrb[79].mxu0 }
 0x1c6   : > { %v11119_v49 = vadd.f32 %v7141_v35, %v3391_v10  ;;  %v7144_v22 = vadd.f32 %v7143_v46, %v7142_v45  ;;  %7586 = vmatpush3.bf16.msra.mxu0 %v8418_v33 }
 0x1c7   : > { %v7363_v12 = vpop.f32.mrb[60].mxu1 }
 0x1c8   : > { %v11123_v28 = vadd.f32 %v7144_v22, %v3394_v23  ;;  %v7364_v11 = vpop.f32.mrb[61].mxu1  ;;  %v8416_v22 = vld [vmem:[#allocation2 + $0x38] sm:$0xff]  }
 0x1c9   : > { %v11125_v54 = vadd.f32 %v7364_v11, %v7363_v12  ;;  %v7366_v58 = vpop.f32.mrb[62].mxu1  ;;  %7480 = vmatpush3.bf16.msra.mxu1 %v8416_v22 }
 0x1ca   : > { %v7233_v42 = vpop.f32.mrb[80].mxu0  ;;  %v7367_v2 = vpop.f32.mrb[63].mxu1 }
 0x1cb   : > { %v7234_v24 = vpop.f32.mrb[81].mxu0  ;;  %v11128_v55 = vadd.f32 %v7367_v2, %v7366_v58 }
 0x1cc   : > { %v7235_v18 = vadd.f32 %v7234_v24, %v7233_v42  ;;  %v7236_v53 = vpop.f32.mrb[82].mxu0  ;;  %v8419_v42 = vld [vmem:[#allocation2 + $0xe8] sm:$0xff]  }
 0x1cd   : > { %v7237_v25 = vpop.f32.mrb[83].mxu0  ;;  %7587 = vmatprep.subr.bf16.mxu0 %v8419_v42 }
 0x1ce   : > { %v3689_v32 = vadd.f32 %v7235_v18, %v11080_v17  ;;  %v7238_v14 = vadd.f32 %v7237_v25, %v7236_v53 }
 0x1cf   : > { %v7369_v36 = vpop.f32.mrb[64].mxu1 }
 0x1d0   : > { %v3692_v38 = vadd.f32 %v7238_v14, %v11087_v15  ;;  %v11132_v52 = vadd.f32 %v11089_v51, %v3689_v32  ;;  %v7370_v0 = vpop.f32.mrb[65].mxu1  ;;  %v8421_v14 = vld [vmem:[#allocation2 + $0xf0] sm:$0xff]  }
 0x1d1   : > { %v11137_v35 = vadd.f32 %v7370_v0, %v7369_v36  ;;  %v7372_v45 = vpop.f32.mrb[66].mxu1  ;;  %v8613_v0 = vmov 0  }
 0x1d2   : > { %v7239_v26 = vpop.f32.mrb[84].mxu0  ;;  %v11135_v48 = vadd.f32 %v11091_v56, %v3692_v38  ;;  %v7373_v6 = vpop.f32.mrb[67].mxu1 }
 0x1d3   : > { %v7240_v27 = vpop.f32.mrb[85].mxu0  ;;  %v11140_v51 = vadd.f32 %v7373_v6, %v7372_v45 }
 0x1d4   : > { %v7241_v10 = vadd.f32 %v7240_v27, %v7239_v26  ;;  %v7242_v17 = vpop.f32.mrb[86].mxu0  ;;  %v8422_v27 = vld [vmem:[#allocation2 + $0xb0] sm:$0xff]  }
 0x1d5   : > { %v7243_v46 = vpop.f32.mrb[87].mxu0 }
 0x1d6   : > { %v3697_v15 = vadd.f32 %v7241_v10, %v11095_v57  ;;  %v7244_v23 = vadd.f32 %v7243_v46, %v7242_v17  ;;  %v8420_v57 = vld [vmem:[#allocation2 + $0xa8] sm:$0xff]   ;;  %v4188_v10 = vrot.slane %v8613_v0, 7  ;;  %v8425_v17 = vld [vmem:[#allocation2 + $0x140] sm:$0xff]  }
 0x1d7   : > { %7588 = vmatpush3.bf16.msra.mxu0 %v8420_v57  ;;  %7689 = vmatprep.subr.bf16.mxu1 %v8425_v17 }
 0x1d8   : > { %v3700_v5 = vadd.f32 %v7244_v23, %v11099_v7  ;;  %v11144_v56 = vadd.f32 %v11101_v31, %v3697_v15  ;;  %7589 = vmatprep.subr.bf16.mxu0 %v8421_v14  ;;  %v11167_v15 = vsel %vm11155_vm8, 0, %v4188_v10  ;;  %v8426_v14 = vld [vmem:[#allocation2 + $0x100] sm:$0xff]  }
 0x1da   : > { %v7245_v12 = vpop.f32.mrb[88].mxu0  ;;  %v11147_v41 = vadd.f32 %v11105_v9, %v3700_v5  ;;  %v7375_v53 = vpop.f32.mrb[68].mxu1  ;;  %v4377_v5 = vshrl.u32 %v11167_v15, 16 }
 0x1db   : > { %v7246_v24 = vpop.f32.mrb[89].mxu0  ;;  %v7376_v7 = vpop.f32.mrb[69].mxu1  ;;  %7590 = vmatpush3.bf16.msra.mxu0 %v8422_v27 }
 0x1dc   : > { %v7247_v11 = vadd.f32 %v7246_v24, %v7245_v12  ;;  %v7248_v18 = vpop.f32.mrb[90].mxu0  ;;  %v11150_v2 = vadd.f32 %v7376_v7, %v7375_v53  ;;  %v7378_v32 = vpop.f32.mrb[70].mxu1 }
 0x1dd   : > { %v7249_v58 = vpop.f32.mrb[91].mxu0  ;;  %v7379_v9 = vpop.f32.mrb[71].mxu1 }
 0x1de   : > { %v3705_v31 = vadd.f32 %v7247_v11, %v11107_v13  ;;  %v7250_v25 = vadd.f32 %v7249_v58, %v7248_v18  ;;  %v11153_v38 = vadd.f32 %v7379_v9, %v7378_v32  ;;  %v8423_v13 = vld [vmem:[#allocation2 + $0xf8] sm:$0xff]  }
 0x1df   : > { %7591 = vmatprep.subr.bf16.mxu0 %v8423_v13 }
 0x1e0   : > { %v3708_v19 = vadd.f32 %v7250_v25, %v11111_v61  ;;  %v11160_v36 = vadd.f32 %v11113_v39, %v3705_v31  ;;  %v8424_v61 = vld [vmem:[#allocation2 + $0xb8] sm:$0xff]   ;;  %v11171_v39 = vsel %vm11155_vm8, %v4188_v10, 0 }
 0x1e1   : > { %v4384_v33 = vshll.u32 %v11171_v39, 16  ;;  %7592 = vmatpush3.bf16.msra.mxu0 %v8424_v61 }
 0x1e2   : > { %v7251_v45 = vpop.f32.mrb[92].mxu0  ;;  %v11163_v46 = vadd.f32 %v11117_v1, %v3708_v19  ;;  %v7381_v40 = vpop.f32.mrb[72].mxu1  ;;  %v4379_v1 = vshll.u32 %v11167_v15, 16 }
 0x1e3   : > { %v7252_v6 = vpop.f32.mrb[93].mxu0  ;;  %v7382_v12 = vpop.f32.mrb[73].mxu1  ;;  %v4386_v7 = vrot.slane %v4384_v33, 1 }
 0x1e4   : > { %v7253_v23 = vadd.f32 %v7252_v6, %v7251_v45  ;;  %v7254_v22 = vpop.f32.mrb[94].mxu0  ;;  %v7383_v11 = vadd.f32 %v7382_v12, %v7381_v40  ;;  %v7384_v18 = vpop.f32.mrb[74].mxu1  ;;  %v4381_v53 = vrot.slane %v4379_v1, 1  ;;  %v8427_v40 = vld [vmem:[#allocation2 + $0x148] sm:$0xff]  }
 0x1e5   : > { %v7255_v42 = vpop.f32.mrb[95].mxu0  ;;  %v7385_v58 = vpop.f32.mrb[75].mxu1 }
 0x1e6   : > { %v3713_v57 = vadd.f32 %v7253_v23, %v11119_v49  ;;  %v7256_v24 = vadd.f32 %v7255_v42, %v7254_v22  ;;  %v7386_v25 = vadd.f32 %v7385_v58, %v7384_v18  ;;  %v4382_v9 = vor.u32 %v4381_v53, %v4377_v5  ;;  %v8428_v58 = vld [vmem:[#allocation2 + $0x108] sm:$0xff]  }
 0x1e8   : > { %v3716_v31 = vadd.f32 %v7256_v24, %v11123_v28  ;;  %v11179_v32 = vadd.f32 %v11125_v54, %v3713_v57  ;;  %v11185_v49 = vsel %vm4375_vm9, %v4382_v9, %v4386_v7 }
 0x1e9   : > { %5315 = vmatprep.mubr.bf16.mxu1 %v11185_v49 }
 0x1ea   : > { %v7257_v19 = vpop.f32.mrb[96].mxu0  ;;  %v11182_v27 = vadd.f32 %v11128_v55, %v3716_v31  ;;  %5316 = vmatmul.mubr.bf16.vlgmr.msra.gmra.mrb[112].mxu1 %v11167_v15 }
 0x1eb   : > { %v7258_v13 = vpop.f32.mrb[97].mxu0  ;;  %7690 = vmatpush3.bf16.msra.mxu1 %v8426_v14 }
 0x1ec   : > { %v7259_v0 = vadd.f32 %v7258_v13, %v7257_v19  ;;  %v7260_v10 = vpop.f32.mrb[98].mxu0  ;;  %v7387_v45 = vpop.f32.mrb[76].mxu1  ;;  %7691 = vmatprep.subr.bf16.mxu1 %v8427_v40 }
 0x1ed   : > { %v7261_v28 = vpop.f32.mrb[99].mxu0  ;;  %v7388_v61 = vpop.f32.mrb[77].mxu1 }
 0x1ee   : > { %v3721_v54 = vadd.f32 %v7259_v0, %v10985_v60  ;;  %v7262_v17 = vadd.f32 %v7261_v28, %v7260_v10  ;;  %v7389_v6 = vadd.f32 %v7388_v61, %v7387_v45  ;;  %v7390_v23 = vpop.f32.mrb[78].mxu1  ;;  %v8429_v61 = vld [vmem:[#allocation2 + $0x150] sm:$0xff]  }
 0x1ef   : > { %v7391_v5 = vpop.f32.mrb[79].mxu1  ;;  %7692 = vmatpush3.bf16.msra.mxu1 %v8428_v58 }
 0x1f0   : > { %v3724_v55 = vadd.f32 %v7262_v17, %v10991_v29  ;;  %v11192_v22 = vadd.f32 %v11137_v35, %v3721_v54  ;;  %v7392_v33 = vadd.f32 %v7391_v5, %v7390_v23  ;;  %7693 = vmatprep.subr.bf16.mxu1 %v8429_v61 }
 0x1f2   : > { %v7263_v1 = vpop.f32.mrb[100].mxu0  ;;  %v11195_v42 = vadd.f32 %v11140_v51, %v3724_v55 }
 0x1f3   : > { %v7264_v12 = vpop.f32.mrb[101].mxu0 }
 0x1f4   : > { %v7265_v60 = vadd.f32 %v7264_v12, %v7263_v1  ;;  %v7266_v57 = vpop.f32.mrb[102].mxu0 }
 0x1f5   : > { %v7267_v24 = vpop.f32.mrb[103].mxu0 }
 0x1f6   : > { %v3729_v18 = vadd.f32 %v7265_v60, %v10995_v62  ;;  %v7268_v29 = vadd.f32 %v7267_v24, %v7266_v57  ;;  %v7393_v53 = vpop.f32.mrb[80].mxu1 }
 0x1f7   : > { %v7394_v7 = vpop.f32.mrb[81].mxu1 }
 0x1f8   : > { %v3732_v35 = vadd.f32 %v7268_v29, %v10999_v44  ;;  %v11200_v31 = vadd.f32 %v11150_v2, %v3729_v18  ;;  %v7395_v9 = vadd.f32 %v7394_v7, %v7393_v53  ;;  %v7396_v14 = vpop.f32.mrb[82].mxu1 }
 0x1f9   : > { %v7397_v19 = vpop.f32.mrb[83].mxu1 }
 0x1fa   : > { %v7269_v51 = vpop.f32.mrb[104].mxu0  ;;  %v11203_v13 = vadd.f32 %v11153_v38, %v3732_v35  ;;  %v7398_v10 = vadd.f32 %v7397_v19, %v7396_v14 }
 0x1fb   : > { %v7270_v0 = vpop.f32.mrb[105].mxu0 }
 0x1fc   : > { %v7271_v62 = vadd.f32 %v7270_v0, %v7269_v51  ;;  %v7272_v28 = vpop.f32.mrb[106].mxu0 }
 0x1fd   : > { %v7273_v54 = vpop.f32.mrb[107].mxu0 }
 0x1fe   : > { %v3737_v17 = vadd.f32 %v7271_v62, %v11003_v63  ;;  %v7274_v44 = vadd.f32 %v7273_v54, %v7272_v28 }
 0x200   : > { %v3740_v45 = vadd.f32 %v7274_v44, %v11007_v43  ;;  %v11207_v2 = vadd.f32 %v7383_v11, %v3737_v17  ;;  %v7399_v55 = vpop.f32.mrb[84].mxu1  ;;  %v8430_v11 = vld [vmem:[#allocation2 + $0x110] sm:$0xff]   ;;  %v12331_v44 = vld [vmem:[#allocation17_spill] sm:$0xff] }
 0x201   : > { %v7400_v40 = vpop.f32.mrb[85].mxu1  ;;  %7694 = vmatpush3.bf16.msra.mxu1 %v8430_v11 }
 0x202   : > { %v7275_v23 = vpop.f32.mrb[108].mxu0  ;;  %v11209_v5 = vadd.f32 %v7386_v25, %v3740_v45  ;;  %v7401_v1 = vadd.f32 %v7400_v40, %v7399_v55  ;;  %v7402_v12 = vpop.f32.mrb[86].mxu1  ;;  %v8432_v40 = vld [vmem:[#allocation2 + $0x118] sm:$0xff]  }
 0x203   : > { %v7276_v38 = vpop.f32.mrb[109].mxu0  ;;  %v7403_v24 = vpop.f32.mrb[87].mxu1 }
 0x204   : > { %v7277_v60 = vadd.f32 %v7276_v38, %v7275_v23  ;;  %v7278_v57 = vpop.f32.mrb[110].mxu0  ;;  %v7404_v63 = vadd.f32 %v7403_v24, %v7402_v12  ;;  %v8431_v23 = vld [vmem:[#allocation2 + $0x158] sm:$0xff]  }
 0x205   : > { %v7279_v18 = vpop.f32.mrb[111].mxu0  ;;  %7695 = vmatprep.subr.bf16.mxu1 %v8431_v23 }
 0x206   : > { %v3745_v29 = vadd.f32 %v7277_v60, %v11011_v59  ;;  %v7280_v43 = vadd.f32 %v7279_v18, %v7278_v57  ;;  %7696 = vmatpush3.bf16.msra.mxu1 %v8432_v40 }
 0x208   : > { %v3748_v53 = vadd.f32 %v7280_v43, %v11014_v30  ;;  %v11213_v58 = vadd.f32 %v7389_v6, %v3745_v29  ;;  %v7405_v35 = vpop.f32.mrb[88].mxu1  ;;  %v12332_v30 = vld [vmem:[#allocation21_spill] sm:$0xff] }
 0x209   : > { %v7406_v7 = vpop.f32.mrb[89].mxu1  ;;  %v12333_v43 = vld [vmem:[#allocation25_spill] sm:$0xff] }
 0x20a   : > { %v7281_v25 = vpop.f32.mrb[112].mxu0  ;;  %v11215_v14 = vadd.f32 %v7392_v33, %v3748_v53  ;;  %v7407_v19 = vadd.f32 %v7406_v7, %v7405_v35  ;;  %v7408_v0 = vpop.f32.mrb[90].mxu1  ;;  %v12334_v7 = vld [vmem:[#allocation26_spill] sm:$0xff] }
 0x20b   : > { %v7282_v51 = vpop.f32.mrb[113].mxu0  ;;  %v7409_v54 = vpop.f32.mrb[91].mxu1 }
 0x20c   : > { %v7283_v62 = vadd.f32 %v7282_v51, %v7281_v25  ;;  %v7284_v28 = vpop.f32.mrb[114].mxu0  ;;  %v7410_v59 = vadd.f32 %v7409_v54, %v7408_v0 }
 0x20d   : > { %v7285_v17 = vpop.f32.mrb[115].mxu0 }
 0x20e   : > { %v3753_v45 = vadd.f32 %v7283_v62, %v12331_v44  ;;  %v7286_v61 = vadd.f32 %v7285_v17, %v7284_v28 }
 0x210   : > { %v3756_v6 = vadd.f32 %v7286_v61, %v12332_v30  ;;  %v11219_v55 = vadd.f32 %v7395_v9, %v3753_v45  ;;  %v8433_v45 = vld [vmem:[#allocation2 + $0x160] sm:$0xff]  }
 0x211   : > { %v8434_v30 = vld [vmem:[#allocation2 + $0x120] sm:$0xff]   ;;  %7697 = vmatprep.subr.bf16.mxu1 %v8433_v45 }
 0x212   : > { %v7287_v38 = vpop.f32.mrb[116].mxu0  ;;  %v11221_v33 = vadd.f32 %v7398_v10, %v3756_v6  ;;  %v12335_v6 = vld [vmem:[#allocation28_spill] sm:$0xff]  ;;  %7698 = vmatpush3.bf16.msra.mxu1 %v8434_v30 }
 0x213   : > { %v7288_v12 = vpop.f32.mrb[117].mxu0  ;;  %v7411_v24 = vpop.f32.mrb[92].mxu1 }
 0x214   : > { %v7289_v60 = vadd.f32 %v7288_v12, %v7287_v38  ;;  %v7290_v57 = vpop.f32.mrb[118].mxu0  ;;  %v7412_v29 = vpop.f32.mrb[93].mxu1 }
 0x215   : > { %v7291_v18 = vpop.f32.mrb[119].mxu0  ;;  %v7413_v35 = vadd.f32 %v7412_v29, %v7411_v24  ;;  %v7414_v25 = vpop.f32.mrb[94].mxu1 }
 0x216   : > { %v3761_v11 = vadd.f32 %v7289_v60, %v12333_v43  ;;  %v7292_v53 = vadd.f32 %v7291_v18, %v7290_v57  ;;  %v7415_v9 = vpop.f32.mrb[95].mxu1  ;;  %v12336_v60 = vld [vmem:[#allocation29_spill] sm:$0xff] }
 0x217   : > { %v7416_v0 = vadd.f32 %v7415_v9, %v7414_v25 }
 0x218   : > { %v3764_v51 = vadd.f32 %v7292_v53, %v12334_v7  ;;  %v11225_v62 = vadd.f32 %v7401_v1, %v3761_v11 }
 0x21a   : > { %v7293_v10 = vpop.f32.mrb[120].mxu0  ;;  %v11227_v28 = vadd.f32 %v7404_v63, %v3764_v51 }
 0x21b   : > { %v7294_v54 = vpop.f32.mrb[121].mxu0 }
 0x21c   : > { %v7295_v17 = vadd.f32 %v7294_v54, %v7293_v10  ;;  %v7296_v44 = vpop.f32.mrb[122].mxu0 }
 0x21d   : > { %v7297_v61 = vpop.f32.mrb[123].mxu0 }
 0x21e   : > { %v3769_v23 = vadd.f32 %v7295_v17, %v12335_v6  ;;  %v7298_v40 = vadd.f32 %v7297_v61, %v7296_v44  ;;  %v7417_v38 = vpop.f32.mrb[96].mxu1 }
 0x21f   : > { %v7418_v12 = vpop.f32.mrb[97].mxu1 }
 0x220   : > { %v3772_v57 = vadd.f32 %v7298_v40, %v12336_v60  ;;  %v7419_v1 = vadd.f32 %v7418_v12, %v7417_v38  ;;  %v7420_v24 = vpop.f32.mrb[98].mxu1  ;;  %v11231_v18 = vadd.f32 %v7407_v19, %v3769_v23  ;;  %v8435_v60 = vld [vmem:[#allocation2 + $0x168] sm:$0xff]  }
 0x221   : > { %v7421_v63 = vpop.f32.mrb[99].mxu1  ;;  %7699 = vmatprep.subr.bf16.mxu1 %v8435_v60  ;;  %v8437_v60 = vld [vmem:[#allocation2 + $0x170] sm:$0xff]  }
 0x222   : > { %v7299_v29 = vpop.f32.mrb[124].mxu0  ;;  %v7422_v43 = vadd.f32 %v7421_v63, %v7420_v24  ;;  %v11233_v11 = vadd.f32 %v7410_v59, %v3772_v57 }
 0x223   : > { %v7300_v53 = vpop.f32.mrb[125].mxu0 }
 0x224   : > { %v7301_v25 = vadd.f32 %v7300_v53, %v7299_v29  ;;  %v7302_v9 = vpop.f32.mrb[126].mxu0 }
 0x225   : > { %v7303_v7 = vpop.f32.mrb[127].mxu0 }
 0x226   : > { %v3777_v51 = vadd.f32 %v7301_v25, %v10949_v50  ;;  %v7304_v10 = vadd.f32 %v7303_v7, %v7302_v9  ;;  %v8436_v50 = vld [vmem:[#allocation2 + $0x128] sm:$0xff]  }
 0x227   : > { %7700 = vmatpush3.bf16.msra.mxu1 %v8436_v50  ;;  %v8438_v50 = vld [vmem:[#allocation2 + $0x130] sm:$0xff]  }
 0x228   : > { %v3780_v54 = vadd.f32 %v7304_v10, %v10972_v21  ;;  %v7423_v17 = vpop.f32.mrb[100].mxu1  ;;  %v11237_v44 = vadd.f32 %v7413_v35, %v3777_v51  ;;  %7701 = vmatprep.subr.bf16.mxu1 %v8437_v60  ;;  %v8447_v60 = vld [vmem:[#allocation2 + $0x178] sm:$0xff]  }
 0x229   : > { %v7424_v45 = vpop.f32.mrb[101].mxu1 }
 0x22a   : > { %v7305_v19 = vpop.f32.mrb[128].mxu0  ;;  %v7425_v61 = vadd.f32 %v7424_v45, %v7423_v17  ;;  %v7426_v30 = vpop.f32.mrb[102].mxu1  ;;  %v11239_v6 = vadd.f32 %v7416_v0, %v3780_v54 }
 0x22b   : > { %v7306_v59 = vpop.f32.mrb[129].mxu0  ;;  %v7427_v23 = vpop.f32.mrb[103].mxu1  ;;  %7702 = vmatpush3.bf16.msra.mxu1 %v8438_v50 }
 0x22c   : > { %v7307_v40 = vadd.f32 %v7306_v59, %v7305_v19  ;;  %v7308_v38 = vpop.f32.mrb[130].mxu0  ;;  %v7428_v12 = vadd.f32 %v7427_v23, %v7426_v30  ;;  %7703 = vmatprep.subr.bf16.mxu1 %v8447_v60 }
 0x22d   : > { %v7309_v57 = vpop.f32.mrb[131].mxu0 }
 0x22e   : > { %v3785_v24 = vadd.f32 %v7307_v40, %v11024_v3  ;;  %v7310_v21 = vadd.f32 %v7309_v57, %v7308_v38 }
 0x230   : > { %v3788_v35 = vadd.f32 %v7310_v21, %v11044_v8  ;;  %v11243_v63 = vadd.f32 %v7419_v1, %v3785_v24  ;;  %v8439_v24 = vld [vmem:[#allocation2 + $0x1c0] sm:$0xff]  }
 0x231   : > { %7801 = vmatprep.subr.bf16.mxu0 %v8439_v24  ;;  %v8448_v24 = vld [vmem:[#allocation2 + $0x138] sm:$0xff]  }
 0x232   : > { %v7311_v29 = vpop.f32.mrb[132].mxu0  ;;  %v11245_v0 = vadd.f32 %v7422_v43, %v3788_v35  ;;  %7704 = vmatpush3.bf16.msra.mxu1 %v8448_v24 }
 0x233   : > { %v7312_v53 = vpop.f32.mrb[133].mxu0  ;;  %v7429_v25 = vpop.f32.mrb[104].mxu1 }
 0x234   : > { %v7313_v9 = vadd.f32 %v7312_v53, %v7311_v29  ;;  %v7314_v7 = vpop.f32.mrb[134].mxu0  ;;  %v7430_v51 = vpop.f32.mrb[105].mxu1 }
 0x235   : > { %v7315_v10 = vpop.f32.mrb[135].mxu0  ;;  %v7431_v54 = vadd.f32 %v7430_v51, %v7429_v25  ;;  %v7432_v17 = vpop.f32.mrb[106].mxu1 }
 0x236   : > { %v3793_v3 = vadd.f32 %v7313_v9, %v11049_v20  ;;  %v7316_v45 = vadd.f32 %v7315_v10, %v7314_v7  ;;  %v7433_v19 = vpop.f32.mrb[107].mxu1 }
 0x237   : > { %v7434_v30 = vadd.f32 %v7433_v19, %v7432_v17 }
 0x238   : > { %v3796_v8 = vadd.f32 %v7316_v45, %v11055_v34  ;;  %v11249_v1 = vadd.f32 %v7425_v61, %v3793_v3 }
 0x23a   : > { %v7317_v59 = vpop.f32.mrb[136].mxu0  ;;  %v11251_v43 = vadd.f32 %v7428_v12, %v3796_v8 }
 0x23b   : > { %v7318_v23 = vpop.f32.mrb[137].mxu0 }
 0x23c   : > { %v7319_v40 = vadd.f32 %v7318_v23, %v7317_v59  ;;  %v7320_v38 = vpop.f32.mrb[138].mxu0 }
 0x23d   : > { %v7321_v57 = vpop.f32.mrb[139].mxu0 }
 0x23e   : > { %v3801_v21 = vadd.f32 %v7319_v40, %v11059_v4  ;;  %v7322_v20 = vadd.f32 %v7321_v57, %v7320_v38  ;;  %v7435_v35 = vpop.f32.mrb[108].mxu1 }
 0x23f   : > { %v7436_v29 = vpop.f32.mrb[109].mxu1 }
 0x240   : > { %v3804_v34 = vadd.f32 %v7322_v20, %v11064_v37  ;;  %v7437_v61 = vadd.f32 %v7436_v29, %v7435_v35  ;;  %v7438_v12 = vpop.f32.mrb[110].mxu1  ;;  %v11255_v53 = vadd.f32 %v7431_v54, %v3801_v21 }
 0x241   : > { %v7439_v25 = vpop.f32.mrb[111].mxu1 }
 0x242   : > { %v7323_v9 = vpop.f32.mrb[140].mxu0  ;;  %v7440_v7 = vadd.f32 %v7439_v25, %v7438_v12  ;;  %v11257_v51 = vadd.f32 %v7434_v30, %v3804_v34 }
 0x243   : > { %v7324_v10 = vpop.f32.mrb[141].mxu0 }
 0x244   : > { %v7325_v17 = vadd.f32 %v7324_v10, %v7323_v9  ;;  %v7326_v4 = vpop.f32.mrb[142].mxu0 }
 0x245   : > { %v7327_v3 = vpop.f32.mrb[143].mxu0 }
 0x246   : > { %v3809_v45 = vadd.f32 %v7325_v17, %v11071_v47  ;;  %v7328_v19 = vadd.f32 %v7327_v3, %v7326_v4  ;;  %v4617_v3 = vrot.slane %v11167_v15, 1 }
 0x248   : > { %v3812_v8 = vadd.f32 %v7328_v19, %v11076_v16  ;;  %v11261_v59 = vadd.f32 %v7437_v61, %v3809_v45 }
 0x24a   : > { %v7979_v37 = vpop.f32.mrb[144].mxu0  ;;  %v11263_v23 = vadd.f32 %v7440_v7, %v3812_v8  ;;  %v4618_v7 = vrot.slane %v11171_v39, 1 }
 0x24b   : > { %v4019_v54 = vadd.f32 %v7979_v37, %v11144_v56  ;;  %v4010_v40 = vpop.f32.mrb[145].mxu0 }
 0x24c   : > { %v4011_v30 = vadd.f32 %v4010_v40, %v11132_v52  ;;  %v7980_v38 = vpop.f32.mrb[146].mxu0  ;;  %v11286_v60 = vsel %vm4616_vm10, %v4617_v3, %v4618_v7 }
 0x24d   : > { %v4022_v57 = vadd.f32 %v7980_v38, %v11147_v41  ;;  %v4013_v50 = vpop.f32.mrb[147].mxu0  ;;  %v4139_v16 = vmax.f32 %v4019_v54, 0.0  ;;  %12337 = vst [vmem:[#allocation22_spill] sm:$0xff] %v11286_v60 }
 0x24e   : > { %v4014_v47 = vadd.f32 %v4013_v50, %v11135_v48  ;;  %v4137_v20 = vmax.f32 %v4011_v30, 0.0 }
 0x24f   : > { %v4140_v21 = vmax.f32 %v4022_v57, 0.0  ;;  %v8440_v57 = vld [vmem:[#allocation2 + $0x180] sm:$0xff]  }
 0x250   : > { %v4138_v35 = vmax.f32 %v4014_v47, 0.0 }
 0x251   : > { %v4170_v29 = vpack.c.bf16 %v4140_v21, %v4139_v16  ;;  %v8441_v16 = vld [vmem:[#allocation2 + $0x1c8] sm:$0xff]  }
 0x252   : > { %v4169_v34 = vpack.c.bf16 %v4138_v35, %v4137_v20  ;;  %v7983_v56 = vpop.f32.mrb[148].mxu0 }
 0x253   : > { %v4200_v61 = vshrl.u32 %v4170_v29, 16  ;;  %v4035_v52 = vadd.f32 %v7983_v56, %v11179_v32  ;;  %v4026_v12 = vpop.f32.mrb[149].mxu0  ;;  %v4203_v10 = vshll.u32 %v4170_v29, 16 }
 0x254   : > { %v4193_v25 = vshrl.u32 %v4169_v34, 16  ;;  %v4027_v41 = vadd.f32 %v4026_v12, %v11160_v36  ;;  %v7984_v9 = vpop.f32.mrb[150].mxu0  ;;  %v4196_v19 = vshll.u32 %v4169_v34, 16 }
 0x255   : > { %v4202_v48 = vrot.slane %v4200_v61, 7  ;;  %v4038_v17 = vadd.f32 %v7984_v9, %v11182_v27  ;;  %v4029_v4 = vpop.f32.mrb[151].mxu0  ;;  %v4143_v37 = vmax.f32 %v4035_v52, 0.0 }
 0x256   : > { %v4195_v45 = vrot.slane %v4193_v25, 7  ;;  %v4030_v8 = vadd.f32 %v4029_v4, %v11163_v46  ;;  %v4141_v54 = vmax.f32 %v4027_v41, 0.0 }
 0x257   : > { %v4205_v32 = vor.u32 %v4203_v10, %v4202_v48  ;;  %v4144_v40 = vmax.f32 %v4038_v17, 0.0  ;;  %v11277_v36 = vsel %vm11155_vm8, %v4202_v48, 0  ;;  %v8442_v10 = vld [vmem:[#allocation2 + $0x188] sm:$0xff]  }
 0x258   : > { %v4198_v39 = vor.u32 %v4196_v19, %v4195_v45  ;;  %v11281_v27 = vsel %vm11155_vm8, %v4195_v45, 0  ;;  %v4142_v30 = vmax.f32 %v4030_v8, 0.0  ;;  %v4408_v34 = vshll.u32 %v11277_v36, 16  ;;  %v8443_v19 = vld [vmem:[#allocation2 + $0x1d0] sm:$0xff]  }
 0x259   : > { %v11283_v38 = vpack.c.bf16 %v4144_v40, %v4143_v37  ;;  %v11290_v46 = vsel %vm11155_vm8, 0, %v4205_v32  ;;  %v4396_v35 = vshll.u32 %v11281_v27, 16  ;;  %v4621_v25 = vrot.slane %v11281_v27, 1 }
 0x25a   : > { %v4171_v50 = vpack.c.bf16 %v4142_v30, %v4141_v54  ;;  %v7987_v24 = vpop.f32.mrb[152].mxu0  ;;  %v11294_v47 = vsel %vm11155_vm8, 0, %v4198_v39  ;;  %v4403_v29 = vshll.u32 %v11290_v46, 16 }
 0x25b   : > { %v4051_v21 = vadd.f32 %v7987_v24, %v11200_v31  ;;  %v4042_v20 = vpop.f32.mrb[153].mxu0  ;;  %5476 = vmatprep.mubr.bf16.mxu0 %v11294_v47  ;;  %v4391_v12 = vshll.u32 %v11294_v47, 16  ;;  %v11305_v31 = vld [vmem:[#allocation2 + $0x200] sm:$0xff]   ;;  %v4214_v41 = vshrl.u32 %v11283_v38, 16  ;;  %v4389_v48 = vshrl.u32 %v11294_v47, 16 }
 0x25c   : > { %v4207_v56 = vshrl.u32 %v4171_v50, 16  ;;  %v4043_v61 = vadd.f32 %v4042_v20, %v11192_v22  ;;  %v7988_v52 = vpop.f32.mrb[154].mxu0  ;;  %5477 = vmatmul.mubr.bf16.vlgmr.msra.gmra.mrb[176].mxu0 %v11286_v60  ;;  %v4401_v22 = vshrl.u32 %v11290_v46, 16  ;;  %v4210_v4 = vshll.u32 %v4171_v50, 16  ;;  %8009 = vmatprep.subr.bf16.mxu1 %v11305_v31 }
 0x25d   : > { %v4054_v9 = vadd.f32 %v7988_v52, %v11203_v13  ;;  %v4045_v7 = vpop.f32.mrb[155].mxu0  ;;  %5484 = vmatprep.mubr.bf16.mxu0 %v11290_v46  ;;  %7802 = vmatpush3.bf16.msra.mxu0 %v8440_v57  ;;  %v4393_v45 = vrot.slane %v4391_v12, 1  ;;  %v4147_v8 = vmax.f32 %v4051_v21, 0.0  ;;  %v4398_v32 = vrot.slane %v4396_v35, 1 }
 0x25e   : > { %v4209_v17 = vrot.slane %v4207_v56, 7  ;;  %v4046_v3 = vadd.f32 %v4045_v7, %v11195_v42  ;;  %7803 = vmatprep.subr.bf16.mxu0 %v8441_v16  ;;  %v4405_v37 = vrot.slane %v4403_v29, 1  ;;  %v4145_v40 = vmax.f32 %v4043_v61, 0.0  ;;  %v8444_v29 = vld [vmem:[#allocation2 + $0x190] sm:$0xff]  }
 0x25f   : > { %v4148_v13 = vmax.f32 %v4054_v9, 0.0  ;;  %v4394_v27 = vor.u32 %v4393_v45, %v4389_v48  ;;  %v4216_v30 = vrot.slane %v4214_v41, 7  ;;  %v4620_v50 = vrot.slane %v11294_v47, 1  ;;  %v8445_v41 = vld [vmem:[#allocation2 + $0x1d8] sm:$0xff]  }
 0x260   : > { %v4212_v54 = vor.u32 %v4210_v4, %v4209_v17  ;;  %v4146_v39 = vmax.f32 %v4046_v3, 0.0  ;;  %v4406_v24 = vor.u32 %v4405_v37, %v4401_v22  ;;  %v11319_v42 = vsel %vm11155_vm8, %v4209_v17, 0  ;;  %v8446_v4 = vld [vmem:[#allocation2 + $0x198] sm:$0xff]  }
 0x261   : > { %v11314_v57 = vpack.c.bf16 %v4148_v13, %v4147_v8  ;;  %7804 = vmatpush3.bf16.msra.mxu0 %v8442_v10  ;;  %v11322_v20 = vsel %vm4375_vm9, %v4394_v27, %v4398_v32  ;;  %v4410_v35 = vrot.slane %v4408_v34, 1  ;;  %v4217_v56 = vshll.u32 %v11283_v38, 16 }
 0x262   : > { %v4173_v16 = vpack.c.bf16 %v4146_v39, %v4145_v40  ;;  %v7991_v21 = vpop.f32.mrb[156].mxu0  ;;  %7805 = vmatprep.subr.bf16.mxu0 %v8443_v19  ;;  %5323 = vmatprep.mubr.bf16.mxu1 %v11322_v20  ;;  %v11329_v12 = vsel %vm11155_vm8, 0, %v4212_v54  ;;  %v11337_v38 = vsel %vm4616_vm10, %v4620_v50, %v4621_v25  ;;  %v4420_v17 = vshll.u32 %v11319_v42, 16 }
 0x263   : > { %v4067_v61 = vadd.f32 %v7991_v21, %v11213_v58  ;;  %v4058_v52 = vpop.f32.mrb[157].mxu0  ;;  %5324 = vmatmul.mubr.bf16.gmra.mrb[116].mxu1 %v11294_v47  ;;  %v11334_v48 = vsel %vm4375_vm9, %v4406_v24, %v4410_v35  ;;  %v4219_v58 = vor.u32 %v4217_v56, %v4216_v30  ;;  %v4415_v47 = vshll.u32 %v11329_v12, 16  ;;  %v8450_v35 = vld [vmem:[#allocation2 + $0x1a0] sm:$0xff]  }
 0x264   : > { %v4221_v9 = vshrl.u32 %v4173_v16, 16  ;;  %v4059_v7 = vadd.f32 %v4058_v52, %v11207_v2  ;;  %v7992_v34 = vpop.f32.mrb[158].mxu0  ;;  %5331 = vmatprep.mubr.bf16.mxu1 %v11334_v48  ;;  %5485 = vmatmul.mubr.bf16.gmra.mrb[180].mxu0 %v11337_v38  ;;  %v4413_v45 = vshrl.u32 %v11329_v12, 16  ;;  %v4422_v54 = vrot.slane %v4420_v17, 1 }
 0x265   : > { %v4070_v22 = vadd.f32 %v7992_v34, %v11215_v14  ;;  %v4061_v10 = vpop.f32.mrb[159].mxu0  ;;  %5492 = vmatprep.mubr.bf16.mxu0 %v11329_v12  ;;  %7806 = vmatpush3.bf16.msra.mxu0 %v8444_v29  ;;  %v4151_v25 = vmax.f32 %v4067_v61, 0.0  ;;  %v8449_v14 = vld [vmem:[#allocation2 + $0x1e0] sm:$0xff]   ;;  %v4417_v32 = vrot.slane %v4415_v47, 1  ;;  %v11352_v40 = vsel %vm11155_vm8, 0, %v4219_v58 }
 0x266   : > { %v4062_v2 = vadd.f32 %v4061_v10, %v11209_v5  ;;  %7807 = vmatprep.subr.bf16.mxu0 %v8445_v41  ;;  %v4223_v19 = vrot.slane %v4221_v9, 7  ;;  %v4149_v8 = vmax.f32 %v4059_v7, 0.0  ;;  %v4623_v5 = vrot.slane %v11290_v46, 1  ;;  %v8451_v41 = vld [vmem:[#allocation2 + $0x1e8] sm:$0xff]  }
 0x267   : > { %v4152_v3 = vmax.f32 %v4070_v22, 0.0  ;;  %v4418_v24 = vor.u32 %v4417_v32, %v4413_v45  ;;  %v4624_v50 = vrot.slane %v11277_v36, 1  ;;  %v4427_v21 = vshll.u32 %v11352_v40, 16 }
 0x268   : > { %v4150_v13 = vmax.f32 %v4062_v2, 0.0  ;;  %v11360_v29 = vsel %vm11155_vm8, %v4216_v30, 0  ;;  %v4224_v56 = vshll.u32 %v4173_v16, 16  ;;  %v4228_v30 = vshrl.u32 %v11314_v57, 16  ;;  %v8452_v2 = vld [vmem:[#allocation2 + $0x1a8] sm:$0xff]  }
 0x269   : > { %v11347_v37 = vpack.c.bf16 %v4152_v3, %v4151_v25  ;;  %7808 = vmatpush3.bf16.msra.mxu0 %v8446_v4  ;;  %v11366_v36 = vsel %vm4375_vm9, %v4418_v24, %v4422_v54  ;;  %v11369_v34 = vsel %vm4616_vm10, %v4623_v5, %v4624_v50  ;;  %v4425_v10 = vshrl.u32 %v11352_v40, 16  ;;  %v8454_v50 = vld [vmem:[#allocation2 + $0x1b0] sm:$0xff]  }
 0x26a   : > { %v11354_v39 = vpack.c.bf16 %v4150_v13, %v4149_v8  ;;  %v7995_v27 = vpop.f32.mrb[160].mxu0  ;;  %7809 = vmatprep.subr.bf16.mxu0 %v8449_v14  ;;  %v4226_v58 = vor.u32 %v4224_v56, %v4223_v19  ;;  %v4432_v17 = vshll.u32 %v11360_v29, 16  ;;  %v4230_v14 = vrot.slane %v4228_v30, 7 }
 0x26b   : > { %v4083_v61 = vadd.f32 %v7995_v27, %v11225_v62  ;;  %v4074_v52 = vpop.f32.mrb[161].mxu0  ;;  %5332 = vmatmul.mubr.bf16.gmra.mrb[120].mxu1 %v11290_v46  ;;  %v4627_v27 = vrot.slane %v11319_v42, 1 }
 0x26c   : > { %v4075_v9 = vadd.f32 %v4074_v52, %v11219_v55  ;;  %v7996_v7 = vpop.f32.mrb[162].mxu0  ;;  %5339 = vmatprep.mubr.bf16.mxu1 %v11366_v36  ;;  %5493 = vmatmul.mubr.bf16.gmra.mrb[184].mxu0 %v11369_v34  ;;  %v4429_v55 = vrot.slane %v4427_v21, 1  ;;  %v11384_v13 = vsel %vm11155_vm8, 0, %v4226_v58  ;;  %v4434_v5 = vrot.slane %v4432_v17, 1  ;;  %v8455_v52 = vld [vmem:[#allocation2 + $0x1f8] sm:$0xff]  }
 0x26d   : > { %v4086_v16 = vadd.f32 %v7996_v7, %v11227_v28  ;;  %v4077_v62 = vpop.f32.mrb[163].mxu0  ;;  %5500 = vmatprep.mubr.bf16.mxu0 %v11352_v40  ;;  %7810 = vmatpush3.bf16.msra.mxu0 %v8450_v35  ;;  %v4155_v47 = vmax.f32 %v4083_v61, 0.0  ;;  %v8453_v28 = vld [vmem:[#allocation2 + $0x1f0] sm:$0xff]   ;;  %v4439_v24 = vshll.u32 %v11384_v13, 16  ;;  %v4231_v21 = vshll.u32 %v11314_v57, 16 }
 0x26e   : > { %v4078_v22 = vadd.f32 %v4077_v62, %v11221_v33  ;;  %7811 = vmatprep.subr.bf16.mxu0 %v8451_v41  ;;  %v4153_v25 = vmax.f32 %v4075_v9, 0.0  ;;  %v4430_v45 = vor.u32 %v4429_v55, %v4425_v10  ;;  %v4626_v33 = vrot.slane %v11329_v12, 1  ;;  %v8456_v55 = vld [vmem:[#allocation2 + $0x1b8] sm:$0xff]  }
 0x26f   : > { %v4156_v4 = vmax.f32 %v4086_v16, 0.0  ;;  %v11393_v35 = vsel %vm11155_vm8, %v4223_v19, 0  ;;  %v4441_v57 = vrot.slane %v4439_v24, 1  ;;  %v4233_v30 = vor.u32 %v4231_v21, %v4230_v14 }
 0x270   : > { %v4154_v3 = vmax.f32 %v4078_v22, 0.0  ;;  %v11399_v9 = vsel %vm4375_vm9, %v4430_v45, %v4434_v5  ;;  %v11402_v7 = vsel %vm4616_vm10, %v4626_v33, %v4627_v27  ;;  %v4235_v19 = vshrl.u32 %v11354_v39, 16 }
 0x271   : > { %v11379_v8 = vpack.c.bf16 %v4156_v4, %v4155_v47  ;;  %7812 = vmatpush3.bf16.msra.mxu0 %v8452_v2  ;;  %v4437_v16 = vshrl.u32 %v11384_v13, 16  ;;  %v4444_v62 = vshll.u32 %v11393_v35, 16  ;;  %v4629_v47 = vrot.slane %v11352_v40, 1 }
 0x272   : > { %v11386_v32 = vpack.c.bf16 %v4154_v3, %v4153_v25  ;;  %v7999_v54 = vpop.f32.mrb[164].mxu0  ;;  %7813 = vmatprep.subr.bf16.mxu0 %v8453_v28  ;;  %v4237_v4 = vrot.slane %v4235_v19, 7  ;;  %v4630_v33 = vrot.slane %v11360_v29, 1  ;;  %v11425_v5 = vsel %vm11155_vm8, %v4230_v14, 0 }
 0x273   : > { %v4099_v56 = vadd.f32 %v7999_v54, %v11237_v44  ;;  %v4090_v61 = vpop.f32.mrb[165].mxu0  ;;  %5340 = vmatmul.mubr.bf16.gmra.mrb[124].mxu1 %v11329_v12  ;;  %v4442_v2 = vor.u32 %v4441_v57, %v4437_v16  ;;  %v4446_v45 = vrot.slane %v4444_v62, 1  ;;  %v4238_v27 = vshll.u32 %v11354_v39, 16 }
 0x274   : > { %v4091_v41 = vadd.f32 %v4090_v61, %v11231_v18  ;;  %v8000_v42 = vpop.f32.mrb[166].mxu0  ;;  %5347 = vmatprep.mubr.bf16.mxu1 %v11399_v9  ;;  %5501 = vmatmul.mubr.bf16.gmra.mrb[188].mxu0 %v11402_v7  ;;  %v11435_v29 = vsel %vm4616_vm10, %v4629_v47, %v4630_v33  ;;  %v4242_v14 = vshrl.u32 %v11347_v37, 16  ;;  %v4456_v57 = vshll.u32 %v11425_v5, 16 }
 0x275   : > { %v4102_v44 = vadd.f32 %v8000_v42, %v11239_v6  ;;  %v4093_v18 = vpop.f32.mrb[167].mxu0  ;;  %5508 = vmatprep.mubr.bf16.mxu0 %v11384_v13  ;;  %7814 = vmatpush3.bf16.msra.mxu0 %v8454_v50  ;;  %v4159_v22 = vmax.f32 %v4099_v56, 0.0  ;;  %v11432_v61 = vsel %vm4375_vm9, %v4442_v2, %v4446_v45  ;;  %v4249_v62 = vshrl.u32 %v11386_v32, 16 }
 0x276   : > { %v4094_v58 = vadd.f32 %v4093_v18, %v11233_v11  ;;  %7815 = vmatprep.subr.bf16.mxu0 %v8455_v52  ;;  %v4157_v17 = vmax.f32 %v4091_v41, 0.0  ;;  %v11417_v11 = vsel %vm11155_vm8, 0, %v4233_v30  ;;  %v4240_v41 = vor.u32 %v4238_v27, %v4237_v4 }
 0x277   : > { %v4160_v10 = vmax.f32 %v4102_v44, 0.0  ;;  %v4451_v54 = vshll.u32 %v11417_v11, 16  ;;  %v4449_v42 = vshrl.u32 %v11417_v11, 16  ;;  %v4244_v16 = vrot.slane %v4242_v14, 7 }
 0x278   : > { %v4158_v6 = vmax.f32 %v4094_v58, 0.0  ;;  %v4245_v47 = vshll.u32 %v11347_v37, 16  ;;  %v4251_v37 = vrot.slane %v4249_v62, 7  ;;  %v4252_v14 = vshll.u32 %v11386_v32, 16 }
 0x279   : > { %v11413_v28 = vpack.c.bf16 %v4160_v10, %v4159_v22  ;;  %7816 = vmatpush3.bf16.msra.mxu0 %v8456_v55  ;;  %v4453_v52 = vrot.slane %v4451_v54, 1  ;;  %v4636_v32 = vrot.slane %v11425_v5, 1 }
 0x27a   : > { %v11419_v25 = vpack.c.bf16 %v4158_v6, %v4157_v17  ;;  %v8003_v3 = vpop.f32.mrb[168].mxu0  ;;  %v4458_v17 = vrot.slane %v4456_v57, 1  ;;  %v4633_v6 = vrot.slane %v11393_v35, 1  ;;  %v4256_v57 = vshrl.u32 %v11379_v8, 16 }
 0x27b   : > { %v4115_v24 = vadd.f32 %v8003_v3, %v11249_v1  ;;  %v4106_v50 = vpop.f32.mrb[169].mxu0  ;;  %5348 = vmatmul.mubr.bf16.gmra.mrb[128].mxu1 %v11352_v40  ;;  %v4454_v58 = vor.u32 %v4453_v52, %v4449_v42  ;;  %v4365_v3 = vsel %vm11155_vm8, %v4237_v4, 0 }
 0x27c   : > { %v4107_v21 = vadd.f32 %v4106_v50, %v11243_v63  ;;  %v8004_v56 = vpop.f32.mrb[170].mxu0  ;;  %5355 = vmatprep.mubr.bf16.mxu1 %v11432_v61  ;;  %5509 = vmatmul.mubr.bf16.gmra.mrb[192].mxu0 %v11435_v29  ;;  %v4468_v52 = vshll.u32 %v4365_v3, 16 }
 0x27d   : > { %v4118_v39 = vadd.f32 %v8004_v56, %v11251_v43  ;;  %v4109_v63 = vpop.f32.mrb[171].mxu0  ;;  %5516 = vmatprep.mubr.bf16.mxu0 %v11417_v11  ;;  %v4163_v30 = vmax.f32 %v4115_v24, 0.0  ;;  %v4632_v43 = vrot.slane %v11384_v13, 1  ;;  %v11464_v24 = vsel %vm4375_vm9, %v4454_v58, %v4458_v17 }
 0x27e   : > { %v4110_v1 = vadd.f32 %v4109_v63, %v11245_v0  ;;  %v4161_v44 = vmax.f32 %v4107_v21, 0.0  ;;  %v11451_v0 = vsel %vm11155_vm8, 0, %v4240_v41  ;;  %v4247_v21 = vor.u32 %v4245_v47, %v4244_v16 }
 0x27f   : > { %v4164_v19 = vmax.f32 %v4118_v39, 0.0  ;;  %v4463_v2 = vshll.u32 %v11451_v0, 16  ;;  %v11467_v35 = vsel %vm4616_vm10, %v4632_v43, %v4633_v6  ;;  %v4461_v4 = vshrl.u32 %v11451_v0, 16 }
 0x280   : > { %v4162_v18 = vmax.f32 %v4110_v1, 0.0  ;;  %v4366_v43 = vsel %vm11155_vm8, %v4244_v16, 0  ;;  %v4258_v6 = vrot.slane %v4256_v57, 7  ;;  %v4259_v47 = vshll.u32 %v11379_v8, 16 }
 0x281   : > { %v11447_v55 = vpack.c.bf16 %v4164_v19, %v4163_v30  ;;  %v4465_v50 = vrot.slane %v4463_v2, 1  ;;  %v4254_v30 = vor.u32 %v4252_v14, %v4251_v37  ;;  %v4480_v2 = vshll.u32 %v4366_v43, 16 }
 0x282   : > { %v11453_v22 = vpack.c.bf16 %v4162_v18, %v4161_v44  ;;  %v8007_v10 = vpop.f32.mrb[172].mxu0  ;;  %v4470_v18 = vrot.slane %v4468_v52, 1 }
 0x283   : > { %v4131_v45 = vadd.f32 %v8007_v10, %v11261_v59  ;;  %v4122_v33 = vpop.f32.mrb[173].mxu0  ;;  %5356 = vmatmul.mubr.bf16.gmra.mrb[132].mxu1 %v11384_v13  ;;  %v4466_v42 = vor.u32 %v4465_v50, %v4461_v4  ;;  %v11501_v5 = vsel %vm11155_vm8, 0, %v4254_v30  ;;  %v4263_v50 = vshrl.u32 %v11419_v25, 16 }
 0x284   : > { %v4123_v54 = vadd.f32 %v4122_v33, %v11255_v53  ;;  %v8008_v27 = vpop.f32.mrb[174].mxu0  ;;  %5363 = vmatprep.mubr.bf16.mxu1 %v11464_v24  ;;  %5517 = vmatmul.mubr.bf16.gmra.mrb[196].mxu0 %v11467_v35  ;;  %v4638_v33 = vrot.slane %v11451_v0, 1  ;;  %v4642_v30 = vrot.slane %v4366_v43, 1 }
 0x285   : > { %v4134_v56 = vadd.f32 %v8008_v27, %v11263_v23  ;;  %v4125_v59 = vpop.f32.mrb[175].mxu0  ;;  %5524 = vmatprep.mubr.bf16.mxu0 %v11451_v0  ;;  %v4167_v41 = vmax.f32 %v4131_v45, 0.0  ;;  %v4635_v23 = vrot.slane %v11417_v11, 1  ;;  %v11492_v62 = vsel %vm4375_vm9, %v4466_v42, %v4470_v18 }
 0x286   : > { %v4126_v53 = vadd.f32 %v4125_v59, %v11257_v51  ;;  %v4165_v63 = vmax.f32 %v4123_v54, 0.0  ;;  %v11482_v51 = vsel %vm11155_vm8, 0, %v4247_v21  ;;  %v4487_v54 = vshll.u32 %v11501_v5, 16 }
 0x287   : > { %v4168_v39 = vmax.f32 %v4134_v56, 0.0  ;;  %v4475_v58 = vshll.u32 %v11482_v51, 16  ;;  %v11495_v10 = vsel %vm4616_vm10, %v4635_v23, %v4636_v32  ;;  %v4473_v16 = vshrl.u32 %v11482_v51, 16 }
 0x288   : > { %v4166_v1 = vmax.f32 %v4126_v53, 0.0  ;;  %v4261_v27 = vor.u32 %v4259_v47, %v4258_v6  ;;  %v4482_v21 = vrot.slane %v4480_v2, 1  ;;  %v4639_v56 = vrot.slane %v4365_v3, 1 }
 0x289   : > { %v11478_v19 = vpack.c.bf16 %v4168_v39, %v4167_v41  ;;  %v4477_v17 = vrot.slane %v4475_v58, 1  ;;  %v4367_v59 = vsel %vm11155_vm8, %v4251_v37, 0  ;;  %v4489_v4 = vrot.slane %v4487_v54, 1 }
 0x28a   : > { %v11484_v44 = vpack.c.bf16 %v4166_v1, %v4165_v63  ;;  %v11516_v8 = vsel %vm4616_vm10, %v4638_v33, %v4639_v56  ;;  %v4265_v52 = vrot.slane %v4263_v50, 7  ;;  %v11522_v3 = vsel %vm11155_vm8, 0, %v4261_v27 }
 0x28b   : > { %5364 = vmatmul.mubr.bf16.gmra.mrb[136].mxu1 %v11417_v11  ;;  %v4478_v45 = vor.u32 %v4477_v17, %v4473_v16  ;;  %v4485_v37 = vshrl.u32 %v11501_v5, 16  ;;  %v4492_v14 = vshll.u32 %v4367_v59, 16  ;;  %v4266_v41 = vshll.u32 %v11419_v25, 16 }
 0x28c   : > { %5371 = vmatprep.mubr.bf16.mxu1 %v11492_v62  ;;  %5525 = vmatmul.mubr.bf16.gmra.mrb[200].mxu0 %v11495_v10  ;;  %v4641_v63 = vrot.slane %v11482_v51, 1  ;;  %v4499_v1 = vshll.u32 %v11522_v3, 16  ;;  %v4270_v42 = vshrl.u32 %v11413_v28, 16  ;;  %v4368_v18 = vsel %vm11155_vm8, %v4258_v6, 0 }
 0x28d   : > { %5532 = vmatprep.mubr.bf16.mxu0 %v11482_v51  ;;  %v11513_v53 = vsel %vm4375_vm9, %v4478_v45, %v4482_v21  ;;  %v4490_v39 = vor.u32 %v4489_v4, %v4485_v37  ;;  %v4268_v23 = vor.u32 %v4266_v41, %v4265_v52  ;;  %v4494_v57 = vrot.slane %v4492_v14, 1 }
 0x28e   : > { %v11537_v25 = vsel %vm4616_vm10, %v4641_v63, %v4642_v30  ;;  %v4501_v58 = vrot.slane %v4499_v1, 1  ;;  %v4272_v17 = vrot.slane %v4270_v42, 7  ;;  %v4497_v6 = vshrl.u32 %v11522_v3, 16 }
 0x28f   : > { %v11534_v32 = vsel %vm4375_vm9, %v4490_v39, %v4494_v57  ;;  %v11543_v43 = vsel %vm11155_vm8, 0, %v4268_v23  ;;  %v4504_v16 = vshll.u32 %v4368_v18, 16  ;;  %v4273_v2 = vshll.u32 %v11413_v28, 16 }
 0x290   : > { %v4502_v47 = vor.u32 %v4501_v58, %v4497_v6  ;;  %v4644_v45 = vrot.slane %v11501_v5, 1  ;;  %v4511_v33 = vshll.u32 %v11543_v43, 16  ;;  %v4277_v27 = vshrl.u32 %v11453_v22, 16 }
 0x291   : > { %v4275_v54 = vor.u32 %v4273_v2, %v4272_v17  ;;  %v4506_v50 = vrot.slane %v4504_v16, 1  ;;  %v4645_v21 = vrot.slane %v4367_v59, 1  ;;  %v4369_v56 = vsel %vm11155_vm8, %v4265_v52, 0 }
 0x292   : > { %v4513_v37 = vrot.slane %v4511_v33, 1  ;;  %v4279_v14 = vrot.slane %v4277_v27, 7  ;;  %v4509_v52 = vshrl.u32 %v11543_v43, 16  ;;  %v4516_v41 = vshll.u32 %v4369_v56, 16 }
 0x293   : > { %5372 = vmatmul.mubr.bf16.gmra.mrb[140].mxu1 %v11451_v0  ;;  %v11555_v4 = vsel %vm4375_vm9, %v4502_v47, %v4506_v50  ;;  %v11558_v28 = vsel %vm4616_vm10, %v4644_v45, %v4645_v21  ;;  %v11564_v59 = vsel %vm11155_vm8, 0, %v4275_v54  ;;  %v4280_v39 = vshll.u32 %v11453_v22, 16 }
 0x294   : > { %5379 = vmatprep.mubr.bf16.mxu1 %v11513_v53  ;;  %5533 = vmatmul.mubr.bf16.gmra.mrb[204].mxu0 %v11516_v8  ;;  %v4514_v63 = vor.u32 %v4513_v37, %v4509_v52  ;;  %v4647_v1 = vrot.slane %v11522_v3, 1  ;;  %v4523_v42 = vshll.u32 %v11564_v59, 16  ;;  %v4284_v23 = vshrl.u32 %v11447_v55, 16 }
 0x295   : > { %5540 = vmatprep.mubr.bf16.mxu0 %v11501_v5  ;;  %v4282_v57 = vor.u32 %v4280_v39, %v4279_v14  ;;  %v4518_v30 = vrot.slane %v4516_v41, 1  ;;  %v4648_v58 = vrot.slane %v4368_v18, 1  ;;  %v4370_v6 = vsel %vm11155_vm8, %v4272_v17, 0 }
 0x296   : > { %v4525_v2 = vrot.slane %v4523_v42, 1  ;;  %v4286_v47 = vrot.slane %v4284_v23, 7  ;;  %v4521_v17 = vshrl.u32 %v11564_v59, 16  ;;  %v4528_v45 = vshll.u32 %v4370_v6, 16 }
 0x297   : > { %v11576_v16 = vsel %vm4375_vm9, %v4514_v63, %v4518_v30  ;;  %v11579_v22 = vsel %vm4616_vm10, %v4647_v1, %v4648_v58  ;;  %v11585_v18 = vsel %vm11155_vm8, 0, %v4282_v57  ;;  %v4287_v33 = vshll.u32 %v11447_v55, 16 }
 0x298   : > { %v4526_v54 = vor.u32 %v4525_v2, %v4521_v17  ;;  %v4650_v27 = vrot.slane %v11543_v43, 1  ;;  %v4535_v50 = vshll.u32 %v11585_v18, 16  ;;  %v4291_v37 = vshrl.u32 %v11484_v44, 16 }
 0x299   : > { %v4289_v21 = vor.u32 %v4287_v33, %v4286_v47  ;;  %v4530_v52 = vrot.slane %v4528_v45, 1  ;;  %v4651_v41 = vrot.slane %v4369_v56, 1  ;;  %v4371_v39 = vsel %vm11155_vm8, %v4279_v14, 0 }
 0x29a   : > { %v4537_v1 = vrot.slane %v4535_v50, 1  ;;  %v4293_v42 = vrot.slane %v4291_v37, 7  ;;  %v4533_v14 = vshrl.u32 %v11585_v18, 16  ;;  %v4540_v23 = vshll.u32 %v4371_v39, 16 }
 0x29b   : > { %5380 = vmatmul.mubr.bf16.gmra.mrb[144].mxu1 %v11482_v51  ;;  %v11597_v63 = vsel %vm4375_vm9, %v4526_v54, %v4530_v52  ;;  %v11600_v55 = vsel %vm4616_vm10, %v4650_v27, %v4651_v41  ;;  %v11606_v56 = vsel %vm11155_vm8, 0, %v4289_v21  ;;  %v4294_v57 = vshll.u32 %v11484_v44, 16 }
 0x29c   : > { %5387 = vmatprep.mubr.bf16.mxu1 %v11534_v32  ;;  %5541 = vmatmul.mubr.bf16.gmra.mrb[208].mxu0 %v11537_v25  ;;  %v4538_v30 = vor.u32 %v4537_v1, %v4533_v14  ;;  %v4653_v58 = vrot.slane %v11564_v59, 1  ;;  %v4547_v2 = vshll.u32 %v11606_v56, 16  ;;  %v4542_v45 = vrot.slane %v4540_v23, 1 }
 0x29d   : > { %5548 = vmatprep.mubr.bf16.mxu0 %v11522_v3  ;;  %v4296_v17 = vor.u32 %v4294_v57, %v4293_v42  ;;  %v4654_v33 = vrot.slane %v4370_v6, 1  ;;  %v4372_v54 = vsel %vm11155_vm8, %v4286_v47, 0  ;;  %v4545_v6 = vshrl.u32 %v11606_v56, 16 }
 0x29e   : > { %v11617_v27 = vsel %vm4375_vm9, %v4538_v30, %v4542_v45  ;;  %v4549_v44 = vrot.slane %v4547_v2, 1  ;;  %v4552_v47 = vshll.u32 %v4372_v54, 16  ;;  %v4656_v41 = vrot.slane %v11585_v18, 1 }
 0x29f   : > { %v11620_v50 = vsel %vm4616_vm10, %v4653_v58, %v4654_v33  ;;  %v11626_v21 = vsel %vm11155_vm8, 0, %v4296_v17  ;;  %v4298_v23 = vshrl.u32 %v11478_v19, 16  ;;  %v4657_v2 = vrot.slane %v4371_v39, 1 }
 0x2a0   : > { %v4550_v52 = vor.u32 %v4549_v44, %v4545_v6  ;;  %v4559_v1 = vshll.u32 %v11626_v21, 16  ;;  %v4554_v58 = vrot.slane %v4552_v47, 1  ;;  %v4373_v45 = vsel %vm11155_vm8, %v4293_v42, 0 }
 0x2a1   : > { %v11644_v6 = vsel %vm4616_vm10, %v4656_v41, %v4657_v2  ;;  %v4557_v39 = vshrl.u32 %v11626_v21, 16  ;;  %v4564_v42 = vshll.u32 %v4373_v45, 16  ;;  %v4301_v47 = vshll.u32 %v11478_v19, 16 }
 0x2a2   : > { %v11641_v44 = vsel %vm4375_vm9, %v4550_v52, %v4554_v58  ;;  %v4561_v60 = vrot.slane %v4559_v1, 1  ;;  %v4659_v52 = vrot.slane %v11606_v56, 1  ;;  %v4660_v1 = vrot.slane %v4372_v54, 1 }
 0x2a3   : > { %5388 = vmatmul.mubr.bf16.gmra.mrb[148].mxu1 %v11501_v5  ;;  %v4662_v19 = vrot.slane %v11626_v21, 1  ;;  %v4663_v54 = vrot.slane %v4373_v45, 1  ;;  %v8459_v45 = vld [vmem:[#allocation2 + $0x210] sm:$0xff]  }
 0x2a4   : > { %5395 = vmatprep.mubr.bf16.mxu1 %v11555_v4  ;;  %5549 = vmatmul.mubr.bf16.gmra.mrb[212].mxu0 %v11558_v28  ;;  %v11660_v58 = vsel %vm4616_vm10, %v4659_v52, %v4660_v1 }
 0x2a5   : > { %5556 = vmatprep.mubr.bf16.mxu0 %v11543_v43  ;;  %v11672_v2 = vsel %vm4616_vm10, %v4662_v19, %v4663_v54 }
 0x2ab   : > { %5396 = vmatmul.mubr.bf16.gmra.mrb[152].mxu1 %v11522_v3 }
 0x2ac   : > { %5403 = vmatprep.mubr.bf16.mxu1 %v11576_v16  ;;  %5557 = vmatmul.mubr.bf16.gmra.mrb[216].mxu0 %v11579_v22 }
 0x2ad   : > { %5564 = vmatprep.mubr.bf16.mxu0 %v11564_v59 }
 0x2b3   : > { %5404 = vmatmul.mubr.bf16.gmra.mrb[156].mxu1 %v11543_v43 }
 0x2b4   : > { %5411 = vmatprep.mubr.bf16.mxu1 %v11597_v63  ;;  %5565 = vmatmul.mubr.bf16.gmra.mrb[220].mxu0 %v11600_v55 }
 0x2b5   : > { %5572 = vmatprep.mubr.bf16.mxu0 %v11585_v18 }
 0x2bb   : > { %5412 = vmatmul.mubr.bf16.gmra.mrb[160].mxu1 %v11564_v59 }
 0x2bc   : > { %5419 = vmatprep.mubr.bf16.mxu1 %v11617_v27  ;;  %5573 = vmatmul.mubr.bf16.gmra.mrb[224].mxu0 %v11620_v50 }
 0x2bd   : > { %5580 = vmatprep.mubr.bf16.mxu0 %v11606_v56  ;;  %v7481_v37 = vpop.f32.mrb[112].mxu1 }
 0x2be   : > { %v7482_v14 = vpop.f32.mrb[113].mxu1 }
 0x2bf   : > { %v11633_v57 = vadd.f32 %v7482_v14, %v7481_v37  ;;  %v7484_v30 = vpop.f32.mrb[114].mxu1  ;;  %v11646_v37 = vrot.slane %v4298_v23, 7  ;;  %v4562_v14 = vor.u32 %v4561_v60, %v4557_v39  ;;  %v8460_v39 = vld [vmem:[#allocation2 + $0x218] sm:$0xff]  }
 0x2c0   : > { %v7485_v17 = vpop.f32.mrb[115].mxu1 }
 0x2c1   : > { %v11637_v33 = vadd.f32 %v7485_v17, %v7484_v30  ;;  %v4303_v41 = vor.u32 %v4301_v47, %v11646_v37  ;;  %v4566_v30 = vrot.slane %v4564_v42, 1  ;;  %v8458_v17 = vld [vmem:[#allocation2 + $0x208] sm:$0xff]  }
 0x2c3   : > { %5420 = vmatmul.mubr.bf16.gmra.mrb[164].mxu1 %v11585_v18  ;;  %v11657_v23 = vsel %vm4375_vm9, %v4562_v14, %v4566_v30  ;;  %v11666_v60 = vsel %vm11155_vm8, 0, %v4303_v41 }
 0x2c4   : > { %5427 = vmatprep.mubr.bf16.mxu1 %v11641_v44  ;;  %5581 = vmatmul.mubr.bf16.gmra.mrb[228].mxu0 %v11644_v6  ;;  %v4682_v26 = vshrl.u32 %v11666_v60, 16 }
 0x2c5   : > { %5588 = vmatprep.mubr.bf16.mxu0 %v11626_v21 }
 0x2cb   : > { %5428 = vmatmul.mubr.bf16.gmra.mrb[168].mxu1 %v11606_v56 }
 0x2cc   : > { %5435 = vmatprep.mubr.bf16.mxu1 %v11657_v23  ;;  %5589 = vmatmul.mubr.bf16.gmra.mrb[232].mxu0 %v11660_v58 }
 0x2cd   : > { %5596 = vmatprep.mubr.bf16.mxu0 %v11666_v60 }
 0x2d3   : > { %5436 = vmatmul.mubr.bf16.gmra.mrb[172].mxu1 %v11626_v21 }
 0x2d4   : > { %5597 = vmatmul.mubr.bf16.gmra.mrb[236].mxu0 %v11672_v2  ;;  %5637 = vmatprep.mubr.bf16.mxu1 %v11337_v38  ;;  %v11728_v38 = vld [vmem:[%s12169_s4] ss:$0 sm:$0xff] }
 0x2d5   : > { %5798 = vmatprep.mubr.bf16.mxu0 %v11334_v48 }
 0x2db   : > { %5638 = vmatmul.mubr.bf16.vlgmr.msra.gmra.mrb[176].mxu1 %v11322_v20  ;;  %v8463_v20 = vld [vmem:[#allocation2 + $0x230] sm:$0xff]  }
 0x2dc   : > { %5645 = vmatprep.mubr.bf16.mxu1 %v11369_v34  ;;  %5799 = vmatmul.mubr.bf16.vlgmr.msra.gmra.mrb[240].mxu0 %v11290_v46  ;;  %v8461_v46 = vld [vmem:[#allocation2 + $0x220] sm:$0xff]  }
 0x2dd   : > { %8010 = vmatpush3.bf16.msra.mxu1 %v11305_v31  ;;  %5806 = vmatprep.mubr.bf16.mxu0 %v11366_v36  ;;  %v8462_v31 = vld [vmem:[#allocation2 + $0x228] sm:$0xff]  }
 0x2de   : > { %8011 = vmatprep.subr.bf16.mxu1 %v8458_v17 }
 0x2e1   : > { %8012 = vmatpush3.bf16.msra.mxu1 %v8458_v17 }
 0x2e2   : > { %8013 = vmatprep.subr.bf16.mxu1 %v8459_v45 }
 0x2e3   : > { %5646 = vmatmul.mubr.bf16.gmra.mrb[180].mxu1 %v11334_v48  ;;  %v11697_v48 = vld [vmem:[%s12170_s5] sm:$0xff]  }
 0x2e4   : > { %5653 = vmatprep.mubr.bf16.mxu1 %v11402_v7  ;;  %5807 = vmatmul.mubr.bf16.gmra.mrb[244].mxu0 %v11329_v12  ;;  %v8464_v12 = vld [vmem:[#allocation2 + $0x238] sm:$0xff]  }
 0x2e5   : > { %5814 = vmatprep.mubr.bf16.mxu0 %v11399_v9  ;;  %8014 = vmatpush3.bf16.msra.mxu1 %v8459_v45 }
 0x2e6   : > { %8015 = vmatprep.subr.bf16.mxu1 %v8460_v39 }
 0x2e9   : > { %8016 = vmatpush3.bf16.msra.mxu1 %v8460_v39 }
 0x2ea   : > { %8017 = vmatprep.subr.bf16.mxu1 %v8461_v46 }
 0x2eb   : > { %5654 = vmatmul.mubr.bf16.gmra.mrb[184].mxu1 %v11366_v36 }
 0x2ec   : > { %5661 = vmatprep.mubr.bf16.mxu1 %v11435_v29  ;;  %5815 = vmatmul.mubr.bf16.gmra.mrb[248].mxu0 %v11352_v40  ;;  %v5318_v40 = vadd.f32 %v11633_v57, %v11728_v38 }
 0x2ed   : > { %5822 = vmatprep.mubr.bf16.mxu0 %v11432_v61  ;;  %8018 = vmatpush3.bf16.msra.mxu1 %v8461_v46 }
 0x2ee   : > { %8019 = vmatprep.subr.bf16.mxu1 %v8462_v31 }
 0x2f1   : > { %8020 = vmatpush3.bf16.msra.mxu1 %v8462_v31 }
 0x2f2   : > { %8021 = vmatprep.subr.bf16.mxu1 %v8463_v20 }
 0x2f3   : > { %5662 = vmatmul.mubr.bf16.gmra.mrb[188].mxu1 %v11399_v9 }
 0x2f4   : > { %5669 = vmatprep.mubr.bf16.mxu1 %v11467_v35  ;;  %5823 = vmatmul.mubr.bf16.gmra.mrb[252].mxu0 %v11384_v13 }
 0x2f5   : > { %5830 = vmatprep.mubr.bf16.mxu0 %v11464_v24  ;;  %8022 = vmatpush3.bf16.msra.mxu1 %v8463_v20 }
 0x2f6   : > { %8023 = vmatprep.subr.bf16.mxu1 %v8464_v12 }
 0x2f9   : > { %8024 = vmatpush3.bf16.msra.mxu1 %v8464_v12 }
 0x2fa   : > { %8057 = vmatprep.subr.bf16.mxu1 %v11697_v48 }
 0x2fb   : > { %5670 = vmatmul.mubr.bf16.gmra.mrb[192].mxu1 %v11432_v61 }
 0x2fc   : > { %5677 = vmatprep.mubr.bf16.mxu1 %v11495_v10  ;;  %5831 = vmatmul.mubr.bf16.gmra.mrb[0].mxu0 %v11417_v11 }
 0x2fd   : > { %5838 = vmatprep.mubr.bf16.mxu0 %v11492_v62 }
 0x303   : > { %5678 = vmatmul.mubr.bf16.gmra.mrb[196].mxu1 %v11464_v24 }
 0x304   : > { %5685 = vmatprep.mubr.bf16.mxu1 %v11516_v8  ;;  %5839 = vmatmul.mubr.bf16.gmra.mrb[4].mxu0 %v11451_v0  ;;  %v5321_v0 = vadd.f32 %v11637_v33, %v11728_v38 }
 0x305   : > { %5846 = vmatprep.mubr.bf16.mxu0 %v11513_v53 }
 0x30b   : > { %5686 = vmatmul.mubr.bf16.gmra.mrb[200].mxu1 %v11492_v62 }
 0x30c   : > { %5693 = vmatprep.mubr.bf16.mxu1 %v11537_v25  ;;  %5847 = vmatmul.mubr.bf16.gmra.mrb[8].mxu0 %v11482_v51 }
 0x30d   : > { %5854 = vmatprep.mubr.bf16.mxu0 %v11534_v32 }
 0x313   : > { %5694 = vmatmul.mubr.bf16.gmra.mrb[204].mxu1 %v11513_v53 }
 0x314   : > { %5701 = vmatprep.mubr.bf16.mxu1 %v11558_v28  ;;  %5855 = vmatmul.mubr.bf16.gmra.mrb[12].mxu0 %v11501_v5 }
 0x315   : > { %5862 = vmatprep.mubr.bf16.mxu0 %v11555_v4 }
 0x31b   : > { %5702 = vmatmul.mubr.bf16.gmra.mrb[208].mxu1 %v11534_v32 }
 0x31c   : > { %5709 = vmatprep.mubr.bf16.mxu1 %v11579_v22  ;;  %5863 = vmatmul.mubr.bf16.gmra.mrb[16].mxu0 %v11522_v3 }
 0x31d   : > { %5870 = vmatprep.mubr.bf16.mxu0 %v11576_v16 }
 0x323   : > { %5710 = vmatmul.mubr.bf16.gmra.mrb[212].mxu1 %v11555_v4 }
 0x324   : > { %5717 = vmatprep.mubr.bf16.mxu1 %v11600_v55  ;;  %5871 = vmatmul.mubr.bf16.gmra.mrb[20].mxu0 %v11543_v43 }
 0x325   : > { %5878 = vmatprep.mubr.bf16.mxu0 %v11597_v63 }
 0x32b   : > { %5718 = vmatmul.mubr.bf16.gmra.mrb[216].mxu1 %v11576_v16 }
 0x32c   : > { %5725 = vmatprep.mubr.bf16.mxu1 %v11620_v50  ;;  %5879 = vmatmul.mubr.bf16.gmra.mrb[24].mxu0 %v11564_v59  ;;  %v4684_v59 = vshll.u32 %v11666_v60, 16 }
 0x32d   : > { %5886 = vmatprep.mubr.bf16.mxu0 %v11617_v27 }
 0x32e   : > { %v4686_v30 = vrot.slane %v4684_v59, 1 }
 0x32f   : > { %v7593_v36 = vpop.f32.mrb[176].mxu0 }
 0x330   : > { %v7594_v13 = vpop.f32.mrb[177].mxu0  ;;  %v4687_v46 = vor.u32 %v4686_v30, %v4682_v26 }
 0x331   : > { %v7595_v9 = vadd.f32 %v7594_v13, %v7593_v36  ;;  %v7596_v11 = vpop.f32.mrb[178].mxu0 }
 0x332   : > { %v7597_v61 = vpop.f32.mrb[179].mxu0 }
 0x333   : > { %v11737_v24 = vadd.f32 %v7595_v9, %v5318_v40  ;;  %v7598_v51 = vadd.f32 %v7597_v61, %v7596_v11  ;;  %5726 = vmatmul.mubr.bf16.gmra.mrb[220].mxu1 %v11597_v63 }
 0x334   : > { %5733 = vmatprep.mubr.bf16.mxu1 %v11644_v6  ;;  %5887 = vmatmul.mubr.bf16.gmra.mrb[28].mxu0 %v11585_v18  ;;  %v4374_v18 = vsel %vm11155_vm8, %v11646_v37, 0 }
 0x335   : > { %v11740_v62 = vadd.f32 %v7598_v51, %v5321_v0  ;;  %5894 = vmatprep.mubr.bf16.mxu0 %v11641_v44  ;;  %v4689_v37 = vshll.u32 %v4374_v18, 16 }
 0x336   : > { %v7487_v5 = vpop.f32.mrb[116].mxu1 }
 0x337   : > { %v7488_v53 = vpop.f32.mrb[117].mxu1  ;;  %v7599_v3 = vpop.f32.mrb[180].mxu0  ;;  %v4691_v13 = vrot.slane %v4689_v37, 1 }
 0x338   : > { %v7489_v32 = vadd.f32 %v7488_v53, %v7487_v5  ;;  %v7490_v43 = vpop.f32.mrb[118].mxu1  ;;  %v7600_v4 = vpop.f32.mrb[181].mxu0 }
 0x339   : > { %v7601_v16 = vadd.f32 %v7600_v4, %v7599_v3  ;;  %v7491_v57 = vpop.f32.mrb[119].mxu1  ;;  %v7602_v33 = vpop.f32.mrb[182].mxu0  ;;  %v4692_v0 = vsel %vm4375_vm9, %v4687_v46, %v4691_v13 }
 0x33a   : > { %v5326_v63 = vadd.f32 %v7489_v32, %v11728_v38  ;;  %v7492_v42 = vadd.f32 %v7491_v57, %v7490_v43  ;;  %v7603_v47 = vpop.f32.mrb[183].mxu0  ;;  %v4696_v32 = vrot.slane %v11666_v60, 1 }
 0x33b   : > { %v7604_v14 = vadd.f32 %v7603_v47, %v7602_v33  ;;  %5734 = vmatmul.mubr.bf16.gmra.mrb[224].mxu1 %v11617_v27  ;;  %v4697_v33 = vrot.slane %v4374_v18, 1 }
 0x33c   : > { %v11751_v52 = vadd.f32 %v7601_v16, %v5326_v63  ;;  %v5329_v41 = vadd.f32 %v7492_v42, %v11728_v38  ;;  %5741 = vmatprep.mubr.bf16.mxu1 %v11660_v58  ;;  %5895 = vmatmul.mubr.bf16.gmra.mrb[32].mxu0 %v11606_v56 }
 0x33d   : > { %5902 = vmatprep.mubr.bf16.mxu0 %v11657_v23 }
 0x33e   : > { %v11757_v1 = vadd.f32 %v7604_v14, %v5329_v41  ;;  %v7493_v19 = vpop.f32.mrb[120].mxu1  ;;  %v11774_v14 = vsel %vm4616_vm10, %v4696_v32, %v4697_v33 }
 0x33f   : > { %v7494_v54 = vpop.f32.mrb[121].mxu1  ;;  %v7605_v17 = vpop.f32.mrb[184].mxu0 }
 0x340   : > { %v7495_v27 = vadd.f32 %v7494_v54, %v7493_v19  ;;  %v7496_v45 = vpop.f32.mrb[122].mxu1  ;;  %v7606_v39 = vpop.f32.mrb[185].mxu0 }
 0x341   : > { %v7607_v31 = vadd.f32 %v7606_v39, %v7605_v17  ;;  %v7497_v20 = vpop.f32.mrb[123].mxu1  ;;  %v7608_v12 = vpop.f32.mrb[186].mxu0 }
 0x342   : > { %v5334_v56 = vadd.f32 %v7495_v27, %v11728_v38  ;;  %v7498_v40 = vadd.f32 %v7497_v20, %v7496_v45  ;;  %v7609_v36 = vpop.f32.mrb[187].mxu0 }
 0x343   : > { %v7610_v9 = vadd.f32 %v7609_v36, %v7608_v12  ;;  %5742 = vmatmul.mubr.bf16.gmra.mrb[228].mxu1 %v11641_v44 }
 0x344   : > { %v11762_v11 = vadd.f32 %v7607_v31, %v5334_v56  ;;  %v5337_v61 = vadd.f32 %v7498_v40, %v11728_v38  ;;  %5749 = vmatprep.mubr.bf16.mxu1 %v11672_v2  ;;  %5903 = vmatmul.mubr.bf16.gmra.mrb[36].mxu0 %v11626_v21 }
 0x345   : > { %5910 = vmatprep.mubr.bf16.mxu0 %v4692_v0 }
 0x346   : > { %v11768_v51 = vadd.f32 %v7610_v9, %v5337_v61  ;;  %v7499_v5 = vpop.f32.mrb[124].mxu1 }
 0x347   : > { %v7500_v53 = vpop.f32.mrb[125].mxu1  ;;  %v7611_v3 = vpop.f32.mrb[188].mxu0 }
 0x348   : > { %v7501_v43 = vadd.f32 %v7500_v53, %v7499_v5  ;;  %v7502_v44 = vpop.f32.mrb[126].mxu1  ;;  %v7612_v4 = vpop.f32.mrb[189].mxu0 }
 0x349   : > { %v7613_v59 = vadd.f32 %v7612_v4, %v7611_v3  ;;  %v7503_v16 = vpop.f32.mrb[127].mxu1  ;;  %v7614_v57 = vpop.f32.mrb[190].mxu0 }
 0x34a   : > { %v5342_v63 = vadd.f32 %v7501_v43, %v11728_v38  ;;  %v7504_v21 = vadd.f32 %v7503_v16, %v7502_v44  ;;  %v7615_v42 = vpop.f32.mrb[191].mxu0  ;;  %v8467_v16 = vld [vmem:[%s12170_s5 + $0x10] sm:$0xff]  }
 0x34b   : > { %v7616_v47 = vadd.f32 %v7615_v42, %v7614_v57  ;;  %5750 = vmatmul.mubr.bf16.gmra.mrb[232].mxu1 %v11657_v23 }
 0x34c   : > { %v11776_v41 = vadd.f32 %v7613_v59, %v5342_v63  ;;  %v5345_v30 = vadd.f32 %v7504_v21, %v11728_v38  ;;  %5757 = vmatprep.mubr.bf16.mxu1 %v11774_v14  ;;  %5911 = vmatmul.mubr.bf16.gmra.mrb[40].mxu0 %v11666_v60 }
 0x34d   : > { %5918 = vmatprep.mubr.bf16.mxu0 %v11185_v49 }
 0x34e   : > { %v11782_v18 = vadd.f32 %v7616_v47, %v5345_v30  ;;  %v7505_v19 = vpop.f32.mrb[128].mxu1 }
 0x34f   : > { %v7506_v26 = vpop.f32.mrb[129].mxu1  ;;  %v7617_v37 = vpop.f32.mrb[192].mxu0 }
 0x350   : > { %v7507_v54 = vadd.f32 %v7506_v26, %v7505_v19  ;;  %v7508_v23 = vpop.f32.mrb[130].mxu1  ;;  %v7618_v17 = vpop.f32.mrb[193].mxu0 }
 0x351   : > { %v7619_v27 = vadd.f32 %v7618_v17, %v7617_v37  ;;  %v7509_v45 = vpop.f32.mrb[131].mxu1  ;;  %v7620_v39 = vpop.f32.mrb[194].mxu0 }
 0x352   : > { %v5350_v46 = vadd.f32 %v7507_v54, %v11728_v38  ;;  %v7510_v31 = vadd.f32 %v7509_v45, %v7508_v23  ;;  %v7621_v20 = vpop.f32.mrb[195].mxu0  ;;  %v8469_v45 = vld [vmem:[%s12170_s5 + $0x20] sm:$0xff]  }
 0x353   : > { %v7622_v12 = vadd.f32 %v7621_v20, %v7620_v39  ;;  %5758 = vmatmul.mubr.bf16.gmra.mrb[236].mxu1 %v4692_v0  ;;  %v8466_v0 = vld [vmem:[%s12170_s5 + $0x8] sm:$0xff]  }
 0x354   : > { %v11785_v60 = vadd.f32 %v7619_v27, %v5350_v46  ;;  %v5353_v49 = vadd.f32 %v7510_v31, %v11728_v38  ;;  %8025 = vmatprep.mubr.bf16.mxu1 %v11369_v34  ;;  %5919 = vmatmul.mubr.bf16.gmra.mrb[44].mxu0 %v11167_v15 }
 0x356   : > { %v11790_v56 = vadd.f32 %v7622_v12, %v5353_v49  ;;  %v7511_v40 = vpop.f32.mrb[132].mxu1 }
 0x357   : > { %v7512_v36 = vpop.f32.mrb[133].mxu1  ;;  %v7623_v13 = vpop.f32.mrb[196].mxu0 }
 0x358   : > { %v7513_v9 = vadd.f32 %v7512_v36, %v7511_v40  ;;  %v7514_v61 = vpop.f32.mrb[134].mxu1  ;;  %v7624_v5 = vpop.f32.mrb[197].mxu0 }
 0x359   : > { %v7625_v53 = vadd.f32 %v7624_v5, %v7623_v13  ;;  %v7515_v3 = vpop.f32.mrb[135].mxu1  ;;  %v7626_v32 = vpop.f32.mrb[198].mxu0 }
 0x35a   : > { %v5358_v43 = vadd.f32 %v7513_v9, %v11728_v38  ;;  %v7516_v34 = vadd.f32 %v7515_v3, %v7514_v61  ;;  %v7627_v44 = vpop.f32.mrb[199].mxu0 }
 0x35b   : > { %v7628_v15 = vadd.f32 %v7627_v44, %v7626_v32  ;;  %8026 = vmatmul.mubr.bf16.vlgmr.msra.gmra.mrb[240].mxu1 %v11402_v7 }
 0x35c   : > { %v11797_v4 = vadd.f32 %v7625_v53, %v5358_v43  ;;  %v5361_v59 = vadd.f32 %v7516_v34, %v11728_v38  ;;  %8029 = vmatprep.mubr.bf16.mxu1 %v11435_v29  ;;  %8058 = vmatpush3.bf16.msra.mxu1 %v11697_v48  ;;  %v8468_v29 = vld [vmem:[%s12170_s5 + $0x18] sm:$0xff]  }
 0x35d   : > { %8059 = vmatprep.subr.bf16.mxu1 %v8466_v0 }
 0x35e   : > { %v11805_v57 = vadd.f32 %v7628_v15, %v5361_v59  ;;  %v7517_v33 = vpop.f32.mrb[136].mxu1 }
 0x35f   : > { %v7518_v63 = vpop.f32.mrb[137].mxu1  ;;  %v7629_v21 = vpop.f32.mrb[200].mxu0 }
 0x360   : > { %v7519_v42 = vadd.f32 %v7518_v63, %v7517_v33  ;;  %v7520_v7 = vpop.f32.mrb[138].mxu1  ;;  %v7630_v47 = vpop.f32.mrb[201].mxu0  ;;  %8060 = vmatpush3.bf16.msra.mxu1 %v8466_v0  ;;  %v8471_v0 = vld [vmem:[%s12170_s5 + $0x30] sm:$0xff]  }
 0x361   : > { %v7631_v30 = vadd.f32 %v7630_v47, %v7629_v21  ;;  %v7521_v19 = vpop.f32.mrb[139].mxu1  ;;  %v7632_v26 = vpop.f32.mrb[202].mxu0  ;;  %8061 = vmatprep.subr.bf16.mxu1 %v8467_v16 }
 0x362   : > { %v5366_v48 = vadd.f32 %v7519_v42, %v11728_v38  ;;  %v7522_v37 = vadd.f32 %v7521_v19, %v7520_v7  ;;  %v7633_v54 = vpop.f32.mrb[203].mxu0 }
 0x363   : > { %v7634_v23 = vadd.f32 %v7633_v54, %v7632_v26  ;;  %8030 = vmatmul.mubr.bf16.gmra.mrb[244].mxu1 %v11467_v35 }
 0x364   : > { %v11812_v17 = vadd.f32 %v7631_v30, %v5366_v48  ;;  %v5369_v27 = vadd.f32 %v7522_v37, %v11728_v38  ;;  %8033 = vmatprep.mubr.bf16.mxu1 %v11495_v10  ;;  %8062 = vmatpush3.bf16.msra.mxu1 %v8467_v16  ;;  %v8470_v10 = vld [vmem:[%s12170_s5 + $0x28] sm:$0xff]  }
 0x365   : > { %8063 = vmatprep.subr.bf16.mxu1 %v8468_v29 }
 0x366   : > { %v11819_v39 = vadd.f32 %v7634_v23, %v5369_v27  ;;  %v7523_v46 = vpop.f32.mrb[140].mxu1 }
 0x367   : > { %v7524_v31 = vpop.f32.mrb[141].mxu1  ;;  %v7635_v20 = vpop.f32.mrb[204].mxu0 }
 0x368   : > { %v7525_v12 = vadd.f32 %v7524_v31, %v7523_v46  ;;  %v7526_v49 = vpop.f32.mrb[142].mxu1  ;;  %v7636_v35 = vpop.f32.mrb[205].mxu0  ;;  %8064 = vmatpush3.bf16.msra.mxu1 %v8468_v29 }
 0x369   : > { %v7637_v40 = vadd.f32 %v7636_v35, %v7635_v20  ;;  %v7527_v36 = vpop.f32.mrb[143].mxu1  ;;  %v7638_v13 = vpop.f32.mrb[206].mxu0  ;;  %8065 = vmatprep.subr.bf16.mxu1 %v8469_v45 }
 0x36a   : > { %v5374_v9 = vadd.f32 %v7525_v12, %v11728_v38  ;;  %v7528_v61 = vadd.f32 %v7527_v36, %v7526_v49  ;;  %v7639_v5 = vpop.f32.mrb[207].mxu0 }
 0x36b   : > { %v7640_v53 = vadd.f32 %v7639_v5, %v7638_v13  ;;  %8034 = vmatmul.mubr.bf16.gmra.mrb[248].mxu1 %v11516_v8 }
 0x36c   : > { %v11826_v3 = vadd.f32 %v7637_v40, %v5374_v9  ;;  %v5377_v32 = vadd.f32 %v7528_v61, %v11728_v38  ;;  %8037 = vmatprep.mubr.bf16.mxu1 %v11537_v25  ;;  %8066 = vmatpush3.bf16.msra.mxu1 %v8469_v45  ;;  %v8472_v25 = vld [vmem:[%s12170_s5 + $0x38] sm:$0xff]  }
 0x36d   : > { %8067 = vmatprep.subr.bf16.mxu1 %v8470_v10 }
 0x36e   : > { %v11833_v43 = vadd.f32 %v7640_v53, %v5377_v32  ;;  %v7529_v34 = vpop.f32.mrb[144].mxu1 }
 0x36f   : > { %v7530_v44 = vpop.f32.mrb[145].mxu1  ;;  %v7641_v15 = vpop.f32.mrb[208].mxu0 }
 0x370   : > { %v7531_v59 = vadd.f32 %v7530_v44, %v7529_v34  ;;  %v7532_v16 = vpop.f32.mrb[146].mxu1  ;;  %v7642_v8 = vpop.f32.mrb[209].mxu0  ;;  %8068 = vmatpush3.bf16.msra.mxu1 %v8470_v10 }
 0x371   : > { %v7643_v33 = vadd.f32 %v7642_v8, %v7641_v15  ;;  %v7533_v63 = vpop.f32.mrb[147].mxu1  ;;  %v7644_v21 = vpop.f32.mrb[210].mxu0  ;;  %8069 = vmatprep.subr.bf16.mxu1 %v8471_v0 }
 0x372   : > { %v5382_v42 = vadd.f32 %v7531_v59, %v11728_v38  ;;  %v7534_v7 = vadd.f32 %v7533_v63, %v7532_v16  ;;  %v7645_v47 = vpop.f32.mrb[211].mxu0 }
 0x373   : > { %v7646_v30 = vadd.f32 %v7645_v47, %v7644_v21  ;;  %8038 = vmatmul.mubr.bf16.gmra.mrb[252].mxu1 %v11558_v28 }
 0x374   : > { %v11840_v19 = vadd.f32 %v7643_v33, %v5382_v42  ;;  %v5385_v26 = vadd.f32 %v7534_v7, %v11728_v38  ;;  %8041 = vmatprep.mubr.bf16.mxu1 %v11579_v22  ;;  %8070 = vmatpush3.bf16.msra.mxu1 %v8471_v0 }
 0x375   : > { %8071 = vmatprep.subr.bf16.mxu1 %v8472_v25 }
 0x376   : > { %v11844_v29 = vadd.f32 %v7646_v30, %v5385_v26  ;;  %v7535_v48 = vpop.f32.mrb[148].mxu1 }
 0x377   : > { %v7536_v37 = vpop.f32.mrb[149].mxu1  ;;  %v7647_v54 = vpop.f32.mrb[212].mxu0 }
 0x378   : > { %v7537_v23 = vadd.f32 %v7536_v37, %v7535_v48  ;;  %v7538_v27 = vpop.f32.mrb[150].mxu1  ;;  %v7648_v45 = vpop.f32.mrb[213].mxu0  ;;  %8072 = vmatpush3.bf16.msra.mxu1 %v8472_v25 }
 0x379   : > { %v7649_v46 = vadd.f32 %v7648_v45, %v7647_v54  ;;  %v7539_v31 = vpop.f32.mrb[151].mxu1  ;;  %v7650_v28 = vpop.f32.mrb[214].mxu0 }
 0x37a   : > { %v5390_v20 = vadd.f32 %v7537_v23, %v11728_v38  ;;  %v7540_v12 = vadd.f32 %v7539_v31, %v7538_v27  ;;  %v7651_v49 = vpop.f32.mrb[215].mxu0 }
 0x37b   : > { %v7652_v35 = vadd.f32 %v7651_v49, %v7650_v28  ;;  %8042 = vmatmul.mubr.bf16.gmra.mrb[0].mxu1 %v11600_v55 }
 0x37c   : > { %v11848_v22 = vadd.f32 %v7649_v46, %v5390_v20  ;;  %v5393_v40 = vadd.f32 %v7540_v12, %v11728_v38  ;;  %8045 = vmatprep.mubr.bf16.mxu1 %v11620_v50 }
 0x37e   : > { %v11852_v36 = vadd.f32 %v7652_v35, %v5393_v40  ;;  %v7541_v13 = vpop.f32.mrb[152].mxu1 }
 0x37f   : > { %v7542_v10 = vpop.f32.mrb[153].mxu1  ;;  %v7653_v9 = vpop.f32.mrb[216].mxu0 }
 0x380   : > { %v7543_v61 = vadd.f32 %v7542_v10, %v7541_v13  ;;  %v7544_v5 = vpop.f32.mrb[154].mxu1  ;;  %v7654_v53 = vpop.f32.mrb[217].mxu0 }
 0x381   : > { %v7655_v32 = vadd.f32 %v7654_v53, %v7653_v9  ;;  %v7545_v0 = vpop.f32.mrb[155].mxu1  ;;  %v7656_v34 = vpop.f32.mrb[218].mxu0  ;;  %v12339_v53 = vld [vmem:[#allocation32_spill] sm:$0xff] }
 0x382   : > { %v5398_v44 = vadd.f32 %v7543_v61, %v11728_v38  ;;  %v7546_v55 = vadd.f32 %v7545_v0, %v7544_v5  ;;  %v7657_v15 = vpop.f32.mrb[219].mxu0  ;;  %v12338_v61 = vld [vmem:[#allocation22_spill] sm:$0xff] }
 0x383   : > { %v7658_v59 = vadd.f32 %v7657_v15, %v7656_v34  ;;  %8046 = vmatmul.mubr.bf16.gmra.mrb[4].mxu1 %v11644_v6 }
 0x384   : > { %v11856_v16 = vadd.f32 %v7655_v32, %v5398_v44  ;;  %v5401_v50 = vadd.f32 %v7546_v55, %v11728_v38  ;;  %8049 = vmatprep.mubr.bf16.mxu1 %v11660_v58 }
 0x386   : > { %v11860_v8 = vadd.f32 %v7658_v59, %v5401_v50  ;;  %v7547_v33 = vpop.f32.mrb[156].mxu1 }
 0x387   : > { %v7548_v63 = vpop.f32.mrb[157].mxu1  ;;  %v7659_v21 = vpop.f32.mrb[220].mxu0 }
 0x388   : > { %v7549_v25 = vadd.f32 %v7548_v63, %v7547_v33  ;;  %v7550_v42 = vpop.f32.mrb[158].mxu1  ;;  %v7660_v7 = vpop.f32.mrb[221].mxu0 }
 0x389   : > { %v7661_v47 = vadd.f32 %v7660_v7, %v7659_v21  ;;  %v7551_v30 = vpop.f32.mrb[159].mxu1  ;;  %v7662_v26 = vpop.f32.mrb[222].mxu0 }
 0x38a   : > { %v5406_v48 = vadd.f32 %v7549_v25, %v11728_v38  ;;  %v7552_v6 = vadd.f32 %v7551_v30, %v7550_v42  ;;  %v7663_v37 = vpop.f32.mrb[223].mxu0 }
 0x38b   : > { %v7664_v54 = vadd.f32 %v7663_v37, %v7662_v26  ;;  %8050 = vmatmul.mubr.bf16.gmra.mrb[8].mxu1 %v11672_v2 }
 0x38c   : > { %v11864_v23 = vadd.f32 %v7661_v47, %v5406_v48  ;;  %v5409_v58 = vadd.f32 %v7552_v6, %v11728_v38  ;;  %8053 = vmatprep.mubr.bf16.mxu1 %v11774_v14  ;;  %v12340_v47 = vld [vmem:[#allocation33_spill] sm:$0xff]  ;;  %v12341_v48 = vld [vmem:[#allocation34_spill] sm:$0xff] }
 0x38e   : > { %v11868_v27 = vadd.f32 %v7664_v54, %v5409_v58  ;;  %v7553_v45 = vpop.f32.mrb[160].mxu1 }
 0x38f   : > { %v7554_v46 = vpop.f32.mrb[161].mxu1  ;;  %v7665_v31 = vpop.f32.mrb[224].mxu0 }
 0x390   : > { %v7555_v28 = vadd.f32 %v7554_v46, %v7553_v45  ;;  %v7556_v20 = vpop.f32.mrb[162].mxu1  ;;  %v7666_v12 = vpop.f32.mrb[225].mxu0 }
 0x391   : > { %v7667_v49 = vadd.f32 %v7666_v12, %v7665_v31  ;;  %v7557_v35 = vpop.f32.mrb[163].mxu1  ;;  %v7668_v40 = vpop.f32.mrb[226].mxu0 }
 0x392   : > { %v5414_v13 = vadd.f32 %v7555_v28, %v11728_v38  ;;  %v7558_v2 = vadd.f32 %v7557_v35, %v7556_v20  ;;  %v7669_v10 = vpop.f32.mrb[227].mxu0 }
 0x393   : > { %v7670_v9 = vadd.f32 %v7669_v10, %v7668_v40  ;;  %8054 = vmatmul.mubr.bf16.gmra.mrb[12].mxu1 %v12338_v61  ;;  %v12343_v61 = vld [vmem:[#allocation35_spill] sm:$0xff] }
 0x394   : > { %v11872_v5 = vadd.f32 %v7667_v49, %v5414_v13  ;;  %v5417_v14 = vadd.f32 %v7558_v2, %v11728_v38  ;;  %8073 = vmatprep.mubr.bf16.mxu1 %v12339_v53  ;;  %v12342_v2 = vld [vmem:[#allocation36_spill] sm:$0xff] }
 0x396   : > { %v11876_v32 = vadd.f32 %v7670_v9, %v5417_v14  ;;  %v7559_v0 = vpop.f32.mrb[164].mxu1 }
 0x397   : > { %v7560_v34 = vpop.f32.mrb[165].mxu1  ;;  %v7671_v44 = vpop.f32.mrb[228].mxu0 }
 0x398   : > { %v7561_v55 = vadd.f32 %v7560_v34, %v7559_v0  ;;  %v7562_v15 = vpop.f32.mrb[166].mxu1  ;;  %v7672_v59 = vpop.f32.mrb[229].mxu0 }
 0x399   : > { %v7673_v50 = vadd.f32 %v7672_v59, %v7671_v44  ;;  %v7563_v33 = vpop.f32.mrb[167].mxu1  ;;  %v7674_v63 = vpop.f32.mrb[230].mxu0 }
 0x39a   : > { %v5422_v21 = vadd.f32 %v7561_v55, %v11728_v38  ;;  %v7564_v25 = vadd.f32 %v7563_v33, %v7562_v15  ;;  %v7675_v42 = vpop.f32.mrb[231].mxu0 }
 0x39b   : > { %v7676_v7 = vadd.f32 %v7675_v42, %v7674_v63  ;;  %8074 = vmatmul.mubr.bf16.vlgmr.msra.gmra.mrb[240].mxu1 %v12340_v47 }
 0x39c   : > { %v11880_v30 = vadd.f32 %v7673_v50, %v5422_v21  ;;  %v5425_v26 = vadd.f32 %v7564_v25, %v11728_v38  ;;  %8077 = vmatprep.mubr.bf16.mxu1 %v12341_v48  ;;  %v12345_v48 = vld [vmem:[#allocation38_spill] sm:$0xff] }
 0x39e   : > { %v11884_v6 = vadd.f32 %v7676_v7, %v5425_v26  ;;  %v7565_v37 = vpop.f32.mrb[168].mxu1  ;;  %v12344_v7 = vld [vmem:[#allocation37_spill] sm:$0xff] }
 0x39f   : > { %v7566_v54 = vpop.f32.mrb[169].mxu1  ;;  %v7677_v58 = vpop.f32.mrb[232].mxu0 }
 0x3a0   : > { %v7567_v45 = vadd.f32 %v7566_v54, %v7565_v37  ;;  %v7568_v46 = vpop.f32.mrb[170].mxu1  ;;  %v7678_v31 = vpop.f32.mrb[233].mxu0 }
 0x3a1   : > { %v7679_v28 = vadd.f32 %v7678_v31, %v7677_v58  ;;  %v7569_v20 = vpop.f32.mrb[171].mxu1  ;;  %v7680_v12 = vpop.f32.mrb[234].mxu0 }
 0x3a2   : > { %v5430_v49 = vadd.f32 %v7567_v45, %v11728_v38  ;;  %v7570_v35 = vadd.f32 %v7569_v20, %v7568_v46  ;;  %v7681_v40 = vpop.f32.mrb[235].mxu0 }
 0x3a3   : > { %v7682_v13 = vadd.f32 %v7681_v40, %v7680_v12  ;;  %8078 = vmatmul.mubr.bf16.gmra.mrb[244].mxu1 %v12342_v2 }
 0x3a4   : > { %v11888_v10 = vadd.f32 %v7679_v28, %v5430_v49  ;;  %v5433_v9 = vadd.f32 %v7570_v35, %v11728_v38  ;;  %8081 = vmatprep.mubr.bf16.mxu1 %v12343_v61  ;;  %v12347_v61 = vld [vmem:[#allocation12_spill] sm:$0xff] }
 0x3a6   : > { %v11892_v14 = vadd.f32 %v7682_v13, %v5433_v9  ;;  %v7571_v53 = vpop.f32.mrb[172].mxu1  ;;  %v12346_v9 = vld [vmem:[#allocation10_spill] sm:$0xff] }
 0x3a7   : > { %v7572_v0 = vpop.f32.mrb[173].mxu1  ;;  %v7683_v34 = vpop.f32.mrb[236].mxu0 }
 0x3a8   : > { %v7573_v44 = vadd.f32 %v7572_v0, %v7571_v53  ;;  %v7574_v55 = vpop.f32.mrb[174].mxu1  ;;  %v7684_v15 = vpop.f32.mrb[237].mxu0 }
 0x3a9   : > { %v7685_v59 = vadd.f32 %v7684_v15, %v7683_v34  ;;  %v7575_v50 = vpop.f32.mrb[175].mxu1  ;;  %v7686_v33 = vpop.f32.mrb[238].mxu0 }
 0x3aa   : > { %v5438_v63 = vadd.f32 %v7573_v44, %v11728_v38  ;;  %v7576_v21 = vadd.f32 %v7575_v50, %v7574_v55  ;;  %v7687_v25 = vpop.f32.mrb[239].mxu0 }
 0x3ab   : > { %v7688_v42 = vadd.f32 %v7687_v25, %v7686_v33  ;;  %8082 = vmatmul.mubr.bf16.gmra.mrb[248].mxu1 %v12344_v7  ;;  %v12348_v7 = vld [vmem:[#allocation8_spill] sm:$0xff] }
 0x3ac   : > { %v11896_v47 = vadd.f32 %v7685_v59, %v5438_v63  ;;  %v5441_v26 = vadd.f32 %v7576_v21, %v11728_v38  ;;  %8085 = vmatprep.mubr.bf16.mxu1 %v12345_v48  ;;  %v12349_v48 = vld [vmem:[#allocation14_spill] sm:$0xff] }
 0x3ae   : > { %v11900_v37 = vadd.f32 %v7688_v42, %v5441_v26  ;;  %v7705_v54 = vpop.f32.mrb[176].mxu1 }
 0x3af   : > { %v7706_v58 = vpop.f32.mrb[177].mxu1  ;;  %v7817_v45 = vpop.f32.mrb[240].mxu0 }
 0x3b0   : > { %v7707_v46 = vadd.f32 %v7706_v58, %v7705_v54  ;;  %v7708_v31 = vpop.f32.mrb[178].mxu1  ;;  %v7818_v28 = vpop.f32.mrb[241].mxu0 }
 0x3b1   : > { %v7819_v20 = vadd.f32 %v7818_v28, %v7817_v45  ;;  %v7709_v12 = vpop.f32.mrb[179].mxu1  ;;  %v7820_v49 = vpop.f32.mrb[242].mxu0 }
 0x3b2   : > { %v5640_v35 = vadd.f32 %v7707_v46, %v11737_v24  ;;  %v7710_v40 = vadd.f32 %v7709_v12, %v7708_v31  ;;  %v7821_v13 = vpop.f32.mrb[243].mxu0 }
 0x3b3   : > { %v7822_v2 = vadd.f32 %v7821_v13, %v7820_v49  ;;  %8086 = vmatmul.mubr.bf16.gmra.mrb[252].mxu1 %v12346_v9  ;;  %v12350_v9 = vld [vmem:[#allocation18_spill] sm:$0xff] }
 0x3b4   : > { %v5643_v38 = vadd.f32 %v7710_v40, %v11740_v62  ;;  %8089 = vmatprep.mubr.bf16.mxu1 %v12347_v61  ;;  %v11906_v53 = vadd.f32 %v7819_v20, %v5640_v35 }
 0x3b6   : > { %v11908_v0 = vadd.f32 %v7822_v2, %v5643_v38  ;;  %v7711_v34 = vpop.f32.mrb[180].mxu1 }
 0x3b7   : > { %v7712_v44 = vpop.f32.mrb[181].mxu1  ;;  %v7823_v55 = vpop.f32.mrb[244].mxu0 }
 0x3b8   : > { %v7713_v15 = vadd.f32 %v7712_v44, %v7711_v34  ;;  %v7714_v59 = vpop.f32.mrb[182].mxu1  ;;  %v7824_v50 = vpop.f32.mrb[245].mxu0  ;;  %v12351_v34 = vld [vmem:[#allocation19_spill] sm:$0xff] }
 0x3b9   : > { %v7825_v24 = vadd.f32 %v7824_v50, %v7823_v55  ;;  %v7715_v33 = vpop.f32.mrb[183].mxu1  ;;  %v7826_v63 = vpop.f32.mrb[246].mxu0 }
 0x3ba   : > { %v5648_v21 = vadd.f32 %v7713_v15, %v11751_v52  ;;  %v7716_v25 = vadd.f32 %v7715_v33, %v7714_v59  ;;  %v7827_v42 = vpop.f32.mrb[247].mxu0 }
 0x3bb   : > { %v7828_v62 = vadd.f32 %v7827_v42, %v7826_v63  ;;  %8090 = vmatmul.mubr.bf16.gmra.mrb[0].mxu1 %v12348_v7 }
 0x3bc   : > { %v5651_v26 = vadd.f32 %v7716_v25, %v11757_v1  ;;  %8093 = vmatprep.mubr.bf16.mxu1 %v12349_v48  ;;  %v11914_v54 = vadd.f32 %v7825_v24, %v5648_v21 }
 0x3be   : > { %v11916_v58 = vadd.f32 %v7828_v62, %v5651_v26  ;;  %v7717_v45 = vpop.f32.mrb[184].mxu1  ;;  %v12352_v26 = vld [vmem:[#allocation20_spill] sm:$0xff] }
 0x3bf   : > { %v7718_v46 = vpop.f32.mrb[185].mxu1  ;;  %v7829_v31 = vpop.f32.mrb[248].mxu0 }
 0x3c0   : > { %v7719_v28 = vadd.f32 %v7718_v46, %v7717_v45  ;;  %v7720_v20 = vpop.f32.mrb[186].mxu1  ;;  %v7830_v12 = vpop.f32.mrb[249].mxu0  ;;  %v12353_v45 = vld [vmem:[#allocation23_spill] sm:$0xff] }
 0x3c1   : > { %v7831_v52 = vadd.f32 %v7830_v12, %v7829_v31  ;;  %v7721_v49 = vpop.f32.mrb[187].mxu1  ;;  %v7832_v35 = vpop.f32.mrb[250].mxu0 }
 0x3c2   : > { %v5656_v40 = vadd.f32 %v7719_v28, %v11762_v11  ;;  %v7722_v13 = vadd.f32 %v7721_v49, %v7720_v20  ;;  %v7833_v2 = vpop.f32.mrb[251].mxu0 }
 0x3c3   : > { %v7834_v1 = vadd.f32 %v7833_v2, %v7832_v35  ;;  %8094 = vmatmul.mubr.bf16.gmra.mrb[4].mxu1 %v12350_v9 }
 0x3c4   : > { %v11920_v38 = vadd.f32 %v7831_v52, %v5656_v40  ;;  %v5659_v61 = vadd.f32 %v7722_v13, %v11768_v51  ;;  %8097 = vmatprep.mubr.bf16.mxu1 %v12351_v34 }
 0x3c6   : > { %v11924_v44 = vadd.f32 %v7834_v1, %v5659_v61  ;;  %v7723_v55 = vpop.f32.mrb[188].mxu1  ;;  %v12354_v61 = vld [vmem:[#allocation24_spill] sm:$0xff] }
 0x3c7   : > { %v7724_v15 = vpop.f32.mrb[189].mxu1  ;;  %v7835_v59 = vpop.f32.mrb[252].mxu0 }
 0x3c8   : > { %v7725_v50 = vadd.f32 %v7724_v15, %v7723_v55  ;;  %v7726_v24 = vpop.f32.mrb[190].mxu1  ;;  %v7836_v33 = vpop.f32.mrb[253].mxu0 }
 0x3c9   : > { %v7837_v11 = vadd.f32 %v7836_v33, %v7835_v59  ;;  %v7727_v63 = vpop.f32.mrb[191].mxu1  ;;  %v7838_v21 = vpop.f32.mrb[254].mxu0 }
 0x3ca   : > { %v5664_v25 = vadd.f32 %v7725_v50, %v11776_v41  ;;  %v7728_v42 = vadd.f32 %v7727_v63, %v7726_v24  ;;  %v7839_v62 = vpop.f32.mrb[255].mxu0 }
 0x3cb   : > { %v7840_v7 = vadd.f32 %v7839_v62, %v7838_v21  ;;  %8098 = vmatmul.mubr.bf16.gmra.mrb[8].mxu1 %v12352_v26 }
 0x3cc   : > { %v11928_v51 = vadd.f32 %v7837_v11, %v5664_v25  ;;  %v5667_v48 = vadd.f32 %v7728_v42, %v11782_v18  ;;  %8101 = vmatprep.mubr.bf16.mxu1 %v12353_v45 }
 0x3ce   : > { %v11932_v46 = vadd.f32 %v7840_v7, %v5667_v48  ;;  %v7729_v31 = vpop.f32.mrb[192].mxu1 }
 0x3cf   : > { %v7730_v28 = vpop.f32.mrb[193].mxu1  ;;  %v7841_v20 = vpop.f32.mrb[0].mxu0 }
 0x3d0   : > { %v7731_v12 = vadd.f32 %v7730_v28, %v7729_v31  ;;  %v7732_v52 = vpop.f32.mrb[194].mxu1  ;;  %v7842_v49 = vpop.f32.mrb[1].mxu0 }
 0x3d1   : > { %v7843_v41 = vadd.f32 %v7842_v49, %v7841_v20  ;;  %v7733_v35 = vpop.f32.mrb[195].mxu1  ;;  %v7844_v40 = vpop.f32.mrb[2].mxu0 }
 0x3d2   : > { %v5672_v13 = vadd.f32 %v7731_v12, %v11785_v60  ;;  %v7734_v2 = vadd.f32 %v7733_v35, %v7732_v52  ;;  %v7845_v1 = vpop.f32.mrb[3].mxu0 }
 0x3d3   : > { %v7846_v9 = vadd.f32 %v7845_v1, %v7844_v40  ;;  %8102 = vmatmul.mubr.bf16.gmra.mrb[12].mxu1 %v12354_v61 }
 0x3d4   : > { %v11936_v18 = vadd.f32 %v7843_v41, %v5672_v13  ;;  %v5675_v34 = vadd.f32 %v7734_v2, %v11790_v56 }
 0x3d6   : > { %v11939_v55 = vadd.f32 %v7846_v9, %v5675_v34  ;;  %v7735_v15 = vpop.f32.mrb[196].mxu1 }
 0x3d7   : > { %v7736_v59 = vpop.f32.mrb[197].mxu1  ;;  %v7847_v50 = vpop.f32.mrb[4].mxu0 }
 0x3d8   : > { %v7737_v24 = vadd.f32 %v7736_v59, %v7735_v15  ;;  %v7738_v33 = vpop.f32.mrb[198].mxu1  ;;  %v7848_v11 = vpop.f32.mrb[5].mxu0 }
 0x3d9   : > { %v7849_v63 = vadd.f32 %v7848_v11, %v7847_v50  ;;  %v7739_v21 = vpop.f32.mrb[199].mxu1  ;;  %v7850_v60 = vpop.f32.mrb[6].mxu0 }
 0x3da   : > { %v5680_v25 = vadd.f32 %v7737_v24, %v11797_v4  ;;  %v7740_v42 = vadd.f32 %v7739_v21, %v7738_v33  ;;  %v7851_v62 = vpop.f32.mrb[7].mxu0 }
 0x3db   : > { %v7852_v7 = vadd.f32 %v7851_v62, %v7850_v60 }
 0x3dc   : > { %v11942_v26 = vadd.f32 %v7849_v63, %v5680_v25  ;;  %v5683_v56 = vadd.f32 %v7740_v42, %v11805_v57 }
 0x3de   : > { %v11945_v48 = vadd.f32 %v7852_v7, %v5683_v56  ;;  %v7741_v45 = vpop.f32.mrb[200].mxu1 }
 0x3df   : > { %v7742_v31 = vpop.f32.mrb[201].mxu1  ;;  %v7853_v28 = vpop.f32.mrb[8].mxu0 }
 0x3e0   : > { %v7743_v20 = vadd.f32 %v7742_v31, %v7741_v45  ;;  %v7744_v12 = vpop.f32.mrb[202].mxu1  ;;  %v7854_v52 = vpop.f32.mrb[9].mxu0 }
 0x3e1   : > { %v7855_v49 = vadd.f32 %v7854_v52, %v7853_v28  ;;  %v7745_v41 = vpop.f32.mrb[203].mxu1  ;;  %v7856_v35 = vpop.f32.mrb[10].mxu0 }
 0x3e2   : > { %v5688_v4 = vadd.f32 %v7743_v20, %v11812_v17  ;;  %v7746_v40 = vadd.f32 %v7745_v41, %v7744_v12  ;;  %v7857_v13 = vpop.f32.mrb[11].mxu0 }
 0x3e3   : > { %v7858_v2 = vadd.f32 %v7857_v13, %v7856_v35 }
 0x3e4   : > { %v11948_v1 = vadd.f32 %v7855_v49, %v5688_v4  ;;  %v5691_v57 = vadd.f32 %v7746_v40, %v11819_v39 }
 0x3e6   : > { %v11951_v9 = vadd.f32 %v7858_v2, %v5691_v57  ;;  %v7747_v61 = vpop.f32.mrb[204].mxu1 }
 0x3e7   : > { %v7748_v34 = vpop.f32.mrb[205].mxu1  ;;  %v7859_v15 = vpop.f32.mrb[12].mxu0 }
 0x3e8   : > { %v7749_v59 = vadd.f32 %v7748_v34, %v7747_v61  ;;  %v7750_v50 = vpop.f32.mrb[206].mxu1  ;;  %v7860_v24 = vpop.f32.mrb[13].mxu0 }
 0x3e9   : > { %v7861_v33 = vadd.f32 %v7860_v24, %v7859_v15  ;;  %v7751_v11 = vpop.f32.mrb[207].mxu1  ;;  %v7862_v63 = vpop.f32.mrb[14].mxu0 }
 0x3ea   : > { %v5696_v17 = vadd.f32 %v7749_v59, %v11826_v3  ;;  %v7752_v21 = vadd.f32 %v7751_v11, %v7750_v50  ;;  %v7863_v60 = vpop.f32.mrb[15].mxu0 }
 0x3eb   : > { %v7864_v25 = vadd.f32 %v7863_v60, %v7862_v63 }
 0x3ec   : > { %v11954_v42 = vadd.f32 %v7861_v33, %v5696_v17  ;;  %v5699_v39 = vadd.f32 %v7752_v21, %v11833_v43 }
 0x3ee   : > { %v11957_v62 = vadd.f32 %v7864_v25, %v5699_v39  ;;  %v7753_v7 = vpop.f32.mrb[208].mxu1 }
 0x3ef   : > { %v7754_v56 = vpop.f32.mrb[209].mxu1  ;;  %v7865_v45 = vpop.f32.mrb[16].mxu0 }
 0x3f0   : > { %v7755_v31 = vadd.f32 %v7754_v56, %v7753_v7  ;;  %v7756_v28 = vpop.f32.mrb[210].mxu1  ;;  %v7866_v20 = vpop.f32.mrb[17].mxu0 }
 0x3f1   : > { %v7867_v12 = vadd.f32 %v7866_v20, %v7865_v45  ;;  %v7757_v52 = vpop.f32.mrb[211].mxu1  ;;  %v7868_v49 = vpop.f32.mrb[18].mxu0 }
 0x3f2   : > { %v5704_v3 = vadd.f32 %v7755_v31, %v11840_v19  ;;  %v7758_v41 = vadd.f32 %v7757_v52, %v7756_v28  ;;  %v7869_v35 = vpop.f32.mrb[19].mxu0 }
 0x3f3   : > { %v7870_v4 = vadd.f32 %v7869_v35, %v7868_v49 }
 0x3f4   : > { %v11960_v40 = vadd.f32 %v7867_v12, %v5704_v3  ;;  %v5707_v43 = vadd.f32 %v7758_v41, %v11844_v29 }
 0x3f6   : > { %v11963_v13 = vadd.f32 %v7870_v4, %v5707_v43  ;;  %v7759_v2 = vpop.f32.mrb[212].mxu1 }
 0x3f7   : > { %v7760_v57 = vpop.f32.mrb[213].mxu1  ;;  %v7871_v61 = vpop.f32.mrb[20].mxu0 }
 0x3f8   : > { %v7761_v34 = vadd.f32 %v7760_v57, %v7759_v2  ;;  %v7762_v15 = vpop.f32.mrb[214].mxu1  ;;  %v7872_v59 = vpop.f32.mrb[21].mxu0 }
 0x3f9   : > { %v7873_v50 = vadd.f32 %v7872_v59, %v7871_v61  ;;  %v7763_v24 = vpop.f32.mrb[215].mxu1  ;;  %v7874_v33 = vpop.f32.mrb[22].mxu0 }
 0x3fa   : > { %v5712_v19 = vadd.f32 %v7761_v34, %v11848_v22  ;;  %v7764_v11 = vadd.f32 %v7763_v24, %v7762_v15  ;;  %v7875_v63 = vpop.f32.mrb[23].mxu0 }
 0x3fb   : > { %v7876_v17 = vadd.f32 %v7875_v63, %v7874_v33 }
 0x3fc   : > { %v11966_v21 = vadd.f32 %v7873_v50, %v5712_v19  ;;  %v5715_v29 = vadd.f32 %v7764_v11, %v11852_v36 }
 0x3fe   : > { %v11969_v60 = vadd.f32 %v7876_v17, %v5715_v29  ;;  %v7765_v25 = vpop.f32.mrb[216].mxu1 }
 0x3ff   : > { %v7766_v39 = vpop.f32.mrb[217].mxu1  ;;  %v7877_v7 = vpop.f32.mrb[24].mxu0 }
 0x400   : > { %v7767_v56 = vadd.f32 %v7766_v39, %v7765_v25  ;;  %v7768_v45 = vpop.f32.mrb[218].mxu1  ;;  %v7878_v31 = vpop.f32.mrb[25].mxu0 }
 0x401   : > { %v7879_v28 = vadd.f32 %v7878_v31, %v7877_v7  ;;  %v7769_v20 = vpop.f32.mrb[219].mxu1  ;;  %v7880_v12 = vpop.f32.mrb[26].mxu0 }
 0x402   : > { %v5720_v22 = vadd.f32 %v7767_v56, %v11856_v16  ;;  %v7770_v52 = vadd.f32 %v7769_v20, %v7768_v45  ;;  %v7881_v49 = vpop.f32.mrb[27].mxu0 }
 0x403   : > { %v7882_v3 = vadd.f32 %v7881_v49, %v7880_v12 }
 0x404   : > { %v11972_v41 = vadd.f32 %v7879_v28, %v5720_v22  ;;  %v5723_v36 = vadd.f32 %v7770_v52, %v11860_v8 }
 0x406   : > { %v11975_v35 = vadd.f32 %v7882_v3, %v5723_v36  ;;  %v7771_v4 = vpop.f32.mrb[220].mxu1 }
 0x407   : > { %v7772_v43 = vpop.f32.mrb[221].mxu1  ;;  %v7883_v2 = vpop.f32.mrb[28].mxu0 }
 0x408   : > { %v7773_v57 = vadd.f32 %v7772_v43, %v7771_v4  ;;  %v7774_v61 = vpop.f32.mrb[222].mxu1  ;;  %v7884_v34 = vpop.f32.mrb[29].mxu0 }
 0x409   : > { %v7885_v15 = vadd.f32 %v7884_v34, %v7883_v2  ;;  %v7775_v59 = vpop.f32.mrb[223].mxu1  ;;  %v7886_v50 = vpop.f32.mrb[30].mxu0 }
 0x40a   : > { %v5728_v16 = vadd.f32 %v7773_v57, %v11864_v23  ;;  %v7776_v24 = vadd.f32 %v7775_v59, %v7774_v61  ;;  %v7887_v33 = vpop.f32.mrb[31].mxu0 }
 0x40b   : > { %v7888_v19 = vadd.f32 %v7887_v33, %v7886_v50 }
 0x40c   : > { %v11978_v11 = vadd.f32 %v7885_v15, %v5728_v16  ;;  %v5731_v8 = vadd.f32 %v7776_v24, %v11868_v27 }
 0x40e   : > { %v11981_v63 = vadd.f32 %v7888_v19, %v5731_v8  ;;  %v7777_v17 = vpop.f32.mrb[224].mxu1 }
 0x40f   : > { %v7778_v29 = vpop.f32.mrb[225].mxu1  ;;  %v7889_v25 = vpop.f32.mrb[32].mxu0 }
 0x410   : > { %v7779_v39 = vadd.f32 %v7778_v29, %v7777_v17  ;;  %v7780_v7 = vpop.f32.mrb[226].mxu1  ;;  %v7890_v56 = vpop.f32.mrb[33].mxu0 }
 0x411   : > { %v7891_v45 = vadd.f32 %v7890_v56, %v7889_v25  ;;  %v7781_v31 = vpop.f32.mrb[227].mxu1  ;;  %v7892_v28 = vpop.f32.mrb[34].mxu0 }
 0x412   : > { %v5736_v23 = vadd.f32 %v7779_v39, %v11872_v5  ;;  %v7782_v20 = vadd.f32 %v7781_v31, %v7780_v7  ;;  %v7893_v12 = vpop.f32.mrb[35].mxu0 }
 0x413   : > { %v7894_v22 = vadd.f32 %v7893_v12, %v7892_v28 }
 0x414   : > { %v11984_v52 = vadd.f32 %v7891_v45, %v5736_v23  ;;  %v5739_v27 = vadd.f32 %v7782_v20, %v11876_v32 }
 0x416   : > { %v11987_v49 = vadd.f32 %v7894_v22, %v5739_v27  ;;  %v7783_v3 = vpop.f32.mrb[228].mxu1 }
 0x417   : > { %v7784_v36 = vpop.f32.mrb[229].mxu1  ;;  %v7895_v4 = vpop.f32.mrb[36].mxu0 }
 0x418   : > { %v7785_v43 = vadd.f32 %v7784_v36, %v7783_v3  ;;  %v7786_v2 = vpop.f32.mrb[230].mxu1  ;;  %v7896_v57 = vpop.f32.mrb[37].mxu0 }
 0x419   : > { %v7897_v61 = vadd.f32 %v7896_v57, %v7895_v4  ;;  %v7787_v34 = vpop.f32.mrb[231].mxu1  ;;  %v7898_v15 = vpop.f32.mrb[38].mxu0 }
 0x41a   : > { %v5744_v5 = vadd.f32 %v7785_v43, %v11880_v30  ;;  %v7788_v59 = vadd.f32 %v7787_v34, %v7786_v2  ;;  %v7899_v50 = vpop.f32.mrb[39].mxu0 }
 0x41b   : > { %v7900_v16 = vadd.f32 %v7899_v50, %v7898_v15 }
 0x41c   : > { %v11990_v24 = vadd.f32 %v7897_v61, %v5744_v5  ;;  %v5747_v32 = vadd.f32 %v7788_v59, %v11884_v6 }
 0x41e   : > { %v11993_v33 = vadd.f32 %v7900_v16, %v5747_v32  ;;  %v7789_v19 = vpop.f32.mrb[232].mxu1  ;;  %v12011_v16 = vld [vmem:[%s12171_s6] ss:$0 sm:$0xff] }
 0x41f   : > { %v7790_v8 = vpop.f32.mrb[233].mxu1  ;;  %v7901_v17 = vpop.f32.mrb[40].mxu0 }
 0x420   : > { %v7791_v29 = vadd.f32 %v7790_v8, %v7789_v19  ;;  %v7792_v25 = vpop.f32.mrb[234].mxu1  ;;  %v7902_v39 = vpop.f32.mrb[41].mxu0  ;;  %v8125_v8 = vadd.f32 %v12011_v16, %v11916_v58  ;;  %v8131_v58 = vadd.f32 %v12011_v16, %v11920_v38 }
 0x421   : > { %v7903_v7 = vadd.f32 %v7902_v39, %v7901_v17  ;;  %v7793_v56 = vpop.f32.mrb[235].mxu1  ;;  %v7904_v45 = vpop.f32.mrb[42].mxu0 }
 0x422   : > { %v5752_v30 = vadd.f32 %v7791_v29, %v11888_v10  ;;  %v7794_v31 = vadd.f32 %v7793_v56, %v7792_v25  ;;  %v7905_v28 = vpop.f32.mrb[43].mxu0  ;;  %v8127_v29 = vadd.f32 %v12011_v16, %v11908_v0 }
 0x423   : > { %v7906_v23 = vadd.f32 %v7905_v28, %v7904_v45 }
 0x424   : > { %v11996_v20 = vadd.f32 %v7903_v7, %v5752_v30  ;;  %v5755_v6 = vadd.f32 %v7794_v31, %v11892_v14 }
 0x426   : > { %v11999_v12 = vadd.f32 %v7906_v23, %v5755_v6  ;;  %v7795_v22 = vpop.f32.mrb[236].mxu1 }
 0x427   : > { %v7796_v27 = vpop.f32.mrb[237].mxu1  ;;  %v7907_v3 = vpop.f32.mrb[44].mxu0 }
 0x428   : > { %v7797_v36 = vadd.f32 %v7796_v27, %v7795_v22  ;;  %v7798_v4 = vpop.f32.mrb[238].mxu1  ;;  %v7908_v43 = vpop.f32.mrb[45].mxu0  ;;  %v8133_v22 = vadd.f32 %v12011_v16, %v11932_v46 }
 0x429   : > { %v7799_v2 = vpop.f32.mrb[239].mxu1  ;;  %v7909_v57 = vadd.f32 %v7908_v43, %v7907_v3  ;;  %v7910_v10 = vpop.f32.mrb[46].mxu0 }
 0x42a   : > { %v5760_v61 = vadd.f32 %v7797_v36, %v11896_v47  ;;  %v7800_v34 = vadd.f32 %v7799_v2, %v7798_v4  ;;  %v7911_v15 = vpop.f32.mrb[47].mxu0 }
 0x42b   : > { %v7912_v5 = vadd.f32 %v7911_v15, %v7910_v10 }
 0x42c   : > { %v5763_v14 = vadd.f32 %v7800_v34, %v11900_v37  ;;  %v12003_v59 = vadd.f32 %v7909_v57, %v5760_v61  ;;  %v8137_v61 = vadd.f32 %v12011_v16, %v11942_v26 }
 0x42e   : > { %v12005_v50 = vadd.f32 %v7912_v5, %v5763_v14  ;;  %v8141_v5 = vadd.f32 %v12011_v16, %v11945_v48 }
 0x46e   : > { %v8075_v32 = vpop.f32.mrb[240].mxu1 }
 0x46f   : > { %v8121_v47 = vadd.f32 %v8075_v32, %v11914_v54  ;;  %v6193_v19 = vpop.f32.mrb[241].mxu1 }
 0x470   : > { %v8123_v37 = vadd.f32 %v6193_v19, %v11906_v53  ;;  %v8076_v17 = vpop.f32.mrb[242].mxu1  ;;  %v8129_v53 = vadd.f32 %v12011_v16, %v11928_v51  ;;  %v8135_v51 = vadd.f32 %v12011_v16, %v11924_v44  ;;  %v8139_v44 = vadd.f32 %v12011_v16, %v11936_v18 }
 0x471   : > { %v8122_v25 = vadd.f32 %v8121_v47, %v12011_v16  ;;  %v8126_v39 = vadd.f32 %v8125_v8, %v8076_v17  ;;  %v6196_v7 = vpop.f32.mrb[243].mxu1  ;;  %v8143_v47 = vadd.f32 %v12011_v16, %v11939_v55  ;;  %v8147_v55 = vadd.f32 %v12011_v16, %v11948_v1 }
 0x472   : > { %v8124_v56 = vadd.f32 %v8123_v37, %v12011_v16  ;;  %v8128_v45 = vadd.f32 %v8127_v29, %v6196_v7 }
 0x473   : > { %v6354_v30 = vmax.f32 %v8122_v25, 0.0  ;;  %v6355_v31 = vmax.f32 %v8126_v39, 0.0  ;;  %v8145_v25 = vadd.f32 %v12011_v16, %v11954_v42 }
 0x474   : > { %v6352_v54 = vmax.f32 %v8124_v56, 0.0  ;;  %v6353_v28 = vmax.f32 %v8128_v45, 0.0  ;;  %v8149_v56 = vadd.f32 %v12011_v16, %v11957_v62 }
 0x475   : > { %6386 = vst [vmem:[%s12023_s18 + $0x10] sm:$0xff] %v6354_v30  ;;  %6387 = vst [vmem:[%s12023_s18 + $0x18] sm:$0xff] %v6355_v31  ;;  %v8151_v31 = vadd.f32 %v12011_v16, %v11951_v9  ;;  %v8155_v9 = vadd.f32 %v12011_v16, %v11960_v40 }
 0x476   : > { %6384 = vst [vmem:[%s12023_s18] sm:$0xff] %v6352_v54  ;;  %6385 = vst [vmem:[%s12023_s18 + $0x8] sm:$0xff] %v6353_v28  ;;  %v8079_v0 = vpop.f32.mrb[244].mxu1 }
 0x477   : > { %v8130_v23 = vadd.f32 %v8129_v53, %v8079_v0  ;;  %v6209_v6 = vpop.f32.mrb[245].mxu1 }
 0x478   : > { %v8132_v27 = vadd.f32 %v8131_v58, %v6209_v6  ;;  %v8080_v3 = vpop.f32.mrb[246].mxu1 }
 0x479   : > { %v6358_v36 = vmax.f32 %v8130_v23, 0.0  ;;  %v8134_v4 = vadd.f32 %v8133_v22, %v8080_v3  ;;  %v6212_v43 = vpop.f32.mrb[247].mxu1  ;;  %v8153_v23 = vadd.f32 %v12011_v16, %v11966_v21 }
 0x47a   : > { %v6356_v2 = vmax.f32 %v8132_v27, 0.0  ;;  %v8136_v57 = vadd.f32 %v8135_v51, %v6212_v43  ;;  %v8157_v27 = vadd.f32 %v12011_v16, %v11969_v60 }
 0x47b   : > { %6390 = vst [vmem:[%s12023_s18 + $0x30] sm:$0xff] %v6358_v36  ;;  %v6359_v10 = vmax.f32 %v8134_v4, 0.0  ;;  %v8159_v36 = vadd.f32 %v12011_v16, %v11963_v13  ;;  %v8163_v13 = vadd.f32 %v12011_v16, %v11972_v41 }
 0x47c   : > { %6388 = vst [vmem:[%s12023_s18 + $0x20] sm:$0xff] %v6356_v2  ;;  %v6357_v38 = vmax.f32 %v8136_v57, 0.0 }
 0x47d   : > { %6391 = vst [vmem:[%s12023_s18 + $0x38] sm:$0xff] %v6359_v10 }
 0x47e   : > { %6389 = vst [vmem:[%s12023_s18 + $0x28] sm:$0xff] %v6357_v38  ;;  %v8083_v46 = vpop.f32.mrb[248].mxu1  ;;  %v8161_v38 = vadd.f32 %v12011_v16, %v11978_v11 }
 0x47f   : > { %v8138_v34 = vadd.f32 %v8137_v61, %v8083_v46  ;;  %v6225_v15 = vpop.f32.mrb[249].mxu1 }
 0x480   : > { %v8140_v14 = vadd.f32 %v8139_v44, %v6225_v15  ;;  %v8084_v32 = vpop.f32.mrb[250].mxu1  ;;  %v8165_v44 = vadd.f32 %v12011_v16, %v11981_v63 }
 0x481   : > { %v6362_v19 = vmax.f32 %v8138_v34, 0.0  ;;  %v8142_v26 = vadd.f32 %v8141_v5, %v8084_v32  ;;  %v6228_v8 = vpop.f32.mrb[251].mxu1  ;;  %v8167_v5 = vadd.f32 %v12011_v16, %v11975_v35  ;;  %v8171_v35 = vadd.f32 %v12011_v16, %v11984_v52 }
 0x482   : > { %v6360_v37 = vmax.f32 %v8140_v14, 0.0  ;;  %v8144_v17 = vadd.f32 %v8143_v47, %v6228_v8  ;;  %v8169_v8 = vadd.f32 %v12011_v16, %v11990_v24 }
 0x483   : > { %6394 = vst [vmem:[%s12023_s18 + $0x50] sm:$0xff] %v6362_v19  ;;  %v6363_v29 = vmax.f32 %v8142_v26, 0.0 }
 0x484   : > { %6392 = vst [vmem:[%s12023_s18 + $0x40] sm:$0xff] %v6360_v37  ;;  %v6361_v18 = vmax.f32 %v8144_v17, 0.0 }
 0x485   : > { %6395 = vst [vmem:[%s12023_s18 + $0x58] sm:$0xff] %v6363_v29  ;;  %v8173_v29 = vadd.f32 %v12011_v16, %v11993_v33  ;;  %v8177_v33 = vadd.f32 %v12011_v16, %v12003_v59 }
 0x486   : > { %6393 = vst [vmem:[%s12023_s18 + $0x48] sm:$0xff] %v6361_v18  ;;  %v8087_v48 = vpop.f32.mrb[252].mxu1 }
 0x487   : > { %v8146_v39 = vadd.f32 %v8145_v25, %v8087_v48  ;;  %v6241_v7 = vpop.f32.mrb[253].mxu1  ;;  %v8175_v48 = vadd.f32 %v12011_v16, %v11987_v49  ;;  %v8179_v49 = vadd.f32 %v12011_v16, %v11996_v20 }
 0x488   : > { %v8148_v45 = vadd.f32 %v8147_v55, %v6241_v7  ;;  %v8088_v30 = vpop.f32.mrb[254].mxu1 }
 0x489   : > { %v6366_v54 = vmax.f32 %v8146_v39, 0.0  ;;  %v8150_v42 = vadd.f32 %v8149_v56, %v8088_v30  ;;  %v6244_v28 = vpop.f32.mrb[255].mxu1 }
 0x48a   : > { %v6364_v53 = vmax.f32 %v8148_v45, 0.0  ;;  %v8152_v0 = vadd.f32 %v8151_v31, %v6244_v28 }
 0x48b   : > { %6398 = vst [vmem:[%s12023_s18 + $0x70] sm:$0xff] %v6366_v54  ;;  %v6367_v58 = vmax.f32 %v8150_v42, 0.0  ;;  %v8181_v42 = vadd.f32 %v12011_v16, %v12005_v50 }
 0x48c   : > { %6396 = vst [vmem:[%s12023_s18 + $0x60] sm:$0xff] %v6364_v53  ;;  %v6365_v1 = vmax.f32 %v8152_v0, 0.0  ;;  %v8183_v0 = vadd.f32 %v12011_v16, %v11999_v12 }
 0x48d   : > { %6399 = vst [vmem:[%s12023_s18 + $0x78] sm:$0xff] %v6367_v58 }
 0x48e   : > { %6397 = vst [vmem:[%s12023_s18 + $0x68] sm:$0xff] %v6365_v1  ;;  %v8091_v62 = vpop.f32.mrb[0].mxu1 }
 0x48f   : > { %v8154_v6 = vadd.f32 %v8153_v23, %v8091_v62  ;;  %v6257_v22 = vpop.f32.mrb[1].mxu1 }
 0x490   : > { %v8156_v3 = vadd.f32 %v8155_v9, %v6257_v22  ;;  %v8092_v51 = vpop.f32.mrb[2].mxu1 }
 0x491   : > { %v6370_v4 = vmax.f32 %v8154_v6, 0.0  ;;  %v8158_v21 = vadd.f32 %v8157_v27, %v8092_v51  ;;  %v6260_v43 = vpop.f32.mrb[3].mxu1 }
 0x492   : > { %v6368_v2 = vmax.f32 %v8156_v3, 0.0  ;;  %v8160_v57 = vadd.f32 %v8159_v36, %v6260_v43 }
 0x493   : > { %6402 = vst [vmem:[%s12023_s18 + $0x90] sm:$0xff] %v6370_v4  ;;  %v6371_v10 = vmax.f32 %v8158_v21, 0.0 }
 0x494   : > { %6400 = vst [vmem:[%s12023_s18 + $0x80] sm:$0xff] %v6368_v2  ;;  %v6369_v40 = vmax.f32 %v8160_v57, 0.0 }
 0x495   : > { %6403 = vst [vmem:[%s12023_s18 + $0x98] sm:$0xff] %v6371_v10 }
 0x496   : > { %6401 = vst [vmem:[%s12023_s18 + $0x88] sm:$0xff] %v6369_v40  ;;  %v8095_v60 = vpop.f32.mrb[4].mxu1 }
 0x497   : > { %v8162_v61 = vadd.f32 %v8161_v38, %v8095_v60  ;;  %v6273_v46 = vpop.f32.mrb[5].mxu1 }
 0x498   : > { %v8164_v34 = vadd.f32 %v8163_v13, %v6273_v46  ;;  %v8096_v15 = vpop.f32.mrb[6].mxu1 }
 0x499   : > { %v6374_v14 = vmax.f32 %v8162_v61, 0.0  ;;  %v8166_v11 = vadd.f32 %v8165_v44, %v8096_v15  ;;  %v6276_v32 = vpop.f32.mrb[7].mxu1 }
 0x49a   : > { %v6372_v47 = vmax.f32 %v8164_v34, 0.0  ;;  %v8168_v19 = vadd.f32 %v8167_v5, %v6276_v32 }
 0x49b   : > { %6406 = vst [vmem:[%s12023_s18 + $0xb0] sm:$0xff] %v6374_v14  ;;  %v6375_v26 = vmax.f32 %v8166_v11, 0.0 }
 0x49c   : > { %6404 = vst [vmem:[%s12023_s18 + $0xa0] sm:$0xff] %v6372_v47  ;;  %v6373_v41 = vmax.f32 %v8168_v19, 0.0 }
 0x49d   : > { %6407 = vst [vmem:[%s12023_s18 + $0xb8] sm:$0xff] %v6375_v26 }
 0x49e   : > { %6405 = vst [vmem:[%s12023_s18 + $0xa8] sm:$0xff] %v6373_v41  ;;  %v8099_v63 = vpop.f32.mrb[8].mxu1 }
 0x49f   : > { %v8170_v37 = vadd.f32 %v8169_v8, %v8099_v63  ;;  %v6289_v17 = vpop.f32.mrb[9].mxu1 }
 0x4a0   : > { %v8172_v18 = vadd.f32 %v8171_v35, %v6289_v17  ;;  %v8100_v25 = vpop.f32.mrb[10].mxu1 }
 0x4a1   : > { %v6378_v55 = vmax.f32 %v8170_v37, 0.0  ;;  %v8174_v24 = vadd.f32 %v8173_v29, %v8100_v25  ;;  %v6292_v39 = vpop.f32.mrb[11].mxu1 }
 0x4a2   : > { %v6376_v7 = vmax.f32 %v8172_v18, 0.0  ;;  %v8176_v56 = vadd.f32 %v8175_v48, %v6292_v39 }
 0x4a3   : > { %6410 = vst [vmem:[%s12023_s18 + $0xd0] sm:$0xff] %v6378_v55  ;;  %v6379_v52 = vmax.f32 %v8174_v24, 0.0 }
 0x4a4   : > { %6408 = vst [vmem:[%s12023_s18 + $0xc0] sm:$0xff] %v6376_v7  ;;  %v6377_v45 = vmax.f32 %v8176_v56, 0.0 }
 0x4a5   : > { %6411 = vst [vmem:[%s12023_s18 + $0xd8] sm:$0xff] %v6379_v52 }
 0x4a6   : > { %6409 = vst [vmem:[%s12023_s18 + $0xc8] sm:$0xff] %v6377_v45  ;;  %v8103_v30 = vpop.f32.mrb[12].mxu1 }
 0x4a7   : > { %v8178_v31 = vadd.f32 %v8177_v33, %v8103_v30  ;;  %v6305_v54 = vpop.f32.mrb[13].mxu1 }
 0x4a8   : > { %v8180_v28 = vadd.f32 %v8179_v49, %v6305_v54  ;;  %v8104_v53 = vpop.f32.mrb[14].mxu1 }
 0x4a9   : > { %v6382_v59 = vmax.f32 %v8178_v31, 0.0  ;;  %v8182_v58 = vadd.f32 %v8181_v42, %v8104_v53  ;;  %v6308_v20 = vpop.f32.mrb[15].mxu1 }
 0x4aa   : > { %v6380_v1 = vmax.f32 %v8180_v28, 0.0  ;;  %v8184_v23 = vadd.f32 %v8183_v0, %v6308_v20 }
 0x4ab   : > { %6414 = vst [vmem:[%s12023_s18 + $0xf0] sm:$0xff] %v6382_v59  ;;  %v6383_v62 = vmax.f32 %v8182_v58, 0.0 }
 0x4ac   : > { %6412 = vst [vmem:[%s12023_s18 + $0xe0] sm:$0xff] %v6380_v1  ;;  %v6381_v12 = vmax.f32 %v8184_v23, 0.0 }
 0x4ad   : > { %6415 = vst [vmem:[%s12023_s18 + $0xf8] sm:$0xff] %v6383_v62 }
 0x4ae   : > { %6413 = vst [vmem:[%s12023_s18 + $0xe8] sm:$0xff] %v6381_v12 }
 0x4af   : > { %8555 = shalt.err (!%p8552_p7)
}
 0x4b0   : > { %s8556_s8 = scalar_lea.hbm %s12115_s15, 4096  ;;  %s8560_s17 = scalar_lea.hbm %s12172_s7, 8192 }
 0x4b1   : > { %p8557_p8 = scmp.ne.s32.totalorder %s12115_s15, %s8556_s8  ;;  %p8561_p1 = scmp.lt.u32.totalorder %s12115_s15, %s12172_s7 }
 0x4b2   : > { %p8562_p0 = scmp.lt.u32.totalorder %s8560_s17, %s8556_s8  ;;  %p8564_p6 = scmp.lt.u32.totalorder %s8556_s8, %s12115_s15 }
 0x4b3   : > { %p8558_p11 = pnand %p8557_p8, %p12355_p9 }
 0x4b4   : > { %p8563_p5 = por %p8562_p0, %p8561_p1 }
 0x4b5   : > { %p8559_p13 = pneg %p8558_p11 }
 0x4b6   : > { %p8565_p10 = por %p8564_p6, %p8563_p5 }
 0x4b8   : > { %p8566_p12 = pnand %p8565_p10, %p8559_p13 }
 0x4ba   : > { %8569 = shalt.err (!%p8566_p12)
}
 0x4bb   : > { %s8615_s20 = smov 128   ;;  %s8616_s13 = smov 8  }
 0x4bc   : > { %8222 = dma.vmem_to_hbm [thread:$0]  (%p12355_p9), %s12117_s16, 4096, %s12115_s15, %s12124_s28, %s8615_s20, %s8615_s20, %s8616_s13  }
 0x4bd PF: > { %p8234_p2 = scmp.ge.s32.totalorder %s8608_s27, 2  ;;  %s6445_s23 = sand.u32 1, %s8596_s24  }
 0x4be   : > { %p12356_p3 = scmp.ne.s32.totalorder %s12203_s12, 0  ;;  %s6446_s21 = scalar_lea.sflag [#allocation4], %s6445_s23 }
 0x4c0   : > { %p8229_p4 = pnand %p8234_p2, %p12356_p3 }
 0x4c2   : > { %8591 = dma.done.wait (!%p8229_p4), %s6446_s21, 4096  }
 0x4c3   : > { %8593 = vsyncadd (!%p8229_p4), %s6446_s21, 4294963200  ;;  %p18_p7 = scmp.ge.s32.totalorder %s8682_s30, 4   ;;  %s12357_s24 = smov %s8600_s25 }
 0x4c4   : > { %s12358_s25 = smov %s8604_s26  ;;  %s12359_s26 = smov %s8693_s10 }
 0x4c5   : > { %s12360_s27 = smov %s8682_s30  ;;  %20 = sbr.rel (!%p18_p7) target bundleno = 4 (0x4), region = 90 }
 0x4cc   :  { %6451 = vsyncpa [#allocation3], 1 }
 0x4cd   :  { %6453 = vsyncpa [#allocation3 + $0x1], 1 }
 0x4ce   :  { %6454 = vsyncpa [#allocation4], 1 }
 0x4cf   :  { %6456 = vsyncpa [#allocation4 + $0x1], 1 }

</bundles_post_ra>
